<compile_context>
chip_gen: v6e
topology: v6e:2x2x1
jax: 0.10.0
libtpu: 0.0.40
codegen_flags: <defaults>
</compile_context>

<pallas_src>
import functools

import jax
import jax.numpy as jnp
from jax.experimental import pallas as pl
from jax.experimental.pallas import tpu as pltpu


def _round_up(x, m):
    return (x + m - 1) // m * m


# ---------------------------------------------------------------------------
# Fused CAM kernel (one grid step == one image, everything resident in VMEM)
# ---------------------------------------------------------------------------
def _build_cam_kernel(h, w, channel, hchannel):
    hw = h * w
    c4 = channel // 4
    c4p = _round_up(c4, 8)           # per-tap K rows padded to 8 (aligned stores)
    chp = _round_up(channel, 8)
    dils = (1, 2, 3, 4, 1)           # conv3_1, dconv5_1, dconv7_1, dconv9_1, conv3_3

    def _geom(d):
        halo = d * w + d                     # max |row shift| in the flat index
        lpad = _round_up(halo, 128)          # lane-aligned interior start
        return lpad, lpad + hw + halo        # (interior offset, total length)

    geoms = tuple(_geom(d) for d in dils)
    k_max = 9 * max(c4p, chp)

    def conv3x3(p_ref, tap_ref, w_ref, b_ref, xcol, src, d, cin, cinp, lpad):
        """Dilated 3x3 conv (+folded-BN bias +ReLU): src (cin, hw) -> (cout, hw).

        p_ref   : (cin, plen) VMEM scratch; H zero-padding lives in the flat pad.
        tap_ref : (k_max, hw) VMEM scratch holding the (9*cinp, hw) tap matrix.
        w_ref   : (cout, 9*cinp) folded weights (zero cols in the cin..cinp pad).
        """
        plen = p_ref.shape[1]
        p_ref[...] = jnp.zeros((cin, plen), jnp.float32)       # zero halo rows
        p_ref[:, lpad:lpad + hw] = src
        ok_left = xcol >= d            # kx == 0 taps invalid in first d columns
        ok_right = xcol < (w - d)      # kx == 2 taps invalid in last d columns
        for t in range(9):
            ky, kx = divmod(t, 3)
            off = lpad + (ky - 1) * d * w + (kx - 1) * d
            tap = p_ref[:, off:off + hw]
            if kx == 0:
                tap = jnp.where(ok_left, tap, 0.0)
            elif kx == 2:
                tap = jnp.where(ok_right, tap, 0.0)
            tap_ref[t * cinp:t * cinp + cin, :] = tap
            if cinp > cin:             # keep zero-weight K rows finite (no NaNs)
                tap_ref[t * cinp + cin:(t + 1) * cinp, :] = jnp.zeros(
                    (cinp - cin, hw), jnp.float32)
        acc = jnp.dot(w_ref[...], tap_ref[0:9 * cinp, :],
                      preferred_element_type=jnp.float32)
        return jnp.maximum(acc + b_ref[...], 0.0)

    def kernel(lf_ref, hf_ref,
               w1l_ref, w1h_ref, b1_ref,
               w31_ref, b31_ref, w51_ref, b51_ref,
               w71_ref, b71_ref, w91_ref, b91_ref,
               w12a_ref, w12b_ref, w12c_ref, w12d_ref, b12_ref,
               w33_ref, b33_ref,
               out_ref,
               p1, p2, p3, p4, p5, tapb):
        xcol = jax.lax.broadcasted_iota(jnp.int32, (1, hw), 1) % w

        # conv1_1 (1x1): the channel-concat of (lf, hf) is two partial dots.
        x = jnp.dot(w1l_ref[...], lf_ref[...], preferred_element_type=jnp.float32)
        x += jnp.dot(w1h_ref[...], hf_ref[...], preferred_element_type=jnp.float32)
        x = jnp.maximum(x + b1_ref[...], 0.0)                     # (channel, hw)

        xc0 = x[0 * c4:1 * c4, :]
        xc1 = x[1 * c4:2 * c4, :]
        xc2 = x[2 * c4:3 * c4, :]
        xc3 = x[3 * c4:4 * c4, :]

        x0 = conv3x3(p1, tapb, w31_ref, b31_ref, xcol, xc0 + xc1,
                     dils[0], c4, c4p, geoms[0][0])
        x1 = conv3x3(p2, tapb, w51_ref, b51_ref, xcol, xc1 + x0 + xc2,
                     dils[1], c4, c4p, geoms[1][0])
        x2 = conv3x3(p3, tapb, w71_ref, b71_ref, xcol, xc2 + x1 + xc3,
                     dils[2], c4, c4p, geoms[2][0])
        x3 = conv3x3(p4, tapb, w91_ref, b91_ref, xcol, xc3 + x2,
                     dils[3], c4, c4p, geoms[3][0])

        # conv1_2 (1x1) on concat(x0..x3): 4 partial dots -> concat-free.
        xx = jnp.dot(w12a_ref[...], x0, preferred_element_type=jnp.float32)
        xx += jnp.dot(w12b_ref[...], x1, preferred_element_type=jnp.float32)
        xx += jnp.dot(w12c_ref[...], x2, preferred_element_type=jnp.float32)
        xx += jnp.dot(w12d_ref[...], x3, preferred_element_type=jnp.float32)
        xx = jnp.maximum(xx + b12_ref[...], 0.0)                  # (channel, hw)

        out_ref[...] = conv3x3(p5, tapb, w33_ref, b33_ref, xcol, x + xx,
                               dils[4], channel, chp, geoms[4][0])

    scratch_shapes = [
        pltpu.VMEM((c4, geoms[0][1]), jnp.float32),
        pltpu.VMEM((c4, geoms[1][1]), jnp.float32),
        pltpu.VMEM((c4, geoms[2][1]), jnp.float32),
        pltpu.VMEM((c4, geoms[3][1]), jnp.float32),
        pltpu.VMEM((channel, geoms[4][1]), jnp.float32),
        pltpu.VMEM((k_max, hw), jnp.float32),
    ]
    return kernel, scratch_shapes


# ---------------------------------------------------------------------------
# Wrapper: NCHW in / NCHW out (PyTorch convention), float32
# ---------------------------------------------------------------------------
def cam_forward(params, lf_nchw, hf_nchw):
    n, channel, h, w = lf_nchw.shape
    hchannel = hf_nchw.shape[1]
    if hf_nchw.shape[2:] != (h, w):
        # TODO(synk): jax.image.resize(bilinear) approximates
        # F.interpolate(align_corners=False); not exercised when sizes match.
        hf_nchw = jax.image.resize(hf_nchw, (n, hchannel, h, w), method="bilinear")

    hw = h * w
    lf2 = lf_nchw.reshape(n, channel, hw).astype(jnp.float32)
    hf2 = hf_nchw.reshape(n, hchannel, hw).astype(jnp.float32)

    kernel, scratch_shapes = _build_cam_kernel(h, w, channel, hchannel)

    operands = [lf2, hf2,
                params["w1_lf"], params["w1_hf"], params["b1"],
                params["w3_1"], params["b3_1"],
                params["w5_1"], params["b5_1"],
                params["w7_1"], params["b7_1"],
                params["w9_1"], params["b9_1"],
                params["w12_0"], params["w12_1"], params["w12_2"],
                params["w12_3"], params["b12"],
                params["w3_3"], params["b3_3"]]

    in_specs = ([pl.BlockSpec((None, channel, hw), lambda i: (i, 0, 0)),
                 pl.BlockSpec((None, hchannel, hw), lambda i: (i, 0, 0))] +
                [pl.BlockSpec(op.shape, lambda i: (0, 0)) for op in operands[2:]])

    out = pl.pallas_call(
        kernel,
        out_shape=jax.ShapeDtypeStruct((n, channel, hw), jnp.float32),
        grid_spec=pltpu.PrefetchScalarGridSpec(
            num_scalar_prefetch=0,
            grid=(n,),
            in_specs=in_specs,
            out_specs=pl.BlockSpec((None, channel, hw), lambda i: (i, 0, 0)),
            scratch_shapes=scratch_shapes),
        compiler_params=pltpu.CompilerParams(
            dimension_semantics=("parallel",),
            vmem_limit_bytes=48 * 1024 * 1024),
    )(*operands)
    return out.reshape(n, channel, h, w)


# ---------------------------------------------------------------------------
# Deterministic parameter construction (BatchNorm folded into the conv)
# ---------------------------------------------------------------------------
def _fold_bn(w_hwio, conv_bias, gamma, beta, mean, var, eps=1e-5):
    scale = gamma / jnp.sqrt(var + eps)
    return w_hwio * scale, (conv_bias - mean) * scale + beta


def _init_conv_bn(key, cin, cout, ksize, with_conv_bias):
    ks = jax.random.split(key, 6)
    wconv = 0.1 * jax.random.normal(ks[0], (ksize, ksize, cin, cout), jnp.float32)
    cb = (0.1 * jax.random.normal(ks[1], (cout,), jnp.float32)
          if with_conv_bias else jnp.zeros((cout,), jnp.float32))
    gamma = 1.0 + 0.1 * jax.random.normal(ks[2], (cout,), jnp.float32)
    beta = 0.1 * jax.random.normal(ks[3], (cout,), jnp.float32)
    mean = 0.1 * jax.random.normal(ks[4], (cout,), jnp.float32)
    var = jnp.abs(1.0 + 0.1 * jax.random.normal(ks[5], (cout,), jnp.float32))
    return _fold_bn(wconv, cb, gamma, beta, mean, var)


def init_cam_raw_params(key, hchannel, channel):
    """Folded (HWIO weight, bias) pairs; lf channels first in conv1_1's cin."""
    keys = jax.random.split(key, 7)
    c4 = channel // 4
    return {
        "conv1_1": _init_conv_bn(keys[0], channel + hchannel, channel, 1, True),
        "conv3_1": _init_conv_bn(keys[1], c4, c4, 3, False),
        "dconv5_1": _init_conv_bn(keys[2], c4, c4, 3, False),
        "dconv7_1": _init_conv_bn(keys[3], c4, c4, 3, False),
        "dconv9_1": _init_conv_bn(keys[4], c4, c4, 3, False),
        "conv1_2": _init_conv_bn(keys[5], channel, channel, 1, True),
        "conv3_3": _init_conv_bn(keys[6], channel, channel, 3, False),
    }


def _prep_3x3(w_hwio, bias):
    """(3,3,cin,cout) HWIO -> (cout, 9*round_up(cin,8)); pad columns are zero."""
    _, _, cin, cout = w_hwio.shape
    cinp = _round_up(cin, 8)
    wb = jnp.zeros((cout, 9 * cinp), jnp.float32)
    for ky in range(3):
        for kx in range(3):
            t = ky * 3 + kx
            wb = wb.at[:, t * cinp:t * cinp + cin].set(w_hwio[ky, kx].T)
    return wb, bias.reshape(cout, 1).astype(jnp.float32)


def prepare_kernel_params(raw, hchannel, channel):
    c4 = channel // 4
    w1, b1 = raw["conv1_1"]
    w1t = w1[0, 0].T                      # (cout, cin = channel + hchannel)
    w12, b12 = raw["conv1_2"]
    w12t = w12[0, 0].T                    # (channel, channel)
    p = {
        "w1_lf": w1t[:, :channel],
        "w1_hf": w1t[:, channel:],
        "b1": b1.reshape(channel, 1),
        "b12": b12.reshape(channel, 1),
    }
    for i in range(4):
        p[f"w12_{i}"] = w12t[:, i * c4:(i + 1) * c4]
    p["w3_1"], p["b3_1"] = _prep_3x3(*raw["conv3_1"])
    p["w5_1"], p["b5_1"] = _prep_3x3(*raw["dconv5_1"])
    p["w7_1"], p["b7_1"] = _prep_3x3(*raw["dconv7_1"])
    p["w9_1"], p["b9_1"] = _prep_3x3(*raw["dconv9_1"])
    p["w3_3"], p["b3_3"] = _prep_3x3(*raw["conv3_3"])
    return jax.tree_util.tree_map(lambda a: a.astype(jnp.float32), p)


# ---------------------------------------------------------------------------
# Pure-JAX reference (same folded params) for a numerical self-check
# ---------------------------------------------------------------------------
def _conv_bn_relu_ref(x, w_hwio, b, dilation):
    k = w_hwio.shape[0]
    pad = dilation if k == 3 else 0
    y = jax.lax.conv_general_dilated(
        x, w_hwio, window_strides=(1, 1),
        padding=((pad, pad), (pad, pad)),
        rhs_dilation=(dilation, dilation),
        dimension_numbers=("NCHW", "HWIO", "NCHW"),
        precision=jax.lax.Precision.HIGHEST)
    return jax.nn.relu(y + b.reshape(1, -1, 1, 1))


def cam_forward_ref(raw, lf, hf):
    if lf.shape[2:] != hf.shape[2:]:
        hf = jax.image.resize(hf, hf.shape[:2] + lf.shape[2:], method="bilinear")
    x = _conv_bn_relu_ref(jnp.concatenate([lf, hf], axis=1), *raw["conv1_1"], 1)
    xc = jnp.split(x, 4, axis=1)
    x0 = _conv_bn_relu_ref(xc[0] + xc[1], *raw["conv3_1"], 1)
    x1 = _conv_bn_relu_ref(xc[1] + x0 + xc[2], *raw["dconv5_1"], 2)
    x2 = _conv_bn_relu_ref(xc[2] + x1 + xc[3], *raw["dconv7_1"], 3)
    x3 = _conv_bn_relu_ref(xc[3] + x2, *raw["dconv9_1"], 4)
    xx = _conv_bn_relu_ref(jnp.concatenate([x0, x1, x2, x3], axis=1),
                           *raw["conv1_2"], 1)
    return _conv_bn_relu_ref(x + xx, *raw["conv3_3"], 1)


if __name__ == "__main__":
    key = jax.random.PRNGKey(0)
    k_lf, k_hf, k_p = jax.random.split(key, 3)

    batch, channel, hchannel, height, width = 2, 8, 4, 16, 16
    lf = jax.random.normal(k_lf, (batch, channel, height, width), jnp.float32)
    hf = jax.random.normal(k_hf, (batch, hchannel, height, width), jnp.float32)

    raw = init_cam_raw_params(k_p, hchannel, channel)
    kparams = prepare_kernel_params(raw, hchannel, channel)

    fwd = jax.jit(functools.partial(cam_forward, kparams))
    out = jax.block_until_ready(fwd(lf, hf))
    assert out.shape == (batch, channel, height, width), out.shape
    assert out.dtype == jnp.float32

    ref = jax.block_until_ready(cam_forward_ref(raw, lf, hf))
    max_err = float(jnp.max(jnp.abs(out - ref)))
    assert max_err < 5e-2, f"mismatch vs reference: max abs err {max_err}"
    print("KERNEL_OK")
</pallas_src>

<mosaic_0001>
module attributes {stable_mosaic.version = 11 : i64} {
  func.func @kernel(%arg0: i32, %arg1: memref<1x8x256xf32, #tpu.memory_space<vmem>>, %arg2: memref<1x4x256xf32, #tpu.memory_space<vmem>>, %arg3: memref<8x8xf32, #tpu.memory_space<vmem>>, %arg4: memref<8x4xf32, #tpu.memory_space<vmem>>, %arg5: memref<8x1xf32, #tpu.memory_space<vmem>>, %arg6: memref<2x72xf32, #tpu.memory_space<vmem>>, %arg7: memref<2x1xf32, #tpu.memory_space<vmem>>, %arg8: memref<2x72xf32, #tpu.memory_space<vmem>>, %arg9: memref<2x1xf32, #tpu.memory_space<vmem>>, %arg10: memref<2x72xf32, #tpu.memory_space<vmem>>, %arg11: memref<2x1xf32, #tpu.memory_space<vmem>>, %arg12: memref<2x72xf32, #tpu.memory_space<vmem>>, %arg13: memref<2x1xf32, #tpu.memory_space<vmem>>, %arg14: memref<8x2xf32, #tpu.memory_space<vmem>>, %arg15: memref<8x2xf32, #tpu.memory_space<vmem>>, %arg16: memref<8x2xf32, #tpu.memory_space<vmem>>, %arg17: memref<8x2xf32, #tpu.memory_space<vmem>>, %arg18: memref<8x1xf32, #tpu.memory_space<vmem>>, %arg19: memref<8x72xf32, #tpu.memory_space<vmem>>, %arg20: memref<8x1xf32, #tpu.memory_space<vmem>>, %arg21: memref<1x8x256xf32, #tpu.memory_space<vmem>>, %arg22: memref<2x401xf32, #tpu.memory_space<vmem>>, %arg23: memref<2x418xf32, #tpu.memory_space<vmem>>, %arg24: memref<2x435xf32, #tpu.memory_space<vmem>>, %arg25: memref<2x452xf32, #tpu.memory_space<vmem>>, %arg26: memref<8x401xf32, #tpu.memory_space<vmem>>, %arg27: memref<72x256xf32, #tpu.memory_space<vmem>>) attributes {dimension_semantics = [#tpu.dimension_semantics<parallel>], iteration_bounds = array<i64: 2>, scalar_prefetch = 0 : i64, scratch_operands = 6 : i64, tpu.core_type = #tpu.core_type<tc>, window_params = [{transform_indices = @transform_0, window_bounds = array<i64: 1, 8, 256>}, {transform_indices = @transform_1, window_bounds = array<i64: 1, 4, 256>}, {pipeline_mode = #tpu.pipeline_mode<synchronous>, transform_indices = @transform_2, window_bounds = array<i64: 8, 8>}, {pipeline_mode = #tpu.pipeline_mode<synchronous>, transform_indices = @transform_3, window_bounds = array<i64: 8, 4>}, {pipeline_mode = #tpu.pipeline_mode<synchronous>, transform_indices = @transform_4, window_bounds = array<i64: 8, 1>}, {pipeline_mode = #tpu.pipeline_mode<synchronous>, transform_indices = @transform_5, window_bounds = array<i64: 2, 72>}, {pipeline_mode = #tpu.pipeline_mode<synchronous>, transform_indices = @transform_6, window_bounds = array<i64: 2, 1>}, {pipeline_mode = #tpu.pipeline_mode<synchronous>, transform_indices = @transform_7, window_bounds = array<i64: 2, 72>}, {pipeline_mode = #tpu.pipeline_mode<synchronous>, transform_indices = @transform_8, window_bounds = array<i64: 2, 1>}, {pipeline_mode = #tpu.pipeline_mode<synchronous>, transform_indices = @transform_9, window_bounds = array<i64: 2, 72>}, {pipeline_mode = #tpu.pipeline_mode<synchronous>, transform_indices = @transform_10, window_bounds = array<i64: 2, 1>}, {pipeline_mode = #tpu.pipeline_mode<synchronous>, transform_indices = @transform_11, window_bounds = array<i64: 2, 72>}, {pipeline_mode = #tpu.pipeline_mode<synchronous>, transform_indices = @transform_12, window_bounds = array<i64: 2, 1>}, {pipeline_mode = #tpu.pipeline_mode<synchronous>, transform_indices = @transform_13, window_bounds = array<i64: 8, 2>}, {pipeline_mode = #tpu.pipeline_mode<synchronous>, transform_indices = @transform_14, window_bounds = array<i64: 8, 2>}, {pipeline_mode = #tpu.pipeline_mode<synchronous>, transform_indices = @transform_15, window_bounds = array<i64: 8, 2>}, {pipeline_mode = #tpu.pipeline_mode<synchronous>, transform_indices = @transform_16, window_bounds = array<i64: 8, 2>}, {pipeline_mode = #tpu.pipeline_mode<synchronous>, transform_indices = @transform_17, window_bounds = array<i64: 8, 1>}, {pipeline_mode = #tpu.pipeline_mode<synchronous>, transform_indices = @transform_18, window_bounds = array<i64: 8, 72>}, {pipeline_mode = #tpu.pipeline_mode<synchronous>, transform_indices = @transform_19, window_bounds = array<i64: 8, 1>}, {transform_indices = @transform_20, window_bounds = array<i64: 1, 8, 256>}]} {
    %0 = tpu.iota {dimensions = array<i32: 1>} : vector<1x256xi32>
    %c16_i32 = arith.constant 16 : i32
    %c0_i32 = arith.constant 0 : i32
    %1 = arith.cmpi eq, %c16_i32, %c0_i32 : i32
    %c1_i32 = arith.constant 1 : i32
    %2 = arith.select %1, %c1_i32, %c16_i32 : i32
    %3 = vector.broadcast %2 : i32 to vector<1x256xi32>
    %4 = arith.remsi %0, %3 : vector<1x256xi32>
    %c0_i32_0 = arith.constant 0 : i32
    %5 = vector.broadcast %c0_i32_0 : i32 to vector<1x256xi32>
    %6 = arith.cmpi ne, %4, %5 : vector<1x256xi32>
    %c0_i32_1 = arith.constant 0 : i32
    %7 = vector.broadcast %c0_i32_1 : i32 to vector<1x256xi32>
    %8 = arith.cmpi slt, %4, %7 : vector<1x256xi32>
    %c0_i32_2 = arith.constant 0 : i32
    %9 = arith.cmpi slt, %2, %c0_i32_2 : i32
    %10 = vector.broadcast %9 : i1 to vector<1x256xi1>
    %11 = vector.broadcast %10 : vector<1x256xi1> to vector<1x256xi1>
    %12 = arith.xori %8, %11 : vector<1x256xi1>
    %13 = arith.andi %12, %6 : vector<1x256xi1>
    %14 = vector.broadcast %2 : i32 to vector<1x256xi32>
    %15 = arith.addi %4, %14 : vector<1x256xi32>
    %16 = arith.select %13, %15, %4 : vector<1x256xi1>, vector<1x256xi32>
    %c0 = arith.constant 0 : index
    %c0_3 = arith.constant 0 : index
    %17 = vector.load %arg3[%c0, %c0_3] : memref<8x8xf32, #tpu.memory_space<vmem>>, vector<8x8xf32>
    %c0_4 = arith.constant 0 : index
    %c0_5 = arith.constant 0 : index
    %c0_6 = arith.constant 0 : index
    %18 = vector.load %arg1[%c0_4, %c0_5, %c0_6] : memref<1x8x256xf32, #tpu.memory_space<vmem>>, vector<1x8x256xf32>
    %19 = vector.shape_cast %18 : vector<1x8x256xf32> to vector<8x256xf32>
    %cst = arith.constant dense<0.000000e+00> : vector<8x256xf32>
    %20 = tpu.matmul %17, %19, %cst {dimension_numbers = #tpu.dot_dimension_numbers<[1], [0], [0], [1], [0, 0, 1, 1], [], []>} : vector<8x8xf32>, vector<8x256xf32>, vector<8x256xf32> -> vector<8x256xf32>
    %c0_7 = arith.constant 0 : index
    %c0_8 = arith.constant 0 : index
    %21 = vector.load %arg4[%c0_7, %c0_8] : memref<8x4xf32, #tpu.memory_space<vmem>>, vector<8x4xf32>
    %c0_9 = arith.constant 0 : index
    %c0_10 = arith.constant 0 : index
    %c0_11 = arith.constant 0 : index
    %22 = vector.load %arg2[%c0_9, %c0_10, %c0_11] : memref<1x4x256xf32, #tpu.memory_space<vmem>>, vector<1x4x256xf32>
    %23 = vector.shape_cast %22 : vector<1x4x256xf32> to vector<4x256xf32>
    %cst_12 = arith.constant dense<0.000000e+00> : vector<8x256xf32>
    %24 = tpu.matmul %21, %23, %cst_12 {dimension_numbers = #tpu.dot_dimension_numbers<[1], [0], [0], [1], [0, 0, 1, 1], [], []>} : vector<8x4xf32>, vector<4x256xf32>, vector<8x256xf32> -> vector<8x256xf32>
    %25 = arith.addf %20, %24 : vector<8x256xf32>
    %c0_13 = arith.constant 0 : index
    %c0_14 = arith.constant 0 : index
    %26 = vector.load %arg5[%c0_13, %c0_14] : memref<8x1xf32, #tpu.memory_space<vmem>>, vector<8x1xf32>
    %27 = vector.broadcast %26 : vector<8x1xf32> to vector<8x256xf32>
    %28 = arith.addf %25, %27 : vector<8x256xf32>
    %cst_15 = arith.constant 0.000000e+00 : f32
    %29 = vector.broadcast %cst_15 : f32 to vector<8x256xf32>
    %30 = arith.maximumf %28, %29 : vector<8x256xf32>
    %31 = vector.extract_strided_slice %30 {offsets = [0, 0], sizes = [2, 256], strides = [1, 1]} : vector<8x256xf32> to vector<2x256xf32>
    %32 = vector.extract_strided_slice %30 {offsets = [2, 0], sizes = [2, 256], strides = [1, 1]} : vector<8x256xf32> to vector<2x256xf32>
    %33 = vector.extract_strided_slice %30 {offsets = [4, 0], sizes = [2, 256], strides = [1, 1]} : vector<8x256xf32> to vector<2x256xf32>
    %34 = vector.extract_strided_slice %30 {offsets = [6, 0], sizes = [2, 256], strides = [1, 1]} : vector<8x256xf32> to vector<2x256xf32>
    %35 = arith.addf %31, %32 : vector<2x256xf32>
    %cst_16 = arith.constant 0.000000e+00 : f32
    %36 = vector.broadcast %cst_16 : f32 to vector<2x401xf32>
    %c0_17 = arith.constant 0 : index
    %c0_18 = arith.constant 0 : index
    %37 = vector.load %arg22[%c0_17, %c0_18] : memref<2x401xf32, #tpu.memory_space<vmem>>, vector<2x401xf32>
    tpu.vector_store %arg22[%c0_17, %c0_18], %36 {strides = array<i32>} : memref<2x401xf32, #tpu.memory_space<vmem>>, vector<2x401xf32>,
    %c0_19 = arith.constant 0 : index
    %c128 = arith.constant 128 : index
    %38 = vector.load %arg22[%c0_19, %c128] : memref<2x401xf32, #tpu.memory_space<vmem>>, vector<2x256xf32>
    tpu.vector_store %arg22[%c0_19, %c128], %35 {strides = array<i32>} : memref<2x401xf32, #tpu.memory_space<vmem>>, vector<2x256xf32>,
    %c1_i32_20 = arith.constant 1 : i32
    %39 = vector.broadcast %c1_i32_20 : i32 to vector<1x256xi32>
    %40 = arith.cmpi sge, %16, %39 : vector<1x256xi32>
    %c15_i32 = arith.constant 15 : i32
    %41 = vector.broadcast %c15_i32 : i32 to vector<1x256xi32>
    %42 = arith.cmpi slt, %16, %41 : vector<1x256xi32>
    %c0_21 = arith.constant 0 : index
    %c111 = arith.constant 111 : index
    %43 = vector.load %arg22[%c0_21, %c111] : memref<2x401xf32, #tpu.memory_space<vmem>>, vector<2x256xf32>
    %cst_22 = arith.constant 0.000000e+00 : f32
    %44 = vector.shape_cast %40 : vector<1x256xi1> to vector<1x256xi1>
    %45 = vector.broadcast %44 : vector<1x256xi1> to vector<2x256xi1>
    %46 = vector.broadcast %cst_22 : f32 to vector<2x256xf32>
    %47 = arith.select %45, %43, %46 : vector<2x256xi1>, vector<2x256xf32>
    %c0_23 = arith.constant 0 : index
    %c0_24 = arith.constant 0 : index
    %48 = vector.load %arg27[%c0_23, %c0_24] : memref<72x256xf32, #tpu.memory_space<vmem>>, vector<2x256xf32>
    tpu.vector_store %arg27[%c0_23, %c0_24], %47 {strides = array<i32>} : memref<72x256xf32, #tpu.memory_space<vmem>>, vector<2x256xf32>,
    %cst_25 = arith.constant 0.000000e+00 : f32
    %49 = vector.broadcast %cst_25 : f32 to vector<6x256xf32>
    %c2 = arith.constant 2 : index
    %c0_26 = arith.constant 0 : index
    %50 = vector.load %arg27[%c2, %c0_26] : memref<72x256xf32, #tpu.memory_space<vmem>>, vector<6x256xf32>
    tpu.vector_store %arg27[%c2, %c0_26], %49 {strides = array<i32>} : memref<72x256xf32, #tpu.memory_space<vmem>>, vector<6x256xf32>,
    %c0_27 = arith.constant 0 : index
    %c112 = arith.constant 112 : index
    %51 = vector.load %arg22[%c0_27, %c112] : memref<2x401xf32, #tpu.memory_space<vmem>>, vector<2x256xf32>
    %c8 = arith.constant 8 : index
    %c0_28 = arith.constant 0 : index
    %52 = vector.load %arg27[%c8, %c0_28] : memref<72x256xf32, #tpu.memory_space<vmem>>, vector<2x256xf32>
    tpu.vector_store %arg27[%c8, %c0_28], %51 {strides = array<i32>} : memref<72x256xf32, #tpu.memory_space<vmem>>, vector<2x256xf32>,
    %cst_29 = arith.constant 0.000000e+00 : f32
    %53 = vector.broadcast %cst_29 : f32 to vector<6x256xf32>
    %c10 = arith.constant 10 : index
    %c0_30 = arith.constant 0 : index
    %54 = vector.load %arg27[%c10, %c0_30] : memref<72x256xf32, #tpu.memory_space<vmem>>, vector<6x256xf32>
    tpu.vector_store %arg27[%c10, %c0_30], %53 {strides = array<i32>} : memref<72x256xf32, #tpu.memory_space<vmem>>, vector<6x256xf32>,
    %c0_31 = arith.constant 0 : index
    %c113 = arith.constant 113 : index
    %55 = vector.load %arg22[%c0_31, %c113] : memref<2x401xf32, #tpu.memory_space<vmem>>, vector<2x256xf32>
    %cst_32 = arith.constant 0.000000e+00 : f32
    %56 = vector.shape_cast %42 : vector<1x256xi1> to vector<1x256xi1>
    %57 = vector.broadcast %56 : vector<1x256xi1> to vector<2x256xi1>
    %58 = vector.broadcast %cst_32 : f32 to vector<2x256xf32>
    %59 = arith.select %57, %55, %58 : vector<2x256xi1>, vector<2x256xf32>
    %c16 = arith.constant 16 : index
    %c0_33 = arith.constant 0 : index
    %60 = vector.load %arg27[%c16, %c0_33] : memref<72x256xf32, #tpu.memory_space<vmem>>, vector<2x256xf32>
    tpu.vector_store %arg27[%c16, %c0_33], %59 {strides = array<i32>} : memref<72x256xf32, #tpu.memory_space<vmem>>, vector<2x256xf32>,
    %cst_34 = arith.constant 0.000000e+00 : f32
    %61 = vector.broadcast %cst_34 : f32 to vector<6x256xf32>
    %c18 = arith.constant 18 : index
    %c0_35 = arith.constant 0 : index
    %62 = vector.load %arg27[%c18, %c0_35] : memref<72x256xf32, #tpu.memory_space<vmem>>, vector<6x256xf32>
    tpu.vector_store %arg27[%c18, %c0_35], %61 {strides = array<i32>} : memref<72x256xf32, #tpu.memory_space<vmem>>, vector<6x256xf32>,
    %c0_36 = arith.constant 0 : index
    %c127 = arith.constant 127 : index
    %63 = vector.load %arg22[%c0_36, %c127] : memref<2x401xf32, #tpu.memory_space<vmem>>, vector<2x256xf32>
    %cst_37 = arith.constant 0.000000e+00 : f32
    %64 = vector.shape_cast %40 : vector<1x256xi1> to vector<1x256xi1>
    %65 = vector.broadcast %64 : vector<1x256xi1> to vector<2x256xi1>
    %66 = vector.broadcast %cst_37 : f32 to vector<2x256xf32>
    %67 = arith.select %65, %63, %66 : vector<2x256xi1>, vector<2x256xf32>
    %c24 = arith.constant 24 : index
    %c0_38 = arith.constant 0 : index
    %68 = vector.load %arg27[%c24, %c0_38] : memref<72x256xf32, #tpu.memory_space<vmem>>, vector<2x256xf32>
    tpu.vector_store %arg27[%c24, %c0_38], %67 {strides = array<i32>} : memref<72x256xf32, #tpu.memory_space<vmem>>, vector<2x256xf32>,
    %cst_39 = arith.constant 0.000000e+00 : f32
    %69 = vector.broadcast %cst_39 : f32 to vector<6x256xf32>
    %c26 = arith.constant 26 : index
    %c0_40 = arith.constant 0 : index
    %70 = vector.load %arg27[%c26, %c0_40] : memref<72x256xf32, #tpu.memory_space<vmem>>, vector<6x256xf32>
    tpu.vector_store %arg27[%c26, %c0_40], %69 {strides = array<i32>} : memref<72x256xf32, #tpu.memory_space<vmem>>, vector<6x256xf32>,
    %c0_41 = arith.constant 0 : index
    %c128_42 = arith.constant 128 : index
    %71 = vector.load %arg22[%c0_41, %c128_42] : memref<2x401xf32, #tpu.memory_space<vmem>>, vector<2x256xf32>
    %c32 = arith.constant 32 : index
    %c0_43 = arith.constant 0 : index
    %72 = vector.load %arg27[%c32, %c0_43] : memref<72x256xf32, #tpu.memory_space<vmem>>, vector<2x256xf32>
    tpu.vector_store %arg27[%c32, %c0_43], %71 {strides = array<i32>} : memref<72x256xf32, #tpu.memory_space<vmem>>, vector<2x256xf32>,
    %cst_44 = arith.constant 0.000000e+00 : f32
    %73 = vector.broadcast %cst_44 : f32 to vector<6x256xf32>
    %c34 = arith.constant 34 : index
    %c0_45 = arith.constant 0 : index
    %74 = vector.load %arg27[%c34, %c0_45] : memref<72x256xf32, #tpu.memory_space<vmem>>, vector<6x256xf32>
    tpu.vector_store %arg27[%c34, %c0_45], %73 {strides = array<i32>} : memref<72x256xf32, #tpu.memory_space<vmem>>, vector<6x256xf32>,
    %c0_46 = arith.constant 0 : index
    %c129 = arith.constant 129 : index
    %75 = vector.load %arg22[%c0_46, %c129] : memref<2x401xf32, #tpu.memory_space<vmem>>, vector<2x256xf32>
    %cst_47 = arith.constant 0.000000e+00 : f32
    %76 = vector.shape_cast %42 : vector<1x256xi1> to vector<1x256xi1>
    %77 = vector.broadcast %76 : vector<1x256xi1> to vector<2x256xi1>
    %78 = vector.broadcast %cst_47 : f32 to vector<2x256xf32>
    %79 = arith.select %77, %75, %78 : vector<2x256xi1>, vector<2x256xf32>
    %c40 = arith.constant 40 : index
    %c0_48 = arith.constant 0 : index
    %80 = vector.load %arg27[%c40, %c0_48] : memref<72x256xf32, #tpu.memory_space<vmem>>, vector<2x256xf32>
    tpu.vector_store %arg27[%c40, %c0_48], %79 {strides = array<i32>} : memref<72x256xf32, #tpu.memory_space<vmem>>, vector<2x256xf32>,
    %cst_49 = arith.constant 0.000000e+00 : f32
    %81 = vector.broadcast %cst_49 : f32 to vector<6x256xf32>
    %c42 = arith.constant 42 : index
    %c0_50 = arith.constant 0 : index
    %82 = vector.load %arg27[%c42, %c0_50] : memref<72x256xf32, #tpu.memory_space<vmem>>, vector<6x256xf32>
    tpu.vector_store %arg27[%c42, %c0_50], %81 {strides = array<i32>} : memref<72x256xf32, #tpu.memory_space<vmem>>, vector<6x256xf32>,
    %c0_51 = arith.constant 0 : index
    %c143 = arith.constant 143 : index
    %83 = vector.load %arg22[%c0_51, %c143] : memref<2x401xf32, #tpu.memory_space<vmem>>, vector<2x256xf32>
    %cst_52 = arith.constant 0.000000e+00 : f32
    %84 = vector.shape_cast %40 : vector<1x256xi1> to vector<1x256xi1>
    %85 = vector.broadcast %84 : vector<1x256xi1> to vector<2x256xi1>
    %86 = vector.broadcast %cst_52 : f32 to vector<2x256xf32>
    %87 = arith.select %85, %83, %86 : vector<2x256xi1>, vector<2x256xf32>
    %c48 = arith.constant 48 : index
    %c0_53 = arith.constant 0 : index
    %88 = vector.load %arg27[%c48, %c0_53] : memref<72x256xf32, #tpu.memory_space<vmem>>, vector<2x256xf32>
    tpu.vector_store %arg27[%c48, %c0_53], %87 {strides = array<i32>} : memref<72x256xf32, #tpu.memory_space<vmem>>, vector<2x256xf32>,
    %cst_54 = arith.constant 0.000000e+00 : f32
    %89 = vector.broadcast %cst_54 : f32 to vector<6x256xf32>
    %c50 = arith.constant 50 : index
    %c0_55 = arith.constant 0 : index
    %90 = vector.load %arg27[%c50, %c0_55] : memref<72x256xf32, #tpu.memory_space<vmem>>, vector<6x256xf32>
    tpu.vector_store %arg27[%c50, %c0_55], %89 {strides = array<i32>} : memref<72x256xf32, #tpu.memory_space<vmem>>, vector<6x256xf32>,
    %c0_56 = arith.constant 0 : index
    %c144 = arith.constant 144 : index
    %91 = vector.load %arg22[%c0_56, %c144] : memref<2x401xf32, #tpu.memory_space<vmem>>, vector<2x256xf32>
    %c56 = arith.constant 56 : index
    %c0_57 = arith.constant 0 : index
    %92 = vector.load %arg27[%c56, %c0_57] : memref<72x256xf32, #tpu.memory_space<vmem>>, vector<2x256xf32>
    tpu.vector_store %arg27[%c56, %c0_57], %91 {strides = array<i32>} : memref<72x256xf32, #tpu.memory_space<vmem>>, vector<2x256xf32>,
    %cst_58 = arith.constant 0.000000e+00 : f32
    %93 = vector.broadcast %cst_58 : f32 to vector<6x256xf32>
    %c58 = arith.constant 58 : index
    %c0_59 = arith.constant 0 : index
    %94 = vector.load %arg27[%c58, %c0_59] : memref<72x256xf32, #tpu.memory_space<vmem>>, vector<6x256xf32>
    tpu.vector_store %arg27[%c58, %c0_59], %93 {strides = array<i32>} : memref<72x256xf32, #tpu.memory_space<vmem>>, vector<6x256xf32>,
    %c0_60 = arith.constant 0 : index
    %c145 = arith.constant 145 : index
    %95 = vector.load %arg22[%c0_60, %c145] : memref<2x401xf32, #tpu.memory_space<vmem>>, vector<2x256xf32>
    %cst_61 = arith.constant 0.000000e+00 : f32
    %96 = vector.shape_cast %42 : vector<1x256xi1> to vector<1x256xi1>
    %97 = vector.broadcast %96 : vector<1x256xi1> to vector<2x256xi1>
    %98 = vector.broadcast %cst_61 : f32 to vector<2x256xf32>
    %99 = arith.select %97, %95, %98 : vector<2x256xi1>, vector<2x256xf32>
    %c64 = arith.constant 64 : index
    %c0_62 = arith.constant 0 : index
    %100 = vector.load %arg27[%c64, %c0_62] : memref<72x256xf32, #tpu.memory_space<vmem>>, vector<2x256xf32>
    tpu.vector_store %arg27[%c64, %c0_62], %99 {strides = array<i32>} : memref<72x256xf32, #tpu.memory_space<vmem>>, vector<2x256xf32>,
    %cst_63 = arith.constant 0.000000e+00 : f32
    %101 = vector.broadcast %cst_63 : f32 to vector<6x256xf32>
    %c66 = arith.constant 66 : index
    %c0_64 = arith.constant 0 : index
    %102 = vector.load %arg27[%c66, %c0_64] : memref<72x256xf32, #tpu.memory_space<vmem>>, vector<6x256xf32>
    tpu.vector_store %arg27[%c66, %c0_64], %101 {strides = array<i32>} : memref<72x256xf32, #tpu.memory_space<vmem>>, vector<6x256xf32>,
    %c0_65 = arith.constant 0 : index
    %c0_66 = arith.constant 0 : index
    %103 = vector.load %arg6[%c0_65, %c0_66] : memref<2x72xf32, #tpu.memory_space<vmem>>, vector<2x72xf32>
    %c0_67 = arith.constant 0 : index
    %c0_68 = arith.constant 0 : index
    %104 = vector.load %arg27[%c0_67, %c0_68] : memref<72x256xf32, #tpu.memory_space<vmem>>, vector<72x256xf32>
    %cst_69 = arith.constant dense<0.000000e+00> : vector<2x256xf32>
    %105 = tpu.matmul %103, %104, %cst_69 {dimension_numbers = #tpu.dot_dimension_numbers<[1], [0], [0], [1], [0, 0, 1, 1], [], []>} : vector<2x72xf32>, vector<72x256xf32>, vector<2x256xf32> -> vector<2x256xf32>
    %c0_70 = arith.constant 0 : index
    %c0_71 = arith.constant 0 : index
    %106 = vector.load %arg7[%c0_70, %c0_71] : memref<2x1xf32, #tpu.memory_space<vmem>>, vector<2x1xf32>
    %107 = vector.broadcast %106 : vector<2x1xf32> to vector<2x256xf32>
    %108 = arith.addf %105, %107 : vector<2x256xf32>
    %cst_72 = arith.constant 0.000000e+00 : f32
    %109 = vector.broadcast %cst_72 : f32 to vector<2x256xf32>
    %110 = arith.maximumf %108, %109 : vector<2x256xf32>
    %111 = arith.addf %32, %110 : vector<2x256xf32>
    %112 = arith.addf %111, %33 : vector<2x256xf32>
    %cst_73 = arith.constant 0.000000e+00 : f32
    %113 = vector.broadcast %cst_73 : f32 to vector<2x418xf32>
    %c0_74 = arith.constant 0 : index
    %c0_75 = arith.constant 0 : index
    %114 = vector.load %arg23[%c0_74, %c0_75] : memref<2x418xf32, #tpu.memory_space<vmem>>, vector<2x418xf32>
    tpu.vector_store %arg23[%c0_74, %c0_75], %113 {strides = array<i32>} : memref<2x418xf32, #tpu.memory_space<vmem>>, vector<2x418xf32>,
    %c0_76 = arith.constant 0 : index
    %c128_77 = arith.constant 128 : index
    %115 = vector.load %arg23[%c0_76, %c128_77] : memref<2x418xf32, #tpu.memory_space<vmem>>, vector<2x256xf32>
    tpu.vector_store %arg23[%c0_76, %c128_77], %112 {strides = array<i32>} : memref<2x418xf32, #tpu.memory_space<vmem>>, vector<2x256xf32>,
    %c2_i32 = arith.constant 2 : i32
    %116 = vector.broadcast %c2_i32 : i32 to vector<1x256xi32>
    %117 = arith.cmpi sge, %16, %116 : vector<1x256xi32>
    %c14_i32 = arith.constant 14 : i32
    %118 = vector.broadcast %c14_i32 : i32 to vector<1x256xi32>
    %119 = arith.cmpi slt, %16, %118 : vector<1x256xi32>
    %c0_78 = arith.constant 0 : index
    %c94 = arith.constant 94 : index
    %120 = vector.load %arg23[%c0_78, %c94] : memref<2x418xf32, #tpu.memory_space<vmem>>, vector<2x256xf32>
    %cst_79 = arith.constant 0.000000e+00 : f32
    %121 = vector.shape_cast %117 : vector<1x256xi1> to vector<1x256xi1>
    %122 = vector.broadcast %121 : vector<1x256xi1> to vector<2x256xi1>
    %123 = vector.broadcast %cst_79 : f32 to vector<2x256xf32>
    %124 = arith.select %122, %120, %123 : vector<2x256xi1>, vector<2x256xf32>
    %c0_80 = arith.constant 0 : index
    %c0_81 = arith.constant 0 : index
    %125 = vector.load %arg27[%c0_80, %c0_81] : memref<72x256xf32, #tpu.memory_space<vmem>>, vector<2x256xf32>
    tpu.vector_store %arg27[%c0_80, %c0_81], %124 {strides = array<i32>} : memref<72x256xf32, #tpu.memory_space<vmem>>, vector<2x256xf32>,
    %cst_82 = arith.constant 0.000000e+00 : f32
    %126 = vector.broadcast %cst_82 : f32 to vector<6x256xf32>
    %c2_83 = arith.constant 2 : index
    %c0_84 = arith.constant 0 : index
    %127 = vector.load %arg27[%c2_83, %c0_84] : memref<72x256xf32, #tpu.memory_space<vmem>>, vector<6x256xf32>
    tpu.vector_store %arg27[%c2_83, %c0_84], %126 {strides = array<i32>} : memref<72x256xf32, #tpu.memory_space<vmem>>, vector<6x256xf32>,
    %c0_85 = arith.constant 0 : index
    %c96 = arith.constant 96 : index
    %128 = vector.load %arg23[%c0_85, %c96] : memref<2x418xf32, #tpu.memory_space<vmem>>, vector<2x256xf32>
    %c8_86 = arith.constant 8 : index
    %c0_87 = arith.constant 0 : index
    %129 = vector.load %arg27[%c8_86, %c0_87] : memref<72x256xf32, #tpu.memory_space<vmem>>, vector<2x256xf32>
    tpu.vector_store %arg27[%c8_86, %c0_87], %128 {strides = array<i32>} : memref<72x256xf32, #tpu.memory_space<vmem>>, vector<2x256xf32>,
    %cst_88 = arith.constant 0.000000e+00 : f32
    %130 = vector.broadcast %cst_88 : f32 to vector<6x256xf32>
    %c10_89 = arith.constant 10 : index
    %c0_90 = arith.constant 0 : index
    %131 = vector.load %arg27[%c10_89, %c0_90] : memref<72x256xf32, #tpu.memory_space<vmem>>, vector<6x256xf32>
    tpu.vector_store %arg27[%c10_89, %c0_90], %130 {strides = array<i32>} : memref<72x256xf32, #tpu.memory_space<vmem>>, vector<6x256xf32>,
    %c0_91 = arith.constant 0 : index
    %c98 = arith.constant 98 : index
    %132 = vector.load %arg23[%c0_91, %c98] : memref<2x418xf32, #tpu.memory_space<vmem>>, vector<2x256xf32>
    %cst_92 = arith.constant 0.000000e+00 : f32
    %133 = vector.shape_cast %119 : vector<1x256xi1> to vector<1x256xi1>
    %134 = vector.broadcast %133 : vector<1x256xi1> to vector<2x256xi1>
    %135 = vector.broadcast %cst_92 : f32 to vector<2x256xf32>
    %136 = arith.select %134, %132, %135 : vector<2x256xi1>, vector<2x256xf32>
    %c16_93 = arith.constant 16 : index
    %c0_94 = arith.constant 0 : index
    %137 = vector.load %arg27[%c16_93, %c0_94] : memref<72x256xf32, #tpu.memory_space<vmem>>, vector<2x256xf32>
    tpu.vector_store %arg27[%c16_93, %c0_94], %136 {strides = array<i32>} : memref<72x256xf32, #tpu.memory_space<vmem>>, vector<2x256xf32>,
    %cst_95 = arith.constant 0.000000e+00 : f32
    %138 = vector.broadcast %cst_95 : f32 to vector<6x256xf32>
    %c18_96 = arith.constant 18 : index
    %c0_97 = arith.constant 0 : index
    %139 = vector.load %arg27[%c18_96, %c0_97] : memref<72x256xf32, #tpu.memory_space<vmem>>, vector<6x256xf32>
    tpu.vector_store %arg27[%c18_96, %c0_97], %138 {strides = array<i32>} : memref<72x256xf32, #tpu.memory_space<vmem>>, vector<6x256xf32>,
    %c0_98 = arith.constant 0 : index
    %c126 = arith.constant 126 : index
    %140 = vector.load %arg23[%c0_98, %c126] : memref<2x418xf32, #tpu.memory_space<vmem>>, vector<2x256xf32>
    %cst_99 = arith.constant 0.000000e+00 : f32
    %141 = vector.shape_cast %117 : vector<1x256xi1> to vector<1x256xi1>
    %142 = vector.broadcast %141 : vector<1x256xi1> to vector<2x256xi1>
    %143 = vector.broadcast %cst_99 : f32 to vector<2x256xf32>
    %144 = arith.select %142, %140, %143 : vector<2x256xi1>, vector<2x256xf32>
    %c24_100 = arith.constant 24 : index
    %c0_101 = arith.constant 0 : index
    %145 = vector.load %arg27[%c24_100, %c0_101] : memref<72x256xf32, #tpu.memory_space<vmem>>, vector<2x256xf32>
    tpu.vector_store %arg27[%c24_100, %c0_101], %144 {strides = array<i32>} : memref<72x256xf32, #tpu.memory_space<vmem>>, vector<2x256xf32>,
    %cst_102 = arith.constant 0.000000e+00 : f32
    %146 = vector.broadcast %cst_102 : f32 to vector<6x256xf32>
    %c26_103 = arith.constant 26 : index
    %c0_104 = arith.constant 0 : index
    %147 = vector.load %arg27[%c26_103, %c0_104] : memref<72x256xf32, #tpu.memory_space<vmem>>, vector<6x256xf32>
    tpu.vector_store %arg27[%c26_103, %c0_104], %146 {strides = array<i32>} : memref<72x256xf32, #tpu.memory_space<vmem>>, vector<6x256xf32>,
    %c0_105 = arith.constant 0 : index
    %c128_106 = arith.constant 128 : index
    %148 = vector.load %arg23[%c0_105, %c128_106] : memref<2x418xf32, #tpu.memory_space<vmem>>, vector<2x256xf32>
    %c32_107 = arith.constant 32 : index
    %c0_108 = arith.constant 0 : index
    %149 = vector.load %arg27[%c32_107, %c0_108] : memref<72x256xf32, #tpu.memory_space<vmem>>, vector<2x256xf32>
    tpu.vector_store %arg27[%c32_107, %c0_108], %148 {strides = array<i32>} : memref<72x256xf32, #tpu.memory_space<vmem>>, vector<2x256xf32>,
    %cst_109 = arith.constant 0.000000e+00 : f32
    %150 = vector.broadcast %cst_109 : f32 to vector<6x256xf32>
    %c34_110 = arith.constant 34 : index
    %c0_111 = arith.constant 0 : index
    %151 = vector.load %arg27[%c34_110, %c0_111] : memref<72x256xf32, #tpu.memory_space<vmem>>, vector<6x256xf32>
    tpu.vector_store %arg27[%c34_110, %c0_111], %150 {strides = array<i32>} : memref<72x256xf32, #tpu.memory_space<vmem>>, vector<6x256xf32>,
    %c0_112 = arith.constant 0 : index
    %c130 = arith.constant 130 : index
    %152 = vector.load %arg23[%c0_112, %c130] : memref<2x418xf32, #tpu.memory_space<vmem>>, vector<2x256xf32>
    %cst_113 = arith.constant 0.000000e+00 : f32
    %153 = vector.shape_cast %119 : vector<1x256xi1> to vector<1x256xi1>
    %154 = vector.broadcast %153 : vector<1x256xi1> to vector<2x256xi1>
    %155 = vector.broadcast %cst_113 : f32 to vector<2x256xf32>
    %156 = arith.select %154, %152, %155 : vector<2x256xi1>, vector<2x256xf32>
    %c40_114 = arith.constant 40 : index
    %c0_115 = arith.constant 0 : index
    %157 = vector.load %arg27[%c40_114, %c0_115] : memref<72x256xf32, #tpu.memory_space<vmem>>, vector<2x256xf32>
    tpu.vector_store %arg27[%c40_114, %c0_115], %156 {strides = array<i32>} : memref<72x256xf32, #tpu.memory_space<vmem>>, vector<2x256xf32>,
    %cst_116 = arith.constant 0.000000e+00 : f32
    %158 = vector.broadcast %cst_116 : f32 to vector<6x256xf32>
    %c42_117 = arith.constant 42 : index
    %c0_118 = arith.constant 0 : index
    %159 = vector.load %arg27[%c42_117, %c0_118] : memref<72x256xf32, #tpu.memory_space<vmem>>, vector<6x256xf32>
    tpu.vector_store %arg27[%c42_117, %c0_118], %158 {strides = array<i32>} : memref<72x256xf32, #tpu.memory_space<vmem>>, vector<6x256xf32>,
    %c0_119 = arith.constant 0 : index
    %c158 = arith.constant 158 : index
    %160 = vector.load %arg23[%c0_119, %c158] : memref<2x418xf32, #tpu.memory_space<vmem>>, vector<2x256xf32>
    %cst_120 = arith.constant 0.000000e+00 : f32
    %161 = vector.shape_cast %117 : vector<1x256xi1> to vector<1x256xi1>
    %162 = vector.broadcast %161 : vector<1x256xi1> to vector<2x256xi1>
    %163 = vector.broadcast %cst_120 : f32 to vector<2x256xf32>
    %164 = arith.select %162, %160, %163 : vector<2x256xi1>, vector<2x256xf32>
    %c48_121 = arith.constant 48 : index
    %c0_122 = arith.constant 0 : index
    %165 = vector.load %arg27[%c48_121, %c0_122] : memref<72x256xf32, #tpu.memory_space<vmem>>, vector<2x256xf32>
    tpu.vector_store %arg27[%c48_121, %c0_122], %164 {strides = array<i32>} : memref<72x256xf32, #tpu.memory_space<vmem>>, vector<2x256xf32>,
    %cst_123 = arith.constant 0.000000e+00 : f32
    %166 = vector.broadcast %cst_123 : f32 to vector<6x256xf32>
    %c50_124 = arith.constant 50 : index
    %c0_125 = arith.constant 0 : index
    %167 = vector.load %arg27[%c50_124, %c0_125] : memref<72x256xf32, #tpu.memory_space<vmem>>, vector<6x256xf32>
    tpu.vector_store %arg27[%c50_124, %c0_125], %166 {strides = array<i32>} : memref<72x256xf32, #tpu.memory_space<vmem>>, vector<6x256xf32>,
    %c0_126 = arith.constant 0 : index
    %c160 = arith.constant 160 : index
    %168 = vector.load %arg23[%c0_126, %c160] : memref<2x418xf32, #tpu.memory_space<vmem>>, vector<2x256xf32>
    %c56_127 = arith.constant 56 : index
    %c0_128 = arith.constant 0 : index
    %169 = vector.load %arg27[%c56_127, %c0_128] : memref<72x256xf32, #tpu.memory_space<vmem>>, vector<2x256xf32>
    tpu.vector_store %arg27[%c56_127, %c0_128], %168 {strides = array<i32>} : memref<72x256xf32, #tpu.memory_space<vmem>>, vector<2x256xf32>,
    %cst_129 = arith.constant 0.000000e+00 : f32
    %170 = vector.broadcast %cst_129 : f32 to vector<6x256xf32>
    %c58_130 = arith.constant 58 : index
    %c0_131 = arith.constant 0 : index
    %171 = vector.load %arg27[%c58_130, %c0_131] : memref<72x256xf32, #tpu.memory_space<vmem>>, vector<6x256xf32>
    tpu.vector_store %arg27[%c58_130, %c0_131], %170 {strides = array<i32>} : memref<72x256xf32, #tpu.memory_space<vmem>>, vector<6x256xf32>,
    %c0_132 = arith.constant 0 : index
    %c162 = arith.constant 162 : index
    %172 = vector.load %arg23[%c0_132, %c162] : memref<2x418xf32, #tpu.memory_space<vmem>>, vector<2x256xf32>
    %cst_133 = arith.constant 0.000000e+00 : f32
    %173 = vector.shape_cast %119 : vector<1x256xi1> to vector<1x256xi1>
    %174 = vector.broadcast %173 : vector<1x256xi1> to vector<2x256xi1>
    %175 = vector.broadcast %cst_133 : f32 to vector<2x256xf32>
    %176 = arith.select %174, %172, %175 : vector<2x256xi1>, vector<2x256xf32>
    %c64_134 = arith.constant 64 : index
    %c0_135 = arith.constant 0 : index
    %177 = vector.load %arg27[%c64_134, %c0_135] : memref<72x256xf32, #tpu.memory_space<vmem>>, vector<2x256xf32>
    tpu.vector_store %arg27[%c64_134, %c0_135], %176 {strides = array<i32>} : memref<72x256xf32, #tpu.memory_space<vmem>>, vector<2x256xf32>,
    %cst_136 = arith.constant 0.000000e+00 : f32
    %178 = vector.broadcast %cst_136 : f32 to vector<6x256xf32>
    %c66_137 = arith.constant 66 : index
    %c0_138 = arith.constant 0 : index
    %179 = vector.load %arg27[%c66_137, %c0_138] : memref<72x256xf32, #tpu.memory_space<vmem>>, vector<6x256xf32>
    tpu.vector_store %arg27[%c66_137, %c0_138], %178 {strides = array<i32>} : memref<72x256xf32, #tpu.memory_space<vmem>>, vector<6x256xf32>,
    %c0_139 = arith.constant 0 : index
    %c0_140 = arith.constant 0 : index
    %180 = vector.load %arg8[%c0_139, %c0_140] : memref<2x72xf32, #tpu.memory_space<vmem>>, vector<2x72xf32>
    %c0_141 = arith.constant 0 : index
    %c0_142 = arith.constant 0 : index
    %181 = vector.load %arg27[%c0_141, %c0_142] : memref<72x256xf32, #tpu.memory_space<vmem>>, vector<72x256xf32>
    %cst_143 = arith.constant dense<0.000000e+00> : vector<2x256xf32>
    %182 = tpu.matmul %180, %181, %cst_143 {dimension_numbers = #tpu.dot_dimension_numbers<[1], [0], [0], [1], [0, 0, 1, 1], [], []>} : vector<2x72xf32>, vector<72x256xf32>, vector<2x256xf32> -> vector<2x256xf32>
    %c0_144 = arith.constant 0 : index
    %c0_145 = arith.constant 0 : index
    %183 = vector.load %arg9[%c0_144, %c0_145] : memref<2x1xf32, #tpu.memory_space<vmem>>, vector<2x1xf32>
    %184 = vector.broadcast %183 : vector<2x1xf32> to vector<2x256xf32>
    %185 = arith.addf %182, %184 : vector<2x256xf32>
    %cst_146 = arith.constant 0.000000e+00 : f32
    %186 = vector.broadcast %cst_146 : f32 to vector<2x256xf32>
    %187 = arith.maximumf %185, %186 : vector<2x256xf32>
    %188 = arith.addf %33, %187 : vector<2x256xf32>
    %189 = arith.addf %188, %34 : vector<2x256xf32>
    %cst_147 = arith.constant 0.000000e+00 : f32
    %190 = vector.broadcast %cst_147 : f32 to vector<2x435xf32>
    %c0_148 = arith.constant 0 : index
    %c0_149 = arith.constant 0 : index
    %191 = vector.load %arg24[%c0_148, %c0_149] : memref<2x435xf32, #tpu.memory_space<vmem>>, vector<2x435xf32>
    tpu.vector_store %arg24[%c0_148, %c0_149], %190 {strides = array<i32>} : memref<2x435xf32, #tpu.memory_space<vmem>>, vector<2x435xf32>,
    %c0_150 = arith.constant 0 : index
    %c128_151 = arith.constant 128 : index
    %192 = vector.load %arg24[%c0_150, %c128_151] : memref<2x435xf32, #tpu.memory_space<vmem>>, vector<2x256xf32>
    tpu.vector_store %arg24[%c0_150, %c128_151], %189 {strides = array<i32>} : memref<2x435xf32, #tpu.memory_space<vmem>>, vector<2x256xf32>,
    %c3_i32 = arith.constant 3 : i32
    %193 = vector.broadcast %c3_i32 : i32 to vector<1x256xi32>
    %194 = arith.cmpi sge, %16, %193 : vector<1x256xi32>
    %c13_i32 = arith.constant 13 : i32
    %195 = vector.broadcast %c13_i32 : i32 to vector<1x256xi32>
    %196 = arith.cmpi slt, %16, %195 : vector<1x256xi32>
    %c0_152 = arith.constant 0 : index
    %c77 = arith.constant 77 : index
    %197 = vector.load %arg24[%c0_152, %c77] : memref<2x435xf32, #tpu.memory_space<vmem>>, vector<2x256xf32>
    %cst_153 = arith.constant 0.000000e+00 : f32
    %198 = vector.shape_cast %194 : vector<1x256xi1> to vector<1x256xi1>
    %199 = vector.broadcast %198 : vector<1x256xi1> to vector<2x256xi1>
    %200 = vector.broadcast %cst_153 : f32 to vector<2x256xf32>
    %201 = arith.select %199, %197, %200 : vector<2x256xi1>, vector<2x256xf32>
    %c0_154 = arith.constant 0 : index
    %c0_155 = arith.constant 0 : index
    %202 = vector.load %arg27[%c0_154, %c0_155] : memref<72x256xf32, #tpu.memory_space<vmem>>, vector<2x256xf32>
    tpu.vector_store %arg27[%c0_154, %c0_155], %201 {strides = array<i32>} : memref<72x256xf32, #tpu.memory_space<vmem>>, vector<2x256xf32>,
    %cst_156 = arith.constant 0.000000e+00 : f32
    %203 = vector.broadcast %cst_156 : f32 to vector<6x256xf32>
    %c2_157 = arith.constant 2 : index
    %c0_158 = arith.constant 0 : index
    %204 = vector.load %arg27[%c2_157, %c0_158] : memref<72x256xf32, #tpu.memory_space<vmem>>, vector<6x256xf32>
    tpu.vector_store %arg27[%c2_157, %c0_158], %203 {strides = array<i32>} : memref<72x256xf32, #tpu.memory_space<vmem>>, vector<6x256xf32>,
    %c0_159 = arith.constant 0 : index
    %c80 = arith.constant 80 : index
    %205 = vector.load %arg24[%c0_159, %c80] : memref<2x435xf32, #tpu.memory_space<vmem>>, vector<2x256xf32>
    %c8_160 = arith.constant 8 : index
    %c0_161 = arith.constant 0 : index
    %206 = vector.load %arg27[%c8_160, %c0_161] : memref<72x256xf32, #tpu.memory_space<vmem>>, vector<2x256xf32>
    tpu.vector_store %arg27[%c8_160, %c0_161], %205 {strides = array<i32>} : memref<72x256xf32, #tpu.memory_space<vmem>>, vector<2x256xf32>,
    %cst_162 = arith.constant 0.000000e+00 : f32
    %207 = vector.broadcast %cst_162 : f32 to vector<6x256xf32>
    %c10_163 = arith.constant 10 : index
    %c0_164 = arith.constant 0 : index
    %208 = vector.load %arg27[%c10_163, %c0_164] : memref<72x256xf32, #tpu.memory_space<vmem>>, vector<6x256xf32>
    tpu.vector_store %arg27[%c10_163, %c0_164], %207 {strides = array<i32>} : memref<72x256xf32, #tpu.memory_space<vmem>>, vector<6x256xf32>,
    %c0_165 = arith.constant 0 : index
    %c83 = arith.constant 83 : index
    %209 = vector.load %arg24[%c0_165, %c83] : memref<2x435xf32, #tpu.memory_space<vmem>>, vector<2x256xf32>
    %cst_166 = arith.constant 0.000000e+00 : f32
    %210 = vector.shape_cast %196 : vector<1x256xi1> to vector<1x256xi1>
    %211 = vector.broadcast %210 : vector<1x256xi1> to vector<2x256xi1>
    %212 = vector.broadcast %cst_166 : f32 to vector<2x256xf32>
    %213 = arith.select %211, %209, %212 : vector<2x256xi1>, vector<2x256xf32>
    %c16_167 = arith.constant 16 : index
    %c0_168 = arith.constant 0 : index
    %214 = vector.load %arg27[%c16_167, %c0_168] : memref<72x256xf32, #tpu.memory_space<vmem>>, vector<2x256xf32>
    tpu.vector_store %arg27[%c16_167, %c0_168], %213 {strides = array<i32>} : memref<72x256xf32, #tpu.memory_space<vmem>>, vector<2x256xf32>,
    %cst_169 = arith.constant 0.000000e+00 : f32
    %215 = vector.broadcast %cst_169 : f32 to vector<6x256xf32>
    %c18_170 = arith.constant 18 : index
    %c0_171 = arith.constant 0 : index
    %216 = vector.load %arg27[%c18_170, %c0_171] : memref<72x256xf32, #tpu.memory_space<vmem>>, vector<6x256xf32>
    tpu.vector_store %arg27[%c18_170, %c0_171], %215 {strides = array<i32>} : memref<72x256xf32, #tpu.memory_space<vmem>>, vector<6x256xf32>,
    %c0_172 = arith.constant 0 : index
    %c125 = arith.constant 125 : index
    %217 = vector.load %arg24[%c0_172, %c125] : memref<2x435xf32, #tpu.memory_space<vmem>>, vector<2x256xf32>
    %cst_173 = arith.constant 0.000000e+00 : f32
    %218 = vector.shape_cast %194 : vector<1x256xi1> to vector<1x256xi1>
    %219 = vector.broadcast %218 : vector<1x256xi1> to vector<2x256xi1>
    %220 = vector.broadcast %cst_173 : f32 to vector<2x256xf32>
    %221 = arith.select %219, %217, %220 : vector<2x256xi1>, vector<2x256xf32>
    %c24_174 = arith.constant 24 : index
    %c0_175 = arith.constant 0 : index
    %222 = vector.load %arg27[%c24_174, %c0_175] : memref<72x256xf32, #tpu.memory_space<vmem>>, vector<2x256xf32>
    tpu.vector_store %arg27[%c24_174, %c0_175], %221 {strides = array<i32>} : memref<72x256xf32, #tpu.memory_space<vmem>>, vector<2x256xf32>,
    %cst_176 = arith.constant 0.000000e+00 : f32
    %223 = vector.broadcast %cst_176 : f32 to vector<6x256xf32>
    %c26_177 = arith.constant 26 : index
    %c0_178 = arith.constant 0 : index
    %224 = vector.load %arg27[%c26_177, %c0_178] : memref<72x256xf32, #tpu.memory_space<vmem>>, vector<6x256xf32>
    tpu.vector_store %arg27[%c26_177, %c0_178], %223 {strides = array<i32>} : memref<72x256xf32, #tpu.memory_space<vmem>>, vector<6x256xf32>,
    %c0_179 = arith.constant 0 : index
    %c128_180 = arith.constant 128 : index
    %225 = vector.load %arg24[%c0_179, %c128_180] : memref<2x435xf32, #tpu.memory_space<vmem>>, vector<2x256xf32>
    %c32_181 = arith.constant 32 : index
    %c0_182 = arith.constant 0 : index
    %226 = vector.load %arg27[%c32_181, %c0_182] : memref<72x256xf32, #tpu.memory_space<vmem>>, vector<2x256xf32>
    tpu.vector_store %arg27[%c32_181, %c0_182], %225 {strides = array<i32>} : memref<72x256xf32, #tpu.memory_space<vmem>>, vector<2x256xf32>,
    %cst_183 = arith.constant 0.000000e+00 : f32
    %227 = vector.broadcast %cst_183 : f32 to vector<6x256xf32>
    %c34_184 = arith.constant 34 : index
    %c0_185 = arith.constant 0 : index
    %228 = vector.load %arg27[%c34_184, %c0_185] : memref<72x256xf32, #tpu.memory_space<vmem>>, vector<6x256xf32>
    tpu.vector_store %arg27[%c34_184, %c0_185], %227 {strides = array<i32>} : memref<72x256xf32, #tpu.memory_space<vmem>>, vector<6x256xf32>,
    %c0_186 = arith.constant 0 : index
    %c131 = arith.constant 131 : index
    %229 = vector.load %arg24[%c0_186, %c131] : memref<2x435xf32, #tpu.memory_space<vmem>>, vector<2x256xf32>
    %cst_187 = arith.constant 0.000000e+00 : f32
    %230 = vector.shape_cast %196 : vector<1x256xi1> to vector<1x256xi1>
    %231 = vector.broadcast %230 : vector<1x256xi1> to vector<2x256xi1>
    %232 = vector.broadcast %cst_187 : f32 to vector<2x256xf32>
    %233 = arith.select %231, %229, %232 : vector<2x256xi1>, vector<2x256xf32>
    %c40_188 = arith.constant 40 : index
    %c0_189 = arith.constant 0 : index
    %234 = vector.load %arg27[%c40_188, %c0_189] : memref<72x256xf32, #tpu.memory_space<vmem>>, vector<2x256xf32>
    tpu.vector_store %arg27[%c40_188, %c0_189], %233 {strides = array<i32>} : memref<72x256xf32, #tpu.memory_space<vmem>>, vector<2x256xf32>,
    %cst_190 = arith.constant 0.000000e+00 : f32
    %235 = vector.broadcast %cst_190 : f32 to vector<6x256xf32>
    %c42_191 = arith.constant 42 : index
    %c0_192 = arith.constant 0 : index
    %236 = vector.load %arg27[%c42_191, %c0_192] : memref<72x256xf32, #tpu.memory_space<vmem>>, vector<6x256xf32>
    tpu.vector_store %arg27[%c42_191, %c0_192], %235 {strides = array<i32>} : memref<72x256xf32, #tpu.memory_space<vmem>>, vector<6x256xf32>,
    %c0_193 = arith.constant 0 : index
    %c173 = arith.constant 173 : index
    %237 = vector.load %arg24[%c0_193, %c173] : memref<2x435xf32, #tpu.memory_space<vmem>>, vector<2x256xf32>
    %cst_194 = arith.constant 0.000000e+00 : f32
    %238 = vector.shape_cast %194 : vector<1x256xi1> to vector<1x256xi1>
    %239 = vector.broadcast %238 : vector<1x256xi1> to vector<2x256xi1>
    %240 = vector.broadcast %cst_194 : f32 to vector<2x256xf32>
    %241 = arith.select %239, %237, %240 : vector<2x256xi1>, vector<2x256xf32>
    %c48_195 = arith.constant 48 : index
    %c0_196 = arith.constant 0 : index
    %242 = vector.load %arg27[%c48_195, %c0_196] : memref<72x256xf32, #tpu.memory_space<vmem>>, vector<2x256xf32>
    tpu.vector_store %arg27[%c48_195, %c0_196], %241 {strides = array<i32>} : memref<72x256xf32, #tpu.memory_space<vmem>>, vector<2x256xf32>,
    %cst_197 = arith.constant 0.000000e+00 : f32
    %243 = vector.broadcast %cst_197 : f32 to vector<6x256xf32>
    %c50_198 = arith.constant 50 : index
    %c0_199 = arith.constant 0 : index
    %244 = vector.load %arg27[%c50_198, %c0_199] : memref<72x256xf32, #tpu.memory_space<vmem>>, vector<6x256xf32>
    tpu.vector_store %arg27[%c50_198, %c0_199], %243 {strides = array<i32>} : memref<72x256xf32, #tpu.memory_space<vmem>>, vector<6x256xf32>,
    %c0_200 = arith.constant 0 : index
    %c176 = arith.constant 176 : index
    %245 = vector.load %arg24[%c0_200, %c176] : memref<2x435xf32, #tpu.memory_space<vmem>>, vector<2x256xf32>
    %c56_201 = arith.constant 56 : index
    %c0_202 = arith.constant 0 : index
    %246 = vector.load %arg27[%c56_201, %c0_202] : memref<72x256xf32, #tpu.memory_space<vmem>>, vector<2x256xf32>
    tpu.vector_store %arg27[%c56_201, %c0_202], %245 {strides = array<i32>} : memref<72x256xf32, #tpu.memory_space<vmem>>, vector<2x256xf32>,
    %cst_203 = arith.constant 0.000000e+00 : f32
    %247 = vector.broadcast %cst_203 : f32 to vector<6x256xf32>
    %c58_204 = arith.constant 58 : index
    %c0_205 = arith.constant 0 : index
    %248 = vector.load %arg27[%c58_204, %c0_205] : memref<72x256xf32, #tpu.memory_space<vmem>>, vector<6x256xf32>
    tpu.vector_store %arg27[%c58_204, %c0_205], %247 {strides = array<i32>} : memref<72x256xf32, #tpu.memory_space<vmem>>, vector<6x256xf32>,
    %c0_206 = arith.constant 0 : index
    %c179 = arith.constant 179 : index
    %249 = vector.load %arg24[%c0_206, %c179] : memref<2x435xf32, #tpu.memory_space<vmem>>, vector<2x256xf32>
    %cst_207 = arith.constant 0.000000e+00 : f32
    %250 = vector.shape_cast %196 : vector<1x256xi1> to vector<1x256xi1>
    %251 = vector.broadcast %250 : vector<1x256xi1> to vector<2x256xi1>
    %252 = vector.broadcast %cst_207 : f32 to vector<2x256xf32>
    %253 = arith.select %251, %249, %252 : vector<2x256xi1>, vector<2x256xf32>
    %c64_208 = arith.constant 64 : index
    %c0_209 = arith.constant 0 : index
    %254 = vector.load %arg27[%c64_208, %c0_209] : memref<72x256xf32, #tpu.memory_space<vmem>>, vector<2x256xf32>
    tpu.vector_store %arg27[%c64_208, %c0_209], %253 {strides = array<i32>} : memref<72x256xf32, #tpu.memory_space<vmem>>, vector<2x256xf32>,
    %cst_210 = arith.constant 0.000000e+00 : f32
    %255 = vector.broadcast %cst_210 : f32 to vector<6x256xf32>
    %c66_211 = arith.constant 66 : index
    %c0_212 = arith.constant 0 : index
    %256 = vector.load %arg27[%c66_211, %c0_212] : memref<72x256xf32, #tpu.memory_space<vmem>>, vector<6x256xf32>
    tpu.vector_store %arg27[%c66_211, %c0_212], %255 {strides = array<i32>} : memref<72x256xf32, #tpu.memory_space<vmem>>, vector<6x256xf32>,
    %c0_213 = arith.constant 0 : index
    %c0_214 = arith.constant 0 : index
    %257 = vector.load %arg10[%c0_213, %c0_214] : memref<2x72xf32, #tpu.memory_space<vmem>>, vector<2x72xf32>
    %c0_215 = arith.constant 0 : index
    %c0_216 = arith.constant 0 : index
    %258 = vector.load %arg27[%c0_215, %c0_216] : memref<72x256xf32, #tpu.memory_space<vmem>>, vector<72x256xf32>
    %cst_217 = arith.constant dense<0.000000e+00> : vector<2x256xf32>
    %259 = tpu.matmul %257, %258, %cst_217 {dimension_numbers = #tpu.dot_dimension_numbers<[1], [0], [0], [1], [0, 0, 1, 1], [], []>} : vector<2x72xf32>, vector<72x256xf32>, vector<2x256xf32> -> vector<2x256xf32>
    %c0_218 = arith.constant 0 : index
    %c0_219 = arith.constant 0 : index
    %260 = vector.load %arg11[%c0_218, %c0_219] : memref<2x1xf32, #tpu.memory_space<vmem>>, vector<2x1xf32>
    %261 = vector.broadcast %260 : vector<2x1xf32> to vector<2x256xf32>
    %262 = arith.addf %259, %261 : vector<2x256xf32>
    %cst_220 = arith.constant 0.000000e+00 : f32
    %263 = vector.broadcast %cst_220 : f32 to vector<2x256xf32>
    %264 = arith.maximumf %262, %263 : vector<2x256xf32>
    %265 = arith.addf %34, %264 : vector<2x256xf32>
    %cst_221 = arith.constant 0.000000e+00 : f32
    %266 = vector.broadcast %cst_221 : f32 to vector<2x452xf32>
    %c0_222 = arith.constant 0 : index
    %c0_223 = arith.constant 0 : index
    %267 = vector.load %arg25[%c0_222, %c0_223] : memref<2x452xf32, #tpu.memory_space<vmem>>, vector<2x452xf32>
    tpu.vector_store %arg25[%c0_222, %c0_223], %266 {strides = array<i32>} : memref<2x452xf32, #tpu.memory_space<vmem>>, vector<2x452xf32>,
    %c0_224 = arith.constant 0 : index
    %c128_225 = arith.constant 128 : index
    %268 = vector.load %arg25[%c0_224, %c128_225] : memref<2x452xf32, #tpu.memory_space<vmem>>, vector<2x256xf32>
    tpu.vector_store %arg25[%c0_224, %c128_225], %265 {strides = array<i32>} : memref<2x452xf32, #tpu.memory_space<vmem>>, vector<2x256xf32>,
    %c4_i32 = arith.constant 4 : i32
    %269 = vector.broadcast %c4_i32 : i32 to vector<1x256xi32>
    %270 = arith.cmpi sge, %16, %269 : vector<1x256xi32>
    %c12_i32 = arith.constant 12 : i32
    %271 = vector.broadcast %c12_i32 : i32 to vector<1x256xi32>
    %272 = arith.cmpi slt, %16, %271 : vector<1x256xi32>
    %c0_226 = arith.constant 0 : index
    %c60 = arith.constant 60 : index
    %273 = vector.load %arg25[%c0_226, %c60] : memref<2x452xf32, #tpu.memory_space<vmem>>, vector<2x256xf32>
    %cst_227 = arith.constant 0.000000e+00 : f32
    %274 = vector.shape_cast %270 : vector<1x256xi1> to vector<1x256xi1>
    %275 = vector.broadcast %274 : vector<1x256xi1> to vector<2x256xi1>
    %276 = vector.broadcast %cst_227 : f32 to vector<2x256xf32>
    %277 = arith.select %275, %273, %276 : vector<2x256xi1>, vector<2x256xf32>
    %c0_228 = arith.constant 0 : index
    %c0_229 = arith.constant 0 : index
    %278 = vector.load %arg27[%c0_228, %c0_229] : memref<72x256xf32, #tpu.memory_space<vmem>>, vector<2x256xf32>
    tpu.vector_store %arg27[%c0_228, %c0_229], %277 {strides = array<i32>} : memref<72x256xf32, #tpu.memory_space<vmem>>, vector<2x256xf32>,
    %cst_230 = arith.constant 0.000000e+00 : f32
    %279 = vector.broadcast %cst_230 : f32 to vector<6x256xf32>
    %c2_231 = arith.constant 2 : index
    %c0_232 = arith.constant 0 : index
    %280 = vector.load %arg27[%c2_231, %c0_232] : memref<72x256xf32, #tpu.memory_space<vmem>>, vector<6x256xf32>
    tpu.vector_store %arg27[%c2_231, %c0_232], %279 {strides = array<i32>} : memref<72x256xf32, #tpu.memory_space<vmem>>, vector<6x256xf32>,
    %c0_233 = arith.constant 0 : index
    %c64_234 = arith.constant 64 : index
    %281 = vector.load %arg25[%c0_233, %c64_234] : memref<2x452xf32, #tpu.memory_space<vmem>>, vector<2x256xf32>
    %c8_235 = arith.constant 8 : index
    %c0_236 = arith.constant 0 : index
    %282 = vector.load %arg27[%c8_235, %c0_236] : memref<72x256xf32, #tpu.memory_space<vmem>>, vector<2x256xf32>
    tpu.vector_store %arg27[%c8_235, %c0_236], %281 {strides = array<i32>} : memref<72x256xf32, #tpu.memory_space<vmem>>, vector<2x256xf32>,
    %cst_237 = arith.constant 0.000000e+00 : f32
    %283 = vector.broadcast %cst_237 : f32 to vector<6x256xf32>
    %c10_238 = arith.constant 10 : index
    %c0_239 = arith.constant 0 : index
    %284 = vector.load %arg27[%c10_238, %c0_239] : memref<72x256xf32, #tpu.memory_space<vmem>>, vector<6x256xf32>
    tpu.vector_store %arg27[%c10_238, %c0_239], %283 {strides = array<i32>} : memref<72x256xf32, #tpu.memory_space<vmem>>, vector<6x256xf32>,
    %c0_240 = arith.constant 0 : index
    %c68 = arith.constant 68 : index
    %285 = vector.load %arg25[%c0_240, %c68] : memref<2x452xf32, #tpu.memory_space<vmem>>, vector<2x256xf32>
    %cst_241 = arith.constant 0.000000e+00 : f32
    %286 = vector.shape_cast %272 : vector<1x256xi1> to vector<1x256xi1>
    %287 = vector.broadcast %286 : vector<1x256xi1> to vector<2x256xi1>
    %288 = vector.broadcast %cst_241 : f32 to vector<2x256xf32>
    %289 = arith.select %287, %285, %288 : vector<2x256xi1>, vector<2x256xf32>
    %c16_242 = arith.constant 16 : index
    %c0_243 = arith.constant 0 : index
    %290 = vector.load %arg27[%c16_242, %c0_243] : memref<72x256xf32, #tpu.memory_space<vmem>>, vector<2x256xf32>
    tpu.vector_store %arg27[%c16_242, %c0_243], %289 {strides = array<i32>} : memref<72x256xf32, #tpu.memory_space<vmem>>, vector<2x256xf32>,
    %cst_244 = arith.constant 0.000000e+00 : f32
    %291 = vector.broadcast %cst_244 : f32 to vector<6x256xf32>
    %c18_245 = arith.constant 18 : index
    %c0_246 = arith.constant 0 : index
    %292 = vector.load %arg27[%c18_245, %c0_246] : memref<72x256xf32, #tpu.memory_space<vmem>>, vector<6x256xf32>
    tpu.vector_store %arg27[%c18_245, %c0_246], %291 {strides = array<i32>} : memref<72x256xf32, #tpu.memory_space<vmem>>, vector<6x256xf32>,
    %c0_247 = arith.constant 0 : index
    %c124 = arith.constant 124 : index
    %293 = vector.load %arg25[%c0_247, %c124] : memref<2x452xf32, #tpu.memory_space<vmem>>, vector<2x256xf32>
    %cst_248 = arith.constant 0.000000e+00 : f32
    %294 = vector.shape_cast %270 : vector<1x256xi1> to vector<1x256xi1>
    %295 = vector.broadcast %294 : vector<1x256xi1> to vector<2x256xi1>
    %296 = vector.broadcast %cst_248 : f32 to vector<2x256xf32>
    %297 = arith.select %295, %293, %296 : vector<2x256xi1>, vector<2x256xf32>
    %c24_249 = arith.constant 24 : index
    %c0_250 = arith.constant 0 : index
    %298 = vector.load %arg27[%c24_249, %c0_250] : memref<72x256xf32, #tpu.memory_space<vmem>>, vector<2x256xf32>
    tpu.vector_store %arg27[%c24_249, %c0_250], %297 {strides = array<i32>} : memref<72x256xf32, #tpu.memory_space<vmem>>, vector<2x256xf32>,
    %cst_251 = arith.constant 0.000000e+00 : f32
    %299 = vector.broadcast %cst_251 : f32 to vector<6x256xf32>
    %c26_252 = arith.constant 26 : index
    %c0_253 = arith.constant 0 : index
    %300 = vector.load %arg27[%c26_252, %c0_253] : memref<72x256xf32, #tpu.memory_space<vmem>>, vector<6x256xf32>
    tpu.vector_store %arg27[%c26_252, %c0_253], %299 {strides = array<i32>} : memref<72x256xf32, #tpu.memory_space<vmem>>, vector<6x256xf32>,
    %c0_254 = arith.constant 0 : index
    %c128_255 = arith.constant 128 : index
    %301 = vector.load %arg25[%c0_254, %c128_255] : memref<2x452xf32, #tpu.memory_space<vmem>>, vector<2x256xf32>
    %c32_256 = arith.constant 32 : index
    %c0_257 = arith.constant 0 : index
    %302 = vector.load %arg27[%c32_256, %c0_257] : memref<72x256xf32, #tpu.memory_space<vmem>>, vector<2x256xf32>
    tpu.vector_store %arg27[%c32_256, %c0_257], %301 {strides = array<i32>} : memref<72x256xf32, #tpu.memory_space<vmem>>, vector<2x256xf32>,
    %cst_258 = arith.constant 0.000000e+00 : f32
    %303 = vector.broadcast %cst_258 : f32 to vector<6x256xf32>
    %c34_259 = arith.constant 34 : index
    %c0_260 = arith.constant 0 : index
    %304 = vector.load %arg27[%c34_259, %c0_260] : memref<72x256xf32, #tpu.memory_space<vmem>>, vector<6x256xf32>
    tpu.vector_store %arg27[%c34_259, %c0_260], %303 {strides = array<i32>} : memref<72x256xf32, #tpu.memory_space<vmem>>, vector<6x256xf32>,
    %c0_261 = arith.constant 0 : index
    %c132 = arith.constant 132 : index
    %305 = vector.load %arg25[%c0_261, %c132] : memref<2x452xf32, #tpu.memory_space<vmem>>, vector<2x256xf32>
    %cst_262 = arith.constant 0.000000e+00 : f32
    %306 = vector.shape_cast %272 : vector<1x256xi1> to vector<1x256xi1>
    %307 = vector.broadcast %306 : vector<1x256xi1> to vector<2x256xi1>
    %308 = vector.broadcast %cst_262 : f32 to vector<2x256xf32>
    %309 = arith.select %307, %305, %308 : vector<2x256xi1>, vector<2x256xf32>
    %c40_263 = arith.constant 40 : index
    %c0_264 = arith.constant 0 : index
    %310 = vector.load %arg27[%c40_263, %c0_264] : memref<72x256xf32, #tpu.memory_space<vmem>>, vector<2x256xf32>
    tpu.vector_store %arg27[%c40_263, %c0_264], %309 {strides = array<i32>} : memref<72x256xf32, #tpu.memory_space<vmem>>, vector<2x256xf32>,
    %cst_265 = arith.constant 0.000000e+00 : f32
    %311 = vector.broadcast %cst_265 : f32 to vector<6x256xf32>
    %c42_266 = arith.constant 42 : index
    %c0_267 = arith.constant 0 : index
    %312 = vector.load %arg27[%c42_266, %c0_267] : memref<72x256xf32, #tpu.memory_space<vmem>>, vector<6x256xf32>
    tpu.vector_store %arg27[%c42_266, %c0_267], %311 {strides = array<i32>} : memref<72x256xf32, #tpu.memory_space<vmem>>, vector<6x256xf32>,
    %c0_268 = arith.constant 0 : index
    %c188 = arith.constant 188 : index
    %313 = vector.load %arg25[%c0_268, %c188] : memref<2x452xf32, #tpu.memory_space<vmem>>, vector<2x256xf32>
    %cst_269 = arith.constant 0.000000e+00 : f32
    %314 = vector.shape_cast %270 : vector<1x256xi1> to vector<1x256xi1>
    %315 = vector.broadcast %314 : vector<1x256xi1> to vector<2x256xi1>
    %316 = vector.broadcast %cst_269 : f32 to vector<2x256xf32>
    %317 = arith.select %315, %313, %316 : vector<2x256xi1>, vector<2x256xf32>
    %c48_270 = arith.constant 48 : index
    %c0_271 = arith.constant 0 : index
    %318 = vector.load %arg27[%c48_270, %c0_271] : memref<72x256xf32, #tpu.memory_space<vmem>>, vector<2x256xf32>
    tpu.vector_store %arg27[%c48_270, %c0_271], %317 {strides = array<i32>} : memref<72x256xf32, #tpu.memory_space<vmem>>, vector<2x256xf32>,
    %cst_272 = arith.constant 0.000000e+00 : f32
    %319 = vector.broadcast %cst_272 : f32 to vector<6x256xf32>
    %c50_273 = arith.constant 50 : index
    %c0_274 = arith.constant 0 : index
    %320 = vector.load %arg27[%c50_273, %c0_274] : memref<72x256xf32, #tpu.memory_space<vmem>>, vector<6x256xf32>
    tpu.vector_store %arg27[%c50_273, %c0_274], %319 {strides = array<i32>} : memref<72x256xf32, #tpu.memory_space<vmem>>, vector<6x256xf32>,
    %c0_275 = arith.constant 0 : index
    %c192 = arith.constant 192 : index
    %321 = vector.load %arg25[%c0_275, %c192] : memref<2x452xf32, #tpu.memory_space<vmem>>, vector<2x256xf32>
    %c56_276 = arith.constant 56 : index
    %c0_277 = arith.constant 0 : index
    %322 = vector.load %arg27[%c56_276, %c0_277] : memref<72x256xf32, #tpu.memory_space<vmem>>, vector<2x256xf32>
    tpu.vector_store %arg27[%c56_276, %c0_277], %321 {strides = array<i32>} : memref<72x256xf32, #tpu.memory_space<vmem>>, vector<2x256xf32>,
    %cst_278 = arith.constant 0.000000e+00 : f32
    %323 = vector.broadcast %cst_278 : f32 to vector<6x256xf32>
    %c58_279 = arith.constant 58 : index
    %c0_280 = arith.constant 0 : index
    %324 = vector.load %arg27[%c58_279, %c0_280] : memref<72x256xf32, #tpu.memory_space<vmem>>, vector<6x256xf32>
    tpu.vector_store %arg27[%c58_279, %c0_280], %323 {strides = array<i32>} : memref<72x256xf32, #tpu.memory_space<vmem>>, vector<6x256xf32>,
    %c0_281 = arith.constant 0 : index
    %c196 = arith.constant 196 : index
    %325 = vector.load %arg25[%c0_281, %c196] : memref<2x452xf32, #tpu.memory_space<vmem>>, vector<2x256xf32>
    %cst_282 = arith.constant 0.000000e+00 : f32
    %326 = vector.shape_cast %272 : vector<1x256xi1> to vector<1x256xi1>
    %327 = vector.broadcast %326 : vector<1x256xi1> to vector<2x256xi1>
    %328 = vector.broadcast %cst_282 : f32 to vector<2x256xf32>
    %329 = arith.select %327, %325, %328 : vector<2x256xi1>, vector<2x256xf32>
    %c64_283 = arith.constant 64 : index
    %c0_284 = arith.constant 0 : index
    %330 = vector.load %arg27[%c64_283, %c0_284] : memref<72x256xf32, #tpu.memory_space<vmem>>, vector<2x256xf32>
    tpu.vector_store %arg27[%c64_283, %c0_284], %329 {strides = array<i32>} : memref<72x256xf32, #tpu.memory_space<vmem>>, vector<2x256xf32>,
    %cst_285 = arith.constant 0.000000e+00 : f32
    %331 = vector.broadcast %cst_285 : f32 to vector<6x256xf32>
    %c66_286 = arith.constant 66 : index
    %c0_287 = arith.constant 0 : index
    %332 = vector.load %arg27[%c66_286, %c0_287] : memref<72x256xf32, #tpu.memory_space<vmem>>, vector<6x256xf32>
    tpu.vector_store %arg27[%c66_286, %c0_287], %331 {strides = array<i32>} : memref<72x256xf32, #tpu.memory_space<vmem>>, vector<6x256xf32>,
    %c0_288 = arith.constant 0 : index
    %c0_289 = arith.constant 0 : index
    %333 = vector.load %arg12[%c0_288, %c0_289] : memref<2x72xf32, #tpu.memory_space<vmem>>, vector<2x72xf32>
    %c0_290 = arith.constant 0 : index
    %c0_291 = arith.constant 0 : index
    %334 = vector.load %arg27[%c0_290, %c0_291] : memref<72x256xf32, #tpu.memory_space<vmem>>, vector<72x256xf32>
    %cst_292 = arith.constant dense<0.000000e+00> : vector<2x256xf32>
    %335 = tpu.matmul %333, %334, %cst_292 {dimension_numbers = #tpu.dot_dimension_numbers<[1], [0], [0], [1], [0, 0, 1, 1], [], []>} : vector<2x72xf32>, vector<72x256xf32>, vector<2x256xf32> -> vector<2x256xf32>
    %c0_293 = arith.constant 0 : index
    %c0_294 = arith.constant 0 : index
    %336 = vector.load %arg13[%c0_293, %c0_294] : memref<2x1xf32, #tpu.memory_space<vmem>>, vector<2x1xf32>
    %337 = vector.broadcast %336 : vector<2x1xf32> to vector<2x256xf32>
    %338 = arith.addf %335, %337 : vector<2x256xf32>
    %cst_295 = arith.constant 0.000000e+00 : f32
    %339 = vector.broadcast %cst_295 : f32 to vector<2x256xf32>
    %340 = arith.maximumf %338, %339 : vector<2x256xf32>
    %c0_296 = arith.constant 0 : index
    %c0_297 = arith.constant 0 : index
    %341 = vector.load %arg14[%c0_296, %c0_297] : memref<8x2xf32, #tpu.memory_space<vmem>>, vector<8x2xf32>
    %cst_298 = arith.constant dense<0.000000e+00> : vector<8x256xf32>
    %342 = tpu.matmul %341, %110, %cst_298 {dimension_numbers = #tpu.dot_dimension_numbers<[1], [0], [0], [1], [0, 0, 1, 1], [], []>} : vector<8x2xf32>, vector<2x256xf32>, vector<8x256xf32> -> vector<8x256xf32>
    %c0_299 = arith.constant 0 : index
    %c0_300 = arith.constant 0 : index
    %343 = vector.load %arg15[%c0_299, %c0_300] : memref<8x2xf32, #tpu.memory_space<vmem>>, vector<8x2xf32>
    %cst_301 = arith.constant dense<0.000000e+00> : vector<8x256xf32>
    %344 = tpu.matmul %343, %187, %cst_301 {dimension_numbers = #tpu.dot_dimension_numbers<[1], [0], [0], [1], [0, 0, 1, 1], [], []>} : vector<8x2xf32>, vector<2x256xf32>, vector<8x256xf32> -> vector<8x256xf32>
    %345 = arith.addf %342, %344 : vector<8x256xf32>
    %c0_302 = arith.constant 0 : index
    %c0_303 = arith.constant 0 : index
    %346 = vector.load %arg16[%c0_302, %c0_303] : memref<8x2xf32, #tpu.memory_space<vmem>>, vector<8x2xf32>
    %cst_304 = arith.constant dense<0.000000e+00> : vector<8x256xf32>
    %347 = tpu.matmul %346, %264, %cst_304 {dimension_numbers = #tpu.dot_dimension_numbers<[1], [0], [0], [1], [0, 0, 1, 1], [], []>} : vector<8x2xf32>, vector<2x256xf32>, vector<8x256xf32> -> vector<8x256xf32>
    %348 = arith.addf %345, %347 : vector<8x256xf32>
    %c0_305 = arith.constant 0 : index
    %c0_306 = arith.constant 0 : index
    %349 = vector.load %arg17[%c0_305, %c0_306] : memref<8x2xf32, #tpu.memory_space<vmem>>, vector<8x2xf32>
    %cst_307 = arith.constant dense<0.000000e+00> : vector<8x256xf32>
    %350 = tpu.matmul %349, %340, %cst_307 {dimension_numbers = #tpu.dot_dimension_numbers<[1], [0], [0], [1], [0, 0, 1, 1], [], []>} : vector<8x2xf32>, vector<2x256xf32>, vector<8x256xf32> -> vector<8x256xf32>
    %351 = arith.addf %348, %350 : vector<8x256xf32>
    %c0_308 = arith.constant 0 : index
    %c0_309 = arith.constant 0 : index
    %352 = vector.load %arg18[%c0_308, %c0_309] : memref<8x1xf32, #tpu.memory_space<vmem>>, vector<8x1xf32>
    %353 = vector.broadcast %352 : vector<8x1xf32> to vector<8x256xf32>
    %354 = arith.addf %351, %353 : vector<8x256xf32>
    %cst_310 = arith.constant 0.000000e+00 : f32
    %355 = vector.broadcast %cst_310 : f32 to vector<8x256xf32>
    %356 = arith.maximumf %354, %355 : vector<8x256xf32>
    %357 = arith.addf %30, %356 : vector<8x256xf32>
    %cst_311 = arith.constant 0.000000e+00 : f32
    %358 = vector.broadcast %cst_311 : f32 to vector<8x401xf32>
    %c0_312 = arith.constant 0 : index
    %c0_313 = arith.constant 0 : index
    %359 = vector.load %arg26[%c0_312, %c0_313] : memref<8x401xf32, #tpu.memory_space<vmem>>, vector<8x401xf32>
    tpu.vector_store %arg26[%c0_312, %c0_313], %358 {strides = array<i32>} : memref<8x401xf32, #tpu.memory_space<vmem>>, vector<8x401xf32>,
    %c0_314 = arith.constant 0 : index
    %c128_315 = arith.constant 128 : index
    %360 = vector.load %arg26[%c0_314, %c128_315] : memref<8x401xf32, #tpu.memory_space<vmem>>, vector<8x256xf32>
    tpu.vector_store %arg26[%c0_314, %c128_315], %357 {strides = array<i32>} : memref<8x401xf32, #tpu.memory_space<vmem>>, vector<8x256xf32>,
    %c1_i32_316 = arith.constant 1 : i32
    %361 = vector.broadcast %c1_i32_316 : i32 to vector<1x256xi32>
    %362 = arith.cmpi sge, %16, %361 : vector<1x256xi32>
    %c15_i32_317 = arith.constant 15 : i32
    %363 = vector.broadcast %c15_i32_317 : i32 to vector<1x256xi32>
    %364 = arith.cmpi slt, %16, %363 : vector<1x256xi32>
    %c0_318 = arith.constant 0 : index
    %c111_319 = arith.constant 111 : index
    %365 = vector.load %arg26[%c0_318, %c111_319] : memref<8x401xf32, #tpu.memory_space<vmem>>, vector<8x256xf32>
    %cst_320 = arith.constant 0.000000e+00 : f32
    %366 = vector.shape_cast %362 : vector<1x256xi1> to vector<1x256xi1>
    %367 = vector.broadcast %366 : vector<1x256xi1> to vector<8x256xi1>
    %368 = vector.broadcast %cst_320 : f32 to vector<8x256xf32>
    %369 = arith.select %367, %365, %368 : vector<8x256xi1>, vector<8x256xf32>
    %c0_321 = arith.constant 0 : index
    %c0_322 = arith.constant 0 : index
    %370 = vector.load %arg27[%c0_321, %c0_322] : memref<72x256xf32, #tpu.memory_space<vmem>>, vector<8x256xf32>
    tpu.vector_store %arg27[%c0_321, %c0_322], %369 {strides = array<i32>} : memref<72x256xf32, #tpu.memory_space<vmem>>, vector<8x256xf32>,
    %c0_323 = arith.constant 0 : index
    %c112_324 = arith.constant 112 : index
    %371 = vector.load %arg26[%c0_323, %c112_324] : memref<8x401xf32, #tpu.memory_space<vmem>>, vector<8x256xf32>
    %c8_325 = arith.constant 8 : index
    %c0_326 = arith.constant 0 : index
    %372 = vector.load %arg27[%c8_325, %c0_326] : memref<72x256xf32, #tpu.memory_space<vmem>>, vector<8x256xf32>
    tpu.vector_store %arg27[%c8_325, %c0_326], %371 {strides = array<i32>} : memref<72x256xf32, #tpu.memory_space<vmem>>, vector<8x256xf32>,
    %c0_327 = arith.constant 0 : index
    %c113_328 = arith.constant 113 : index
    %373 = vector.load %arg26[%c0_327, %c113_328] : memref<8x401xf32, #tpu.memory_space<vmem>>, vector<8x256xf32>
    %cst_329 = arith.constant 0.000000e+00 : f32
    %374 = vector.shape_cast %364 : vector<1x256xi1> to vector<1x256xi1>
    %375 = vector.broadcast %374 : vector<1x256xi1> to vector<8x256xi1>
    %376 = vector.broadcast %cst_329 : f32 to vector<8x256xf32>
    %377 = arith.select %375, %373, %376 : vector<8x256xi1>, vector<8x256xf32>
    %c16_330 = arith.constant 16 : index
    %c0_331 = arith.constant 0 : index
    %378 = vector.load %arg27[%c16_330, %c0_331] : memref<72x256xf32, #tpu.memory_space<vmem>>, vector<8x256xf32>
    tpu.vector_store %arg27[%c16_330, %c0_331], %377 {strides = array<i32>} : memref<72x256xf32, #tpu.memory_space<vmem>>, vector<8x256xf32>,
    %c0_332 = arith.constant 0 : index
    %c127_333 = arith.constant 127 : index
    %379 = vector.load %arg26[%c0_332, %c127_333] : memref<8x401xf32, #tpu.memory_space<vmem>>, vector<8x256xf32>
    %cst_334 = arith.constant 0.000000e+00 : f32
    %380 = vector.shape_cast %362 : vector<1x256xi1> to vector<1x256xi1>
    %381 = vector.broadcast %380 : vector<1x256xi1> to vector<8x256xi1>
    %382 = vector.broadcast %cst_334 : f32 to vector<8x256xf32>
    %383 = arith.select %381, %379, %382 : vector<8x256xi1>, vector<8x256xf32>
    %c24_335 = arith.constant 24 : index
    %c0_336 = arith.constant 0 : index
    %384 = vector.load %arg27[%c24_335, %c0_336] : memref<72x256xf32, #tpu.memory_space<vmem>>, vector<8x256xf32>
    tpu.vector_store %arg27[%c24_335, %c0_336], %383 {strides = array<i32>} : memref<72x256xf32, #tpu.memory_space<vmem>>, vector<8x256xf32>,
    %c0_337 = arith.constant 0 : index
    %c128_338 = arith.constant 128 : index
    %385 = vector.load %arg26[%c0_337, %c128_338] : memref<8x401xf32, #tpu.memory_space<vmem>>, vector<8x256xf32>
    %c32_339 = arith.constant 32 : index
    %c0_340 = arith.constant 0 : index
    %386 = vector.load %arg27[%c32_339, %c0_340] : memref<72x256xf32, #tpu.memory_space<vmem>>, vector<8x256xf32>
    tpu.vector_store %arg27[%c32_339, %c0_340], %385 {strides = array<i32>} : memref<72x256xf32, #tpu.memory_space<vmem>>, vector<8x256xf32>,
    %c0_341 = arith.constant 0 : index
    %c129_342 = arith.constant 129 : index
    %387 = vector.load %arg26[%c0_341, %c129_342] : memref<8x401xf32, #tpu.memory_space<vmem>>, vector<8x256xf32>
    %cst_343 = arith.constant 0.000000e+00 : f32
    %388 = vector.shape_cast %364 : vector<1x256xi1> to vector<1x256xi1>
    %389 = vector.broadcast %388 : vector<1x256xi1> to vector<8x256xi1>
    %390 = vector.broadcast %cst_343 : f32 to vector<8x256xf32>
    %391 = arith.select %389, %387, %390 : vector<8x256xi1>, vector<8x256xf32>
    %c40_344 = arith.constant 40 : index
    %c0_345 = arith.constant 0 : index
    %392 = vector.load %arg27[%c40_344, %c0_345] : memref<72x256xf32, #tpu.memory_space<vmem>>, vector<8x256xf32>
    tpu.vector_store %arg27[%c40_344, %c0_345], %391 {strides = array<i32>} : memref<72x256xf32, #tpu.memory_space<vmem>>, vector<8x256xf32>,
    %c0_346 = arith.constant 0 : index
    %c143_347 = arith.constant 143 : index
    %393 = vector.load %arg26[%c0_346, %c143_347] : memref<8x401xf32, #tpu.memory_space<vmem>>, vector<8x256xf32>
    %cst_348 = arith.constant 0.000000e+00 : f32
    %394 = vector.shape_cast %362 : vector<1x256xi1> to vector<1x256xi1>
    %395 = vector.broadcast %394 : vector<1x256xi1> to vector<8x256xi1>
    %396 = vector.broadcast %cst_348 : f32 to vector<8x256xf32>
    %397 = arith.select %395, %393, %396 : vector<8x256xi1>, vector<8x256xf32>
    %c48_349 = arith.constant 48 : index
    %c0_350 = arith.constant 0 : index
    %398 = vector.load %arg27[%c48_349, %c0_350] : memref<72x256xf32, #tpu.memory_space<vmem>>, vector<8x256xf32>
    tpu.vector_store %arg27[%c48_349, %c0_350], %397 {strides = array<i32>} : memref<72x256xf32, #tpu.memory_space<vmem>>, vector<8x256xf32>,
    %c0_351 = arith.constant 0 : index
    %c144_352 = arith.constant 144 : index
    %399 = vector.load %arg26[%c0_351, %c144_352] : memref<8x401xf32, #tpu.memory_space<vmem>>, vector<8x256xf32>
    %c56_353 = arith.constant 56 : index
    %c0_354 = arith.constant 0 : index
    %400 = vector.load %arg27[%c56_353, %c0_354] : memref<72x256xf32, #tpu.memory_space<vmem>>, vector<8x256xf32>
    tpu.vector_store %arg27[%c56_353, %c0_354], %399 {strides = array<i32>} : memref<72x256xf32, #tpu.memory_space<vmem>>, vector<8x256xf32>,
    %c0_355 = arith.constant 0 : index
    %c145_356 = arith.constant 145 : index
    %401 = vector.load %arg26[%c0_355, %c145_356] : memref<8x401xf32, #tpu.memory_space<vmem>>, vector<8x256xf32>
    %cst_357 = arith.constant 0.000000e+00 : f32
    %402 = vector.shape_cast %364 : vector<1x256xi1> to vector<1x256xi1>
    %403 = vector.broadcast %402 : vector<1x256xi1> to vector<8x256xi1>
    %404 = vector.broadcast %cst_357 : f32 to vector<8x256xf32>
    %405 = arith.select %403, %401, %404 : vector<8x256xi1>, vector<8x256xf32>
    %c64_358 = arith.constant 64 : index
    %c0_359 = arith.constant 0 : index
    %406 = vector.load %arg27[%c64_358, %c0_359] : memref<72x256xf32, #tpu.memory_space<vmem>>, vector<8x256xf32>
    tpu.vector_store %arg27[%c64_358, %c0_359], %405 {strides = array<i32>} : memref<72x256xf32, #tpu.memory_space<vmem>>, vector<8x256xf32>,
    %c0_360 = arith.constant 0 : index
    %c0_361 = arith.constant 0 : index
    %407 = vector.load %arg19[%c0_360, %c0_361] : memref<8x72xf32, #tpu.memory_space<vmem>>, vector<8x72xf32>
    %c0_362 = arith.constant 0 : index
    %c0_363 = arith.constant 0 : index
    %408 = vector.load %arg27[%c0_362, %c0_363] : memref<72x256xf32, #tpu.memory_space<vmem>>, vector<72x256xf32>
    %cst_364 = arith.constant dense<0.000000e+00> : vector<8x256xf32>
    %409 = tpu.matmul %407, %408, %cst_364 {dimension_numbers = #tpu.dot_dimension_numbers<[1], [0], [0], [1], [0, 0, 1, 1], [], []>} : vector<8x72xf32>, vector<72x256xf32>, vector<8x256xf32> -> vector<8x256xf32>
    %c0_365 = arith.constant 0 : index
    %c0_366 = arith.constant 0 : index
    %410 = vector.load %arg20[%c0_365, %c0_366] : memref<8x1xf32, #tpu.memory_space<vmem>>, vector<8x1xf32>
    %411 = vector.broadcast %410 : vector<8x1xf32> to vector<8x256xf32>
    %412 = arith.addf %409, %411 : vector<8x256xf32>
    %cst_367 = arith.constant 0.000000e+00 : f32
    %413 = vector.broadcast %cst_367 : f32 to vector<8x256xf32>
    %414 = arith.maximumf %412, %413 : vector<8x256xf32>
    %c0_368 = arith.constant 0 : index
    %c0_369 = arith.constant 0 : index
    %c0_370 = arith.constant 0 : index
    %415 = vector.load %arg21[%c0_368, %c0_369, %c0_370] : memref<1x8x256xf32, #tpu.memory_space<vmem>>, vector<1x8x256xf32>
    %416 = vector.shape_cast %415 : vector<1x8x256xf32> to vector<8x256xf32>
    %417 = vector.shape_cast %414 : vector<8x256xf32> to vector<1x8x256xf32>
    tpu.vector_store %arg21[%c0_368, %c0_369, %c0_370], %417 {strides = array<i32>} : memref<1x8x256xf32, #tpu.memory_space<vmem>>, vector<1x8x256xf32>,
    return
  }
  func.func @transform_0(%arg0: i32) -> (i32, i32, i32) {
    %c0_i32 = arith.constant 0 : i32
    %c0_i32_0 = arith.constant 0 : i32
    %c0_i32_1 = arith.constant 0 : i32
    return %arg0, %c0_i32, %c0_i32_0 : i32, i32, i32
  }
  func.func @transform_1(%arg0: i32) -> (i32, i32, i32) {
    %c0_i32 = arith.constant 0 : i32
    %c0_i32_0 = arith.constant 0 : i32
    %c0_i32_1 = arith.constant 0 : i32
    return %arg0, %c0_i32, %c0_i32_0 : i32, i32, i32
  }
  func.func @transform_2(%arg0: i32) -> (i32, i32) {
    %c0_i32 = arith.constant 0 : i32
    %c0_i32_0 = arith.constant 0 : i32
    %c0_i32_1 = arith.constant 0 : i32
    return %c0_i32, %c0_i32_0 : i32, i32
  }
  func.func @transform_3(%arg0: i32) -> (i32, i32) {
    %c0_i32 = arith.constant 0 : i32
    %c0_i32_0 = arith.constant 0 : i32
    %c0_i32_1 = arith.constant 0 : i32
    return %c0_i32, %c0_i32_0 : i32, i32
  }
  func.func @transform_4(%arg0: i32) -> (i32, i32) {
    %c0_i32 = arith.constant 0 : i32
    %c0_i32_0 = arith.constant 0 : i32
    %c0_i32_1 = arith.constant 0 : i32
    return %c0_i32, %c0_i32_0 : i32, i32
  }
  func.func @transform_5(%arg0: i32) -> (i32, i32) {
    %c0_i32 = arith.constant 0 : i32
    %c0_i32_0 = arith.constant 0 : i32
    %c0_i32_1 = arith.constant 0 : i32
    return %c0_i32, %c0_i32_0 : i32, i32
  }
  func.func @transform_6(%arg0: i32) -> (i32, i32) {
    %c0_i32 = arith.constant 0 : i32
    %c0_i32_0 = arith.constant 0 : i32
    %c0_i32_1 = arith.constant 0 : i32
    return %c0_i32, %c0_i32_0 : i32, i32
  }
  func.func @transform_7(%arg0: i32) -> (i32, i32) {
    %c0_i32 = arith.constant 0 : i32
    %c0_i32_0 = arith.constant 0 : i32
    %c0_i32_1 = arith.constant 0 : i32
    return %c0_i32, %c0_i32_0 : i32, i32
  }
  func.func @transform_8(%arg0: i32) -> (i32, i32) {
    %c0_i32 = arith.constant 0 : i32
    %c0_i32_0 = arith.constant 0 : i32
    %c0_i32_1 = arith.constant 0 : i32
    return %c0_i32, %c0_i32_0 : i32, i32
  }
  func.func @transform_9(%arg0: i32) -> (i32, i32) {
    %c0_i32 = arith.constant 0 : i32
    %c0_i32_0 = arith.constant 0 : i32
    %c0_i32_1 = arith.constant 0 : i32
    return %c0_i32, %c0_i32_0 : i32, i32
  }
  func.func @transform_10(%arg0: i32) -> (i32, i32) {
    %c0_i32 = arith.constant 0 : i32
    %c0_i32_0 = arith.constant 0 : i32
    %c0_i32_1 = arith.constant 0 : i32
    return %c0_i32, %c0_i32_0 : i32, i32
  }
  func.func @transform_11(%arg0: i32) -> (i32, i32) {
    %c0_i32 = arith.constant 0 : i32
    %c0_i32_0 = arith.constant 0 : i32
    %c0_i32_1 = arith.constant 0 : i32
    return %c0_i32, %c0_i32_0 : i32, i32
  }
  func.func @transform_12(%arg0: i32) -> (i32, i32) {
    %c0_i32 = arith.constant 0 : i32
    %c0_i32_0 = arith.constant 0 : i32
    %c0_i32_1 = arith.constant 0 : i32
    return %c0_i32, %c0_i32_0 : i32, i32
  }
  func.func @transform_13(%arg0: i32) -> (i32, i32) {
    %c0_i32 = arith.constant 0 : i32
    %c0_i32_0 = arith.constant 0 : i32
    %c0_i32_1 = arith.constant 0 : i32
    return %c0_i32, %c0_i32_0 : i32, i32
  }
  func.func @transform_14(%arg0: i32) -> (i32, i32) {
    %c0_i32 = arith.constant 0 : i32
    %c0_i32_0 = arith.constant 0 : i32
    %c0_i32_1 = arith.constant 0 : i32
    return %c0_i32, %c0_i32_0 : i32, i32
  }
  func.func @transform_15(%arg0: i32) -> (i32, i32) {
    %c0_i32 = arith.constant 0 : i32
    %c0_i32_0 = arith.constant 0 : i32
    %c0_i32_1 = arith.constant 0 : i32
    return %c0_i32, %c0_i32_0 : i32, i32
  }
  func.func @transform_16(%arg0: i32) -> (i32, i32) {
    %c0_i32 = arith.constant 0 : i32
    %c0_i32_0 = arith.constant 0 : i32
    %c0_i32_1 = arith.constant 0 : i32
    return %c0_i32, %c0_i32_0 : i32, i32
  }
  func.func @transform_17(%arg0: i32) -> (i32, i32) {
    %c0_i32 = arith.constant 0 : i32
    %c0_i32_0 = arith.constant 0 : i32
    %c0_i32_1 = arith.constant 0 : i32
    return %c0_i32, %c0_i32_0 : i32, i32
  }
  func.func @transform_18(%arg0: i32) -> (i32, i32) {
    %c0_i32 = arith.constant 0 : i32
    %c0_i32_0 = arith.constant 0 : i32
    %c0_i32_1 = arith.constant 0 : i32
    return %c0_i32, %c0_i32_0 : i32, i32
  }
  func.func @transform_19(%arg0: i32) -> (i32, i32) {
    %c0_i32 = arith.constant 0 : i32
    %c0_i32_0 = arith.constant 0 : i32
    %c0_i32_1 = arith.constant 0 : i32
    return %c0_i32, %c0_i32_0 : i32, i32
  }
  func.func @transform_20(%arg0: i32) -> (i32, i32, i32) {
    %c0_i32 = arith.constant 0 : i32
    %c0_i32_0 = arith.constant 0 : i32
    %c0_i32_1 = arith.constant 0 : i32
    return %arg0, %c0_i32, %c0_i32_0 : i32, i32, i32
  }
}

</mosaic_0001>

<bundles_post_ra>
// kernel: cam_forward.1
= control target key start
LH: loop header
LB: loop body
LE: loop exit
PB: predicated region body
PF: predicated region fallthrough
CT: control target
= control target key end

     0   :  { %s4216_s0 = inlined_call_operand.vmem [shape: f32[2,8,256], index: 0, kind: input, shape index: {}]   ;;  %s4217_s1 = inlined_call_operand.vmem [shape: f32[2,4,256], index: 1, kind: input, shape index: {}]   ;;  %s4218_s2 = inlined_call_operand.vmem [shape: f32[8,8], index: 2, kind: input, shape index: {}]   ;;  %s4219_s3 = inlined_call_operand.vmem [shape: f32[8,4], index: 3, kind: input, shape index: {}]   ;;  %s4220_s4 = inlined_call_operand.vmem [shape: f32[8,1], index: 4, kind: input, shape index: {}]   ;;  %s4221_s5 = inlined_call_operand.vmem [shape: f32[2,72], index: 5, kind: input, shape index: {}]   ;;  %s4222_s6 = inlined_call_operand.vmem [shape: f32[2,1], index: 6, kind: input, shape index: {}]   ;;  %s4223_s7 = inlined_call_operand.vmem [shape: f32[2,72], index: 7, kind: input, shape index: {}]   ;;  %s4224_s8 = inlined_call_operand.vmem [shape: f32[2,1], index: 8, kind: input, shape index: {}]   ;;  %s4225_s9 = inlined_call_operand.vmem [shape: f32[2,72], index: 9, kind: input, shape index: {}]   ;;  %s4226_s10 = inlined_call_operand.vmem [shape: f32[2,1], index: 10, kind: input, shape index: {}]   ;;  %s4227_s11 = inlined_call_operand.vmem [shape: f32[2,72], index: 11, kind: input, shape index: {}]   ;;  %s4228_s12 = inlined_call_operand.vmem [shape: f32[2,1], index: 12, kind: input, shape index: {}]   ;;  %s4229_s13 = inlined_call_operand.vmem [shape: f32[8,2], index: 13, kind: input, shape index: {}]   ;;  %s4230_s14 = inlined_call_operand.vmem [shape: f32[8,2], index: 14, kind: input, shape index: {}]   ;;  %s4231_s15 = inlined_call_operand.vmem [shape: f32[8,2], index: 15, kind: input, shape index: {}]   ;;  %s4232_s16 = inlined_call_operand.vmem [shape: f32[8,2], index: 16, kind: input, shape index: {}]   ;;  %s4233_s17 = inlined_call_operand.vmem [shape: f32[8,1], index: 17, kind: input, shape index: {}]   ;;  %s4234_s18 = inlined_call_operand.vmem [shape: f32[8,72], index: 18, kind: input, shape index: {}]   ;;  %s4235_s19 = inlined_call_operand.vmem [shape: f32[8,1], index: 19, kind: input, shape index: {}]   ;;  %s4236_s20 = inlined_call_operand.vmem [shape: f32[2,8,256], index: 20, kind: output, shape index: {}]  }
   0x1   :  { %4247 = sst [smem:[#allocation9_spill]] %s4216_s0 }
   0x2   :  { %4248 = sst [smem:[#allocation10_spill]] %s4217_s1  ;;  %s3516_s1 = smov 0  }
   0x3   :  { %4249 = sst [smem:[#allocation11_spill]] %s4218_s2 }
   0x4   :  { %4250 = sst [smem:[#allocation12_spill]] %s4219_s3 }
   0x5   :  { %4251 = sst [smem:[#allocation13_spill]] %s4220_s4 }
   0x6 LB: > { %4252 = sst [smem:[#allocation8_spill]] %s3377_s1  ;;  %s3239_s22 = sadd.s32 4294967295, %s3377_s1   ;;  %s3377_s1 = sphi %s3516_s1, %s30_s1  }
   0x7   : > { %p3243_p0 = scmp.ge.s32.totalorder %s3377_s1, 1  ;;  %p572_p1 = scmp.lt.s32.totalorder %s3377_s1, 3 }
   0x9   : > { %p573_p2 = pnand %p3243_p0, %p572_p1 }
   0xa   : > { %p3524_p3 = scmp.lt.s32.totalorder (!%p573_p2), %s3239_s22, 1  ;;  %s4254_s25 = sld [smem:[#allocation13_spill]] (!%p573_p2) }
   0xb   : > { %576 = sbr.rel (%p573_p2) target bundleno = 2341 (0x925), region = 100  ;;  %s4255_s4 = sld [smem:[#allocation9_spill]] (!%p573_p2) }
   0xc   : > { %s4256_s21 = sld [smem:[#allocation10_spill]] (!%p573_p2)  ;;  %s3382_s1 = smov (!%p573_p2), 111  }
   0xd   : > { %s4258_s28 = sld [smem:[#allocation12_spill]] (!%p573_p2)  ;;  %s3386_s30 = smov (!%p573_p2), 1  }
   0xe   : > { %s3387_s0 = smov (!%p573_p2), 15   ;;  %s3391_s24 = smov (!%p573_p2), 96  }
   0xf   : > { %s3392_s2 = smov (!%p573_p2), 98   ;;  %s3394_s27 = smov (!%p573_p2), 2  }
  0x10   : > { %v3379_v0 = vmov 0.0   ;;  %v839_v1 = vld [vmem:[%s4254_s25] sm:$0xff]  ;;  %s4288_s22 = smov (!%p3524_p3, %s3239_s22), 1  ;;  %v3380_v2 = vmov 0   ;;  %s4257_s25 = sld [smem:[#allocation11_spill]]  ;;  %vm764_vm0 = vcmask 64512   ;;  %v650_v25 = vlaneseq }
  0x11   : > { %832 = vmatprep.mubr.f32.mxu1 %v3379_v0  ;;  %918 = vst [vmem:[#allocation7] sm:$0xfc] %v3379_v0  ;;  %919 = vst [vmem:[#allocation7 + $0x38] sm:$0xfc] %v3379_v0  ;;  %757 = vmatprep.mubr.f32.mxu0 %v3379_v0  ;;  %s4240_s3 = sshll.u32 %s4288_s22, 4  ;;  %s3280_s26 = sshll.u32 %s4288_s22, 3 }
  0x12   : > { %951 = vst [vmem:[#allocation7 + $0x78] sm:$0xfc] %v3379_v0  ;;  %952 = vst [vmem:[#allocation7 + $0x58] sm:$0xfc] %v3379_v0  ;;  %3322 = vset.pattern.permute.xlu0 %v3380_v2  ;;  %3323 = vset.pattern.permute.xlu1 %v3380_v2  ;;  %s639_s29 = scalar_lea.vmem %s4255_s4, %s4240_s3  ;;  %s644_s23 = scalar_lea.vmem %s4256_s21, %s3280_s26  ;;  %vm688_vm1 = vcmask 1043456   ;;  %vm684_vm2 = vcmask 31744  }
  0x13   : > { %990 = vst [vmem:[#allocation7 + $0x20] sm:$0xfc] %v3379_v0  ;;  %991 = vst [vmem:[#allocation7 + $0x8] sm:$0xfc] %v3379_v0  ;;  %842 = vperm.xlu0 %3322, %v839_v1   ;;  %v679_v3 = vld [vmem:[%s639_s29 + $0x8] sm:$0xff]  ;;  %v678_v4 = vld [vmem:[%s639_s29] sm:$0xff] }
  0x14   : > { %1025 = vst [vmem:[#allocation7 + $0x70] sm:$0xfc] %v3379_v0  ;;  %1026 = vst [vmem:[#allocation7 + $0x80] sm:$0xfc] %v3379_v0  ;;  %798 = vmatprep.subr.mxu1 %v679_v3  ;;  %v681_v6 = vld [vmem:[%s644_s23] sm:$0xff]  ;;  %vm857_vm3 = vcmask 1041408  }
  0x15   : > { %1041 = vst [vmem:[#allocation7 + $0x88] sm:$0xfc] %v3379_v0  ;;  %1042 = vst [vmem:[#allocation7 + $0x40] sm:$0xfc] %v3379_v0  ;;  %799 = vmatpush1.msra.mxu1 %v678_v4  ;;  %v683_v7 = vcombine.high %v681_v6, %v681_v6  ;;  %v680_v8 = vld [vmem:[%s4258_s28] sm:$0xff]  ;;  %vm858_vm4 = vcmask 1043458  }
  0x16   : > { %1076 = vst [vmem:[#allocation7 + $0x50] sm:$0xfc] %v3379_v0  ;;  %1077 = vst [vmem:[#allocation7 + $0x28] sm:$0xfc] %v3379_v0  ;;  %v677_v5 = vld [vmem:[%s4257_s25] sm:$0xff]  ;;  %vm860_vm6 = vcmask 1045508  }
  0x17   : > { %1111 = vst [vmem:[#allocation7 + $0x10] sm:$0xfc] %v3379_v0  ;;  %1112 = vst [vmem:[#allocation7 + $0x48] sm:$0xfc] %v3379_v0  ;;  %3253 = vmatmul.mubr.msk.f32.vlgmr.msra.gmra.mxu1 %vm764_vm0, %v677_v5  ;;  %3250 = vmatprep.subr.msk.mxu0 %vm688_vm1, %v683_v7  ;;  %vm862_vm7 = vcmask 138246   ;;  %v892_v30 = vshrl.u32 %v650_v25, 7 }
  0x18   : > { %1144 = vst [vmem:[#allocation7 + $0x30] sm:$0xfc] %v3379_v0  ;;  %1145 = vst [vmem:[#allocation7 + $0x18] sm:$0xfc] %v3379_v0  ;;  %1705 = vmatprep.mubr.f32.mxu1 %v3379_v0  ;;  %3251 = vmatpush1.msk.msra.mxu0 %vm688_vm1, %v681_v6  ;;  %v3381_v26 = vmov 1983009808  }
  0x19   : > { %1179 = vst [vmem:[#allocation7 + $0x68] sm:$0xfc] %v3379_v0  ;;  %1180 = vst [vmem:[#allocation7 + $0x60] sm:$0xfc] %v3379_v0  ;;  %3252 = vmatmul.mubr.msk.f32.vlgmr.msra.gmra.mxu0 %vm684_vm2, %v680_v8  ;;  %v889_v27 = vunpack.c.l.s4 %v3381_v26  ;;  %s3383_s26 = smov 112   ;;  %s3384_s4 = smov 113  }
  0x1a   : > { %2903 = vst [vmem:[#allocation6] sm:$0xff] %v3379_v0  ;;  %1274 = vmatprep.mubr.f32.mxu0 %v3379_v0  ;;  %vm859_vm5 = vmor %vm858_vm4, %vm857_vm3  ;;  %s3385_s29 = smov 127   ;;  %vm4238_vm10 = vcmask 138240   ;;  %s3388_s21 = smov 16   ;;  %vm4246_vm11 = vcmask 908288   ;;  %vm4245_vm14 = vcmask 916480  }
  0x1b   : > { %vm3576_vm8 = vmor %vm860_vm6, %vm859_vm5  ;;  %v890_v29 = vunpack.c.0.s8 %v889_v27  ;;  %2906 = vst.msk [vmem:[#allocation6 + $0x18] sm:$0xff] %vm4238_vm10, %v3379_v0  ;;  %s3389_s23 = smov 17   ;;  %vm4243_vm15 = vcmask 924672   ;;  %vm4241_vm4 = vcmask 1039360   ;;  %vm1016_vm5 = vcmask 7168   ;;  %s3390_s28 = smov 94  }
  0x1c   : > { %vm863_vm9 = vmor %vm862_vm7, %vm3576_vm8  ;;  %vm981_vm6 = vcmask 121856   ;;  %vm4239_vm7 = vcmask 130048   ;;  %s3393_s25 = smov 126   ;;  %s3395_s3 = smov 30  }
  0x1d   : > { %864 = vst.msk [vmem:[#allocation2] sm:$0xff] %vm863_vm9, %v3379_v0  ;;  %v3598_v31 = vsub.s32 %v890_v29, %v892_v30  ;;  %vm1206_vm9 = vcmask 588800  }
  0x8e   : > { %v843_v12 = vpop.permute.xlu0 %842 }
  0xd7   : > { %v834_v10 = vpop.f32.mrf.mxu1 }
  0xd9   : > { %v759_v11 = vpop.f32.mrf.mxu0  ;;  %v836_v14 = vpop.f32.mrf.mxu1 }
  0xda   : > { %v835_v13 = vadd.f32 %v834_v10, %v759_v11 }
  0xdb   : > { %v761_v15 = vpop.f32.mrf.mxu0 }
  0xdc   : > { %v845_v16 = vadd.f32 %v843_v12, %v835_v13  ;;  %v837_v17 = vadd.f32 %v836_v14, %v761_v15  ;;  %v1200_v14 = vld [vmem:[%s4222_s6] sm:$0x3]  ;;  %v651_v15 = vand.u32 127, %v650_v25 }
  0xde   : > { %v3583_v18 = vmax.f32 %v845_v16, 0.0  ;;  %v846_v19 = vadd.f32 %v843_v12, %v837_v17  ;;  %v3652_v26 = vand.u32 15, %v651_v15 }
  0xe0   : > { %v3586_v20 = vrot.slane %v3583_v18, 2  ;;  %v3588_v21 = vmax.f32 %v846_v19, 0.0  ;;  %v652_v19 = vadd.s32 128, %v651_v15  ;;  %vm879_vm12 = vcmp.lt.s32.totalorder %v3652_v26, 15 }
  0xe1   : > { %vm877_vm0 = vcmp.ge.s32.totalorder %v3652_v26, 1 }
  0xe2   : > { %v3591_v22 = vrot.slane %v3588_v21, 2  ;;  %v855_v23 = vadd.f32 %v3586_v20, %v3583_v18  ;;  %v3654_v27 = vand.u32 15, %v652_v19 }
  0xe4   : > { %v856_v24 = vadd.f32 %v3591_v22, %v3588_v21  ;;  %vm4244_vm13 = vcmp.lt.s32.totalorder %v3654_v27, 15  ;;  %vm4242_vm1 = vcmp.ge.s32.totalorder %v3654_v27, 1 }
  0xe6   : > { %v867_v28 = vcombine.low %v855_v23, %v856_v24 }
  0xe8   : > { %3254 = vst.sshfl [vmem:[#allocation2 + $0x2] sm:$0x33 pattern:$0x76325410] %v867_v28 }
  0xef   : > { %v1146_v32 = vld [vmem:[#allocation2 + $0x2] sm:$0x3f] }
  0xf0   : > { %v1113_v33 = vld [vmem:[#allocation2 + $0x2] sm:$0x3f]  ;;  %v1155_v34 = vrot.slane %v1146_v32, %v3598_v31  ;;  %v1148_v43 = vcombine.high %v1146_v32, %v1146_v32 }
  0xf1   : > { %v1122_v35 = vrot.slane %v1113_v33, %v3598_v31  ;;  %v1078_v36 = vld [vmem:[#allocation2 + $0x2] sm:$0x3f]  ;;  %v1115_v50 = vcombine.high %v1113_v33, %v1113_v33 }
  0xf2   : > { %v1043_v37 = vld [vmem:[#allocation2 + $0x2] sm:$0x3f]  ;;  %1164 = vrot.lane.b32.xlu1 %v1155_v34, %s3382_s1  ;;  %v1087_v39 = vrot.slane %v1078_v36, %v3598_v31  ;;  %v1163_v48 = vcombine.high %v1155_v34, %v1155_v34  ;;  %v1162_v49 = vrot.slane %v1148_v43, %v3598_v31  ;;  %v1080_v53 = vcombine.high %v1078_v36, %v1078_v36 }
  0xf3   : > { %1131 = vrot.lane.b32.xlu0 %v1122_v35, %s3383_s26  ;;  %v3255_v38 = vld.sshfl [vmem:[#allocation2 + $0x2] sm:$0x33 pattern:$0x76325410]  ;;  %v1052_v40 = vrot.slane %v1043_v37, %v3598_v31  ;;  %v1129_v51 = vrot.slane %v1115_v50, %v3598_v31  ;;  %v1130_v52 = vcombine.high %v1122_v35, %v1122_v35  ;;  %v1045_v57 = vcombine.high %v1043_v37, %v1043_v37 }
  0xf4   : > { %1039 = vst [vmem:[#allocation7 + $0x88] sm:$0x3] %v3255_v38  ;;  %v992_v41 = vld [vmem:[#allocation2] sm:$0x3f]  ;;  %v1036_v46 = vcombine.high %v3255_v38, %v3255_v38  ;;  %v1094_v55 = vrot.slane %v1080_v53, %v3598_v31  ;;  %v1095_v56 = vcombine.high %v1087_v39, %v1087_v39 }
  0xf5   : > { %v953_v42 = vld [vmem:[#allocation2] sm:$0x3f]  ;;  %v1001_v44 = vrot.slane %v992_v41, %v3598_v31  ;;  %v1059_v58 = vrot.slane %v1045_v57, %v3598_v31  ;;  %v1060_v59 = vcombine.high %v1052_v40, %v1052_v40  ;;  %v994_v60 = vcombine.high %v992_v41, %v992_v41 }
  0xf6   : > { %1096 = vrot.lane.b32.xlu1 %v1087_v39, %s3384_s4  ;;  %v966_v45 = vrot.slane %v953_v42, %v3598_v31  ;;  %1040 = vst [vmem:[#allocation7 + $0x40] sm:$0x3] %v1036_v46  ;;  %v959_v63 = vcombine.high %v953_v42, %v953_v42  ;;  %v920_v1 = vld [vmem:[#allocation2] sm:$0x3f] }
  0xf7   : > { %1061 = vrot.lane.b32.xlu0 %v1052_v40, %s3385_s29  ;;  %v1009_v61 = vcombine.high %v1001_v44, %v1001_v44  ;;  %v1008_v62 = vrot.slane %v994_v60, %v3598_v31  ;;  %v929_v4 = vrot.slane %v920_v1, %v3598_v31  ;;  %v922_v5 = vcombine.high %v920_v1, %v920_v1  ;;  %v881_v6 = vld [vmem:[#allocation2] sm:$0x3f] }
  0xf8   : > { %v974_v2 = vcombine.high %v966_v45, %v966_v45  ;;  %v973_v3 = vrot.slane %v959_v63, %v3598_v31  ;;  %v894_v10 = vrot.slane %v881_v6, %v3598_v31  ;;  %v887_v11 = vcombine.high %v881_v6, %v881_v6 }
  0xf9   : > { %v937_v7 = vcombine.high %v929_v4, %v929_v4  ;;  %v936_v8 = vrot.slane %v922_v5, %v3598_v31 }
  0xfa   : > { %1010 = vrot.lane.b32.xlu1 %v1001_v44, %s3386_s30  ;;  %v902_v12 = vcombine.high %v894_v10, %v894_v10  ;;  %v901_v13 = vrot.slane %v887_v11, %v3598_v31 }
  0xfb   : > { %975 = vrot.lane.b32.xlu0 %v966_v45, %s3387_s0  ;;  %v3612_v47 = vld [vmem:[#allocation7 + $0x88] sm:$0xff] }
  0xfc   : > { %1473 = vst [vmem:[#allocation7 + $0x88] sm:$0xfc] %v3379_v0 }
  0xfd   : > { %v3621_v54 = vld [vmem:[#allocation7 + $0x40] sm:$0xff] }
  0xfe   : > { %1168 = vrot.lane.b32.xlu1 %v1162_v49, %s3382_s1  ;;  %1474 = vst [vmem:[#allocation7 + $0x40] sm:$0xfc] %v3379_v0 }
  0xff   : > { %1166 = vrot.lane.b32.xlu0 %v1163_v48, %s3382_s1 }
 0x102   : > { %1135 = vrot.lane.b32.xlu1 %v1129_v51, %s3383_s26 }
 0x103   : > { %1133 = vrot.lane.b32.xlu0 %v1130_v52, %s3383_s26 }
 0x106   : > { %1100 = vrot.lane.b32.xlu1 %v1094_v55, %s3384_s4 }
 0x107   : > { %1098 = vrot.lane.b32.xlu0 %v1095_v56, %s3384_s4 }
 0x10a   : > { %1065 = vrot.lane.b32.xlu1 %v1059_v58, %s3385_s29 }
 0x10b   : > { %1063 = vrot.lane.b32.xlu0 %v1060_v59, %s3385_s29 }
 0x10e   : > { %1012 = vrot.lane.b32.xlu1 %v1009_v61, %s3386_s30 }
 0x10f   : > { %1014 = vrot.lane.b32.xlu0 %v1008_v62, %s3386_s30 }
 0x112   : > { %979 = vrot.lane.b32.xlu1 %v973_v3, %s3387_s0 }
 0x113   : > { %977 = vrot.lane.b32.xlu0 %v974_v2, %s3387_s0 }
 0x116   : > { %940 = vrot.lane.b32.xlu1 %v937_v7, %s3388_s21 }
 0x117   : > { %942 = vrot.lane.b32.xlu0 %v936_v8, %s3388_s21 }
 0x11a   : > { %905 = vrot.lane.b32.xlu1 %v902_v12, %s3389_s23 }
 0x11b   : > { %907 = vrot.lane.b32.xlu0 %v901_v13, %s3389_s23 }
 0x11e   : > { %938 = vrot.lane.b32.xlu1 %v929_v4, %s3388_s21 }
 0x11f   : > { %903 = vrot.lane.b32.xlu0 %v894_v10, %s3389_s23 }
 0x122   : > { %1203 = vperm.xlu1 %3323, %v1200_v14  }
 0x164   : > { %v1165_v16 = vpop.permute.xlu1 %1164 }
 0x165   : > { %v1132_v17 = vpop.permute.xlu0 %1131 }
 0x168   : > { %v1097_v23 = vpop.permute.xlu1 %1096 }
 0x169   : > { %v1062_v24 = vpop.permute.xlu0 %1061 }
 0x16c   : > { %v1011_v28 = vpop.permute.xlu1 %1010 }
 0x16d   : > { %v3656_v29 = vpop.permute.xlu0 %975 }
 0x170   : > { %v1169_v30 = vpop.permute.xlu1 %1168 }
 0x171   : > { %v1167_v32 = vpop.permute.xlu0 %1166 }
 0x172   : > { %v1171_v25 = vsel %vm4246_vm11, %v1165_v16, %v1167_v32  ;;  %v1172_v33 = vsel %vm4246_vm11, %v1167_v32, %v1169_v30  ;;  %vm1740_vm11 = vcmp.ge.s32.totalorder %v3654_v27, 3 }
 0x173   : > { %v1175_v34 = vsel %vm879_vm12, %v1171_v25, 0.0  ;;  %v1176_v35 = vsel %vm4244_vm13, %v1172_v33, 0.0 }
 0x174   : > { %1177 = vst [vmem:[#allocation7 + $0x68] sm:$0x3] %v1175_v34  ;;  %1178 = vst [vmem:[#allocation7 + $0x60] sm:$0x3] %v1176_v35  ;;  %v1136_v36 = vpop.permute.xlu1 %1135 }
 0x175   : > { %v1134_v37 = vpop.permute.xlu0 %1133 }
 0x176   : > { %v1138_v38 = vsel %vm4245_vm14, %v1132_v17, %v1134_v37  ;;  %v1139_v39 = vsel %vm4245_vm14, %v1134_v37, %v1136_v36  ;;  %v1181_v37 = vld [vmem:[%s4221_s5] sm:$0x3]  ;;  %vm1310_vm14 = vcmp.ge.s32.totalorder %v3654_v27, 2 }
 0x177   : > { %1142 = vst [vmem:[#allocation7 + $0x30] sm:$0x3] %v1138_v38  ;;  %1143 = vst [vmem:[#allocation7 + $0x18] sm:$0x3] %v1139_v39 }
 0x178   : > { %v1101_v40 = vpop.permute.xlu1 %1100 }
 0x179   : > { %v1099_v41 = vpop.permute.xlu0 %1098 }
 0x17a   : > { %v1103_v42 = vsel %vm4243_vm15, %v1097_v23, %v1099_v41  ;;  %v1104_v43 = vsel %vm4243_vm15, %v1099_v41, %v1101_v40  ;;  %vm1534_vm15 = vcmask 801792  }
 0x17b   : > { %v1107_v44 = vsel %vm877_vm0, %v1103_v42, 0.0  ;;  %v1108_v45 = vsel %vm4242_vm1, %v1104_v43, 0.0  ;;  %v1199_v46 = vld [vmem:[#allocation7 + $0x60] sm:$0xff]  ;;  %v1198_v48 = vld [vmem:[#allocation7 + $0x68] sm:$0xff] }
 0x17c   : > { %1109 = vst [vmem:[#allocation7 + $0x10] sm:$0x3] %v1107_v44  ;;  %1110 = vst [vmem:[#allocation7 + $0x48] sm:$0x3] %v1108_v45  ;;  %1224 = vmatprep.subr.mxu0 %v1199_v46  ;;  %v1066_v49 = vpop.permute.xlu1 %1065 }
 0x17d   : > { %1612 = vst [vmem:[#allocation7 + $0x60] sm:$0xfc] %v3379_v0  ;;  %1611 = vst [vmem:[#allocation7 + $0x68] sm:$0xfc] %v3379_v0  ;;  %1225 = vmatpush1.msra.mxu0 %v1198_v48  ;;  %v1064_v50 = vpop.permute.xlu0 %1063 }
 0x17e   : > { %v1068_v51 = vsel %vm4241_vm4, %v1062_v24, %v1064_v50  ;;  %v1069_v52 = vsel %vm4241_vm4, %v1064_v50, %v1066_v49  ;;  %v1197_v53 = vld [vmem:[#allocation7 + $0x18] sm:$0xff]  ;;  %v1196_v55 = vld [vmem:[#allocation7 + $0x30] sm:$0xff]  ;;  %vm1312_vm4 = vcmp.lt.s32.totalorder %v3654_v27, 14 }
 0x17f   : > { %v1072_v56 = vsel %vm879_vm12, %v1068_v51, 0.0  ;;  %v1073_v57 = vsel %vm4244_vm13, %v1069_v52, 0.0  ;;  %1226 = vmatprep.subr.mxu0 %v1197_v53  ;;  %1577 = vst [vmem:[#allocation7 + $0x18] sm:$0xfc] %v3379_v0  ;;  %1576 = vst [vmem:[#allocation7 + $0x30] sm:$0xfc] %v3379_v0 }
 0x180   : > { %1074 = vst [vmem:[#allocation7 + $0x50] sm:$0x3] %v1072_v56  ;;  %1075 = vst [vmem:[#allocation7 + $0x28] sm:$0x3] %v1073_v57  ;;  %1227 = vmatpush1.msra.mxu0 %v1196_v55  ;;  %v1013_v58 = vpop.permute.xlu1 %1012 }
 0x181   : > { %v1015_v59 = vpop.permute.xlu0 %1014  ;;  %v1017_v60 = vsel %vm1016_vm5, %v1011_v28, %v1013_v58 }
 0x182   : > { %v1018_v61 = vsel %vm1016_vm5, %v1013_v58, %v1015_v59  ;;  %v1021_v62 = vsel %vm877_vm0, %v1017_v60, 0.0 }
 0x183   : > { %v1022_v63 = vsel %vm4242_vm1, %v1018_v61, 0.0  ;;  %v1195_v1 = vld [vmem:[#allocation7 + $0x48] sm:$0xff]  ;;  %v1194_v2 = vld [vmem:[#allocation7 + $0x10] sm:$0xff]  ;;  %1023 = vst [vmem:[#allocation7 + $0x70] sm:$0x3] %v1021_v62 }
 0x184   : > { %1024 = vst [vmem:[#allocation7 + $0x80] sm:$0x3] %v1022_v63  ;;  %1228 = vmatprep.subr.mxu0 %v1195_v1  ;;  %1544 = vst [vmem:[#allocation7 + $0x48] sm:$0xfc] %v3379_v0  ;;  %v980_v4 = vpop.permute.xlu1 %979 }
 0x185   : > { %1543 = vst [vmem:[#allocation7 + $0x10] sm:$0xfc] %v3379_v0  ;;  %1229 = vmatpush1.msra.mxu0 %v1194_v2  ;;  %v978_v3 = vpop.permute.xlu0 %977 }
 0x186   : > { %v982_v5 = vsel %vm981_vm6, %v3656_v29, %v978_v3  ;;  %v983_v6 = vsel %vm981_vm6, %v978_v3, %v980_v4 }
 0x187   : > { %v986_v7 = vsel %vm879_vm12, %v982_v5, 0.0  ;;  %v987_v8 = vsel %vm4244_vm13, %v983_v6, 0.0  ;;  %v1193_v10 = vld [vmem:[#allocation7 + $0x28] sm:$0xff]  ;;  %v1192_v11 = vld [vmem:[#allocation7 + $0x50] sm:$0xff]  ;;  %vm1309_vm13 = vcmp.ge.s32.totalorder %v3652_v26, 2 }
 0x188   : > { %988 = vst [vmem:[#allocation7 + $0x20] sm:$0x3] %v986_v7  ;;  %989 = vst [vmem:[#allocation7 + $0x8] sm:$0x3] %v987_v8  ;;  %1230 = vmatprep.subr.mxu0 %v1193_v10  ;;  %v941_v12 = vpop.permute.xlu1 %940 }
 0x189   : > { %1509 = vst [vmem:[#allocation7 + $0x28] sm:$0xfc] %v3379_v0  ;;  %1508 = vst [vmem:[#allocation7 + $0x50] sm:$0xfc] %v3379_v0  ;;  %1231 = vmatpush1.msra.mxu0 %v1192_v11  ;;  %v943_v13 = vpop.permute.xlu0 %942 }
 0x18a   : > { %v946_v14 = vsel %vm4239_vm7, %v941_v12, %v943_v13  ;;  %1232 = vmatprep.subr.mxu0 %v3621_v54  ;;  %v1188_v16 = vld [vmem:[#allocation7 + $0x70] sm:$0xff] }
 0x18b   : > { %950 = vst [vmem:[#allocation7 + $0x58] sm:$0x3] %v946_v14  ;;  %1233 = vmatpush1.msra.mxu0 %v3612_v47  ;;  %v1189_v15 = vld [vmem:[#allocation7 + $0x80] sm:$0xff]  ;;  %1457 = vst [vmem:[#allocation7 + $0x70] sm:$0xfc] %v3379_v0 }
 0x18c   : > { %1234 = vmatprep.subr.mxu0 %v1189_v15  ;;  %1458 = vst [vmem:[#allocation7 + $0x80] sm:$0xfc] %v3379_v0  ;;  %v906_v17 = vpop.permute.xlu1 %905 }
 0x18d   : > { %1235 = vmatpush1.msra.mxu0 %v1188_v16  ;;  %v908_v19 = vpop.permute.xlu0 %907 }
 0x18e   : > { %v911_v23 = vsel %vm4238_vm10, %v906_v17, %v908_v19 }
 0x18f   : > { %v915_v24 = vsel %vm4242_vm1, %v911_v23, 0.0  ;;  %v1187_v28 = vld [vmem:[#allocation7 + $0x8] sm:$0xff]  ;;  %v1186_v54 = vld [vmem:[#allocation7 + $0x20] sm:$0xff]  ;;  %vm1569_vm1 = vcmask 785408  }
 0x190   : > { %917 = vst [vmem:[#allocation7 + $0x38] sm:$0x3] %v915_v24  ;;  %1236 = vmatprep.subr.mxu0 %v1187_v28  ;;  %1423 = vst [vmem:[#allocation7 + $0x8] sm:$0xfc] %v3379_v0  ;;  %v939_v47 = vpop.permute.xlu1 %938 }
 0x191   : > { %1422 = vst [vmem:[#allocation7 + $0x20] sm:$0xfc] %v3379_v0  ;;  %1237 = vmatpush1.msra.mxu0 %v1186_v54  ;;  %v904_v29 = vpop.permute.xlu0 %903  ;;  %v945_v30 = vsel %vm4239_vm7, %v939_v47, %v941_v12 }
 0x192   : > { %v910_v32 = vsel %vm4238_vm10, %v904_v29, %v906_v17  ;;  %v1185_v25 = vld [vmem:[#allocation7 + $0x58] sm:$0xff]  ;;  %949 = vst [vmem:[#allocation7 + $0x78] sm:$0x3] %v945_v30  ;;  %vm1293_vm10 = vcmask 277510  }
 0x193   : > { %v914_v33 = vsel %vm877_vm0, %v910_v32, 0.0  ;;  %1238 = vmatprep.subr.mxu0 %v1185_v25  ;;  %1384 = vst [vmem:[#allocation7 + $0x58] sm:$0xfc] %v3379_v0  ;;  %vm1294_vm7 = vmor %vm1293_vm10, %vm3576_vm8  ;;  %vm1602_vm10 = vcmask 769024  }
 0x194   : > { %916 = vst [vmem:[#allocation7] sm:$0x3] %v914_v33  ;;  %1295 = vst.msk [vmem:[#allocation3] sm:$0xff] %vm1294_vm7, %v3379_v0  ;;  %vm1311_vm7 = vcmp.lt.s32.totalorder %v3652_v26, 14 }
 0x197   : > { %v1183_v34 = vld [vmem:[#allocation7 + $0x38] sm:$0xff] }
 0x198   : > { %1351 = vst [vmem:[#allocation7 + $0x38] sm:$0xfc] %v3379_v0 }
 0x199   : > { %v1184_v35 = vld [vmem:[#allocation7 + $0x78] sm:$0xff] }
 0x19a   : > { %1239 = vmatpush1.msra.mxu0 %v1184_v35  ;;  %1383 = vst [vmem:[#allocation7 + $0x78] sm:$0xfc] %v3379_v0 }
 0x19b   : > { %v1182_v36 = vld [vmem:[#allocation7] sm:$0xff]  ;;  %1240 = vmatprep.subr.mxu0 %v1183_v34 }
 0x19c   : > { %1350 = vst [vmem:[#allocation7] sm:$0xfc] %v3379_v0  ;;  %1241 = vmatpush1.msra.mxu0 %v1182_v36 }
 0x19d   : > { %3256 = vmatmul.mubr.msk.f32.vlgmr.msra.gmra.mxu0 %vm1206_vm9, %v1181_v37  ;;  %v1204_v38 = vpop.permute.xlu1 %1203 }
 0x19e   : > { %2135 = vmatprep.mubr.f32.mxu0 %v3379_v0 }
 0x25d   : > { %v1276_v39 = vpop.f32.mrf.mxu0 }
 0x25e   : > { %v3729_v40 = vadd.f32 %v1276_v39, %v1204_v38 }
 0x25f   : > { %v1278_v41 = vpop.f32.mrf.mxu0 }
 0x260   : > { %v1281_v42 = vmax.f32 %v3729_v40, 0.0  ;;  %v3732_v43 = vadd.f32 %v1278_v41, %v1204_v38  ;;  %v2727_v40 = vld [vmem:[%s4231_s15] sm:$0xff] }
 0x262   : > { %v1285_v44 = vrot.slane %v1281_v42, 6  ;;  %v1282_v45 = vmax.f32 %v3732_v43, 0.0 }
 0x264   : > { %v1289_v46 = vadd.f32 %v1285_v44, %v3583_v18  ;;  %v1286_v48 = vrot.slane %v1282_v45, 6 }
 0x266   : > { %v1290_v49 = vadd.f32 %v1286_v48, %v3588_v21  ;;  %v1291_v50 = vadd.f32 %v1289_v46, %v3586_v20  ;;  %v1632_v48 = vld [vmem:[%s4224_s8] sm:$0x3] }
 0x268   : > { %v1292_v51 = vadd.f32 %v1290_v49, %v3591_v22 }
 0x26a   : > { %v1298_v52 = vcombine.low %v1291_v50, %v1292_v51 }
 0x26c   : > { %v1305_v53 = vrot.slane %v1298_v52, %v3598_v31 }
 0x26e   : > { %v1306_v55 = vcombine.high %v1305_v53, %v1305_v53 }
 0x270   : > { %1308 = vst [vmem:[#allocation3 + $0x2] sm:$0xf] %v1306_v55 }
 0x277   : > { %v3257_v56 = vld.sshfl [vmem:[#allocation3 + $0x2] sm:$0x33 pattern:$0x76325410] }
 0x278   : > { %v1578_v57 = vld [vmem:[#allocation3 + $0x2] sm:$0x3f]  ;;  %1471 = vst [vmem:[#allocation7 + $0x88] sm:$0x3] %v3257_v56  ;;  %v1468_v60 = vcombine.high %v3257_v56, %v3257_v56 }
 0x279   : > { %v1587_v58 = vrot.slane %v1578_v57, %v3598_v31  ;;  %v1545_v59 = vld [vmem:[#allocation3 + $0x2] sm:$0x3f]  ;;  %v1580_v8 = vcombine.high %v1578_v57, %v1578_v57 }
 0x27a   : > { %v1554_v61 = vrot.slane %v1545_v59, %v3598_v31  ;;  %v1510_v62 = vld [vmem:[#allocation3 + $0x2] sm:$0x3f]  ;;  %1472 = vst [vmem:[#allocation7 + $0x40] sm:$0x3] %v1468_v60  ;;  %v1547_v12 = vcombine.high %v1545_v59, %v1545_v59 }
 0x27b   : > { %1596 = vrot.lane.b32.xlu0 %v1587_v58, %s3390_s28  ;;  %v1475_v63 = vld [vmem:[#allocation3 + $0x2] sm:$0x3f]  ;;  %v1519_v1 = vrot.slane %v1510_v62, %v3598_v31  ;;  %v1595_v11 = vcombine.high %v1587_v58, %v1587_v58  ;;  %v1594_v13 = vrot.slane %v1580_v8, %v3598_v31  ;;  %v1512_v15 = vcombine.high %v1510_v62, %v1510_v62 }
 0x27c   : > { %1563 = vrot.lane.b32.xlu1 %v1554_v61, %s3391_s24  ;;  %v1484_v2 = vrot.slane %v1475_v63, %v3598_v31  ;;  %v1424_v3 = vld [vmem:[#allocation3] sm:$0x3f]  ;;  %v1561_v14 = vrot.slane %v1547_v12, %v3598_v31  ;;  %v1562_v16 = vcombine.high %v1554_v61, %v1554_v61  ;;  %v1477_v19 = vcombine.high %v1475_v63, %v1475_v63 }
 0x27d   : > { %v1385_v4 = vld [vmem:[#allocation3] sm:$0x3f]  ;;  %v1433_v6 = vrot.slane %v1424_v3, %v3598_v31  ;;  %v1526_v17 = vrot.slane %v1512_v15, %v3598_v31  ;;  %v1527_v23 = vcombine.high %v1519_v1, %v1519_v1  ;;  %v1426_v54 = vcombine.high %v1424_v3, %v1424_v3 }
 0x27e   : > { %v1398_v7 = vrot.slane %v1385_v4, %v3598_v31  ;;  %v1491_v24 = vrot.slane %v1477_v19, %v3598_v31  ;;  %v1492_v28 = vcombine.high %v1484_v2, %v1484_v2  ;;  %v1391_v29 = vcombine.high %v1385_v4, %v1385_v4  ;;  %v1352_v32 = vld [vmem:[#allocation3] sm:$0x3f] }
 0x27f   : > { %1528 = vrot.lane.b32.xlu0 %v1519_v1, %s3392_s2  ;;  %v3749_v5 = vld [vmem:[#allocation7 + $0x88] sm:$0xff]  ;;  %v1441_v47 = vcombine.high %v1433_v6, %v1433_v6  ;;  %v1440_v30 = vrot.slane %v1426_v54, %v3598_v31  ;;  %v1361_v33 = vrot.slane %v1352_v32, %v3598_v31  ;;  %v1354_v35 = vcombine.high %v1352_v32, %v1352_v32 }
 0x280   : > { %1493 = vrot.lane.b32.xlu1 %v1484_v2, %s3393_s25  ;;  %1903 = vst [vmem:[#allocation7 + $0x88] sm:$0xfc] %v3379_v0  ;;  %v1405_v25 = vrot.slane %v1391_v29, %v3598_v31  ;;  %v1406_v34 = vcombine.high %v1398_v7, %v1398_v7  ;;  %v1313_v36 = vld [vmem:[#allocation3] sm:$0x3f] }
 0x281   : > { %v3754_v10 = vld [vmem:[#allocation7 + $0x40] sm:$0xff]  ;;  %v1369_v37 = vcombine.high %v1361_v33, %v1361_v33  ;;  %v1326_v38 = vrot.slane %v1313_v36, %v3598_v31  ;;  %v1368_v39 = vrot.slane %v1354_v35, %v3598_v31  ;;  %v1319_v41 = vcombine.high %v1313_v36, %v1313_v36 }
 0x282   : > { %1904 = vst [vmem:[#allocation7 + $0x40] sm:$0xfc] %v3379_v0 }
 0x283   : > { %1442 = vrot.lane.b32.xlu0 %v1433_v6, %s3394_s27  ;;  %v1334_v44 = vcombine.high %v1326_v38, %v1326_v38  ;;  %v1333_v46 = vrot.slane %v1319_v41, %v3598_v31 }
 0x284   : > { %1407 = vrot.lane.b32.xlu1 %v1398_v7, %s3395_s3 }
 0x287   : > { %1598 = vrot.lane.b32.xlu0 %v1595_v11, %s3390_s28 }
 0x288   : > { %1600 = vrot.lane.b32.xlu1 %v1594_v13, %s3390_s28  ;;  %s3396_s28 = smov 32  }
 0x28b   : > { %1567 = vrot.lane.b32.xlu0 %v1561_v14, %s3391_s24 }
 0x28c   : > { %1565 = vrot.lane.b32.xlu1 %v1562_v16, %s3391_s24  ;;  %s3397_s24 = smov 34  }
 0x28f   : > { %1532 = vrot.lane.b32.xlu0 %v1526_v17, %s3392_s2 }
 0x290   : > { %1530 = vrot.lane.b32.xlu1 %v1527_v23, %s3392_s2  ;;  %s3400_s2 = smov 83  }
 0x293   : > { %1497 = vrot.lane.b32.xlu0 %v1491_v24, %s3393_s25 }
 0x294   : > { %1495 = vrot.lane.b32.xlu1 %v1492_v28, %s3393_s25  ;;  %s3401_s25 = smov 125  }
 0x297   : > { %1444 = vrot.lane.b32.xlu0 %v1441_v47, %s3394_s27 }
 0x298   : > { %1446 = vrot.lane.b32.xlu1 %v1440_v30, %s3394_s27  ;;  %s3403_s27 = smov 45  }
 0x29b   : > { %1411 = vrot.lane.b32.xlu0 %v1405_v25, %s3395_s3 }
 0x29c   : > { %1409 = vrot.lane.b32.xlu1 %v1406_v34, %s3395_s3  ;;  %s3402_s3 = smov 3  }
 0x29f   : > { %1372 = vrot.lane.b32.xlu0 %v1369_v37, %s3396_s28 }
 0x2a0   : > { %1374 = vrot.lane.b32.xlu1 %v1368_v39, %s3396_s28 }
 0x2a3   : > { %1337 = vrot.lane.b32.xlu0 %v1334_v44, %s3397_s24 }
 0x2a4   : > { %1339 = vrot.lane.b32.xlu1 %v1333_v46, %s3397_s24 }
 0x2a7   : > { %1370 = vrot.lane.b32.xlu0 %v1361_v33, %s3396_s28  ;;  %s3398_s28 = smov 77  }
 0x2a8   : > { %1335 = vrot.lane.b32.xlu1 %v1326_v38, %s3397_s24  ;;  %s3399_s24 = smov 80  }
 0x2ab   : > { %1635 = vperm.xlu0 %3322, %v1632_v48  }
 0x2ed   : > { %v1597_v49 = vpop.permute.xlu0 %1596 }
 0x2ee   : > { %v1564_v50 = vpop.permute.xlu1 %1563 }
 0x2f1   : > { %v1529_v51 = vpop.permute.xlu0 %1528 }
 0x2f2   : > { %v1494_v52 = vpop.permute.xlu1 %1493 }
 0x2f5   : > { %v1443_v53 = vpop.permute.xlu0 %1442 }
 0x2f6   : > { %v3775_v55 = vpop.permute.xlu1 %1407 }
 0x2f9   : > { %v1599_v56 = vpop.permute.xlu0 %1598 }
 0x2fa   : > { %v1603_v57 = vsel %vm1602_vm10, %v1597_v49, %v1599_v56  ;;  %v1601_v58 = vpop.permute.xlu1 %1600 }
 0x2fb   : > { %v1607_v59 = vsel %vm1311_vm7, %v1603_v57, 0.0  ;;  %v1604_v60 = vsel %vm1602_vm10, %v1599_v56, %v1601_v58  ;;  %vm1413_vm10 = vcmask 244736  }
 0x2fc   : > { %1609 = vst [vmem:[#allocation7 + $0x68] sm:$0x3] %v1607_v59  ;;  %v1608_v61 = vsel %vm1312_vm4, %v1604_v60, 0.0 }
 0x2fd   : > { %1610 = vst [vmem:[#allocation7 + $0x60] sm:$0x3] %v1608_v61  ;;  %v1568_v62 = vpop.permute.xlu0 %1567 }
 0x2fe   : > { %v1566_v63 = vpop.permute.xlu1 %1565 }
 0x2ff   : > { %v1570_v1 = vsel %vm1569_vm1, %v1564_v50, %v1566_v63  ;;  %v1571_v2 = vsel %vm1569_vm1, %v1566_v63, %v1568_v62  ;;  %vm1499_vm1 = vcmask 1031168  }
 0x300   : > { %1574 = vst [vmem:[#allocation7 + $0x30] sm:$0x3] %v1570_v1  ;;  %1575 = vst [vmem:[#allocation7 + $0x18] sm:$0x3] %v1571_v2 }
 0x301   : > { %v1533_v3 = vpop.permute.xlu0 %1532 }
 0x302   : > { %v1531_v4 = vpop.permute.xlu1 %1530 }
 0x303   : > { %v1535_v6 = vsel %vm1534_vm15, %v1529_v51, %v1531_v4  ;;  %v1536_v7 = vsel %vm1534_vm15, %v1531_v4, %v1533_v3  ;;  %v1630_v8 = vld [vmem:[#allocation7 + $0x68] sm:$0xff]  ;;  %vm1448_vm15 = vcmask 15360   ;;  %v1613_v3 = vld [vmem:[%s4223_s7] sm:$0x3] }
 0x304   : > { %v1539_v11 = vsel %vm1309_vm13, %v1535_v6, 0.0  ;;  %v1540_v12 = vsel %vm1310_vm14, %v1536_v7, 0.0  ;;  %v1631_v13 = vld [vmem:[#allocation7 + $0x60] sm:$0xff]  ;;  %2041 = vst [vmem:[#allocation7 + $0x68] sm:$0xfc] %v3379_v0 }
 0x305   : > { %1541 = vst [vmem:[#allocation7 + $0x10] sm:$0x3] %v1539_v11  ;;  %1542 = vst [vmem:[#allocation7 + $0x48] sm:$0x3] %v1540_v12  ;;  %1655 = vmatprep.subr.mxu1 %v1631_v13  ;;  %v1498_v14 = vpop.permute.xlu0 %1497  ;;  %v3832_v6 = vld [vmem:[#allocation6] sm:$0xff] }
 0x306   : > { %2042 = vst [vmem:[#allocation7 + $0x60] sm:$0xfc] %v3379_v0  ;;  %1656 = vmatpush1.msra.mxu1 %v1630_v8  ;;  %v1496_v15 = vpop.permute.xlu1 %1495 }
 0x307   : > { %v1500_v16 = vsel %vm1499_vm1, %v1494_v52, %v1496_v15  ;;  %v1501_v17 = vsel %vm1499_vm1, %v1496_v15, %v1498_v14  ;;  %v1629_v19 = vld [vmem:[#allocation7 + $0x18] sm:$0xff]  ;;  %v1628_v23 = vld [vmem:[#allocation7 + $0x30] sm:$0xff]  ;;  %vm1376_vm1 = vcmask 261120  }
 0x308   : > { %v1504_v24 = vsel %vm1311_vm7, %v1500_v16, 0.0  ;;  %v1505_v28 = vsel %vm1312_vm4, %v1501_v17, 0.0  ;;  %1657 = vmatprep.subr.mxu1 %v1629_v19  ;;  %2007 = vst [vmem:[#allocation7 + $0x18] sm:$0xfc] %v3379_v0  ;;  %2006 = vst [vmem:[#allocation7 + $0x30] sm:$0xfc] %v3379_v0 }
 0x309   : > { %1506 = vst [vmem:[#allocation7 + $0x50] sm:$0x3] %v1504_v24  ;;  %1507 = vst [vmem:[#allocation7 + $0x28] sm:$0x3] %v1505_v28  ;;  %1658 = vmatpush1.msra.mxu1 %v1628_v23  ;;  %v1445_v54 = vpop.permute.xlu0 %1444 }
 0x30a   : > { %v1449_v47 = vsel %vm1448_vm15, %v1443_v53, %v1445_v54  ;;  %v1447_v29 = vpop.permute.xlu1 %1446 }
 0x30b   : > { %v1453_v30 = vsel %vm1309_vm13, %v1449_v47, 0.0  ;;  %v1450_v32 = vsel %vm1448_vm15, %v1445_v54, %v1447_v29 }
 0x30c   : > { %1455 = vst [vmem:[#allocation7 + $0x70] sm:$0x3] %v1453_v30  ;;  %v1454_v25 = vsel %vm1310_vm14, %v1450_v32, 0.0  ;;  %v1627_v33 = vld [vmem:[#allocation7 + $0x48] sm:$0xff]  ;;  %v1626_v34 = vld [vmem:[#allocation7 + $0x10] sm:$0xff] }
 0x30d   : > { %1456 = vst [vmem:[#allocation7 + $0x80] sm:$0x3] %v1454_v25  ;;  %1659 = vmatprep.subr.mxu1 %v1627_v33  ;;  %1974 = vst [vmem:[#allocation7 + $0x48] sm:$0xfc] %v3379_v0  ;;  %v1412_v35 = vpop.permute.xlu0 %1411 }
 0x30e   : > { %1973 = vst [vmem:[#allocation7 + $0x10] sm:$0xfc] %v3379_v0  ;;  %1660 = vmatpush1.msra.mxu1 %v1626_v34  ;;  %v1410_v36 = vpop.permute.xlu1 %1409 }
 0x30f   : > { %v1414_v37 = vsel %vm1413_vm10, %v3775_v55, %v1410_v36  ;;  %v1415_v38 = vsel %vm1413_vm10, %v1410_v36, %v1412_v35  ;;  %vm1741_vm10 = vcmp.lt.s32.totalorder %v3652_v26, 13 }
 0x310   : > { %v1418_v39 = vsel %vm1311_vm7, %v1414_v37, 0.0  ;;  %v1419_v41 = vsel %vm1312_vm4, %v1415_v38, 0.0  ;;  %v1625_v44 = vld [vmem:[#allocation7 + $0x28] sm:$0xff]  ;;  %v1624_v46 = vld [vmem:[#allocation7 + $0x50] sm:$0xff]  ;;  %vm1341_vm4 = vcmask 277504   ;;  %vm2032_vm7 = vcmask 629760  }
 0x311   : > { %1420 = vst [vmem:[#allocation7 + $0x20] sm:$0x3] %v1418_v39  ;;  %1421 = vst [vmem:[#allocation7 + $0x8] sm:$0x3] %v1419_v41  ;;  %1661 = vmatprep.subr.mxu1 %v1625_v44  ;;  %v1373_v48 = vpop.permute.xlu0 %1372 }
 0x312   : > { %1939 = vst [vmem:[#allocation7 + $0x28] sm:$0xfc] %v3379_v0  ;;  %1938 = vst [vmem:[#allocation7 + $0x50] sm:$0xfc] %v3379_v0  ;;  %1662 = vmatpush1.msra.mxu1 %v1624_v46  ;;  %v1375_v49 = vpop.permute.xlu1 %1374 }
 0x313   : > { %v1378_v50 = vsel %vm1376_vm1, %v1373_v48, %v1375_v49  ;;  %1663 = vmatprep.subr.mxu1 %v3754_v10  ;;  %v1620_v51 = vld [vmem:[#allocation7 + $0x70] sm:$0xff] }
 0x314   : > { %1382 = vst [vmem:[#allocation7 + $0x58] sm:$0x3] %v1378_v50  ;;  %1664 = vmatpush1.msra.mxu1 %v3749_v5  ;;  %v1621_v52 = vld [vmem:[#allocation7 + $0x80] sm:$0xff]  ;;  %1887 = vst [vmem:[#allocation7 + $0x70] sm:$0xfc] %v3379_v0 }
 0x315   : > { %1665 = vmatprep.subr.mxu1 %v1621_v52  ;;  %1888 = vst [vmem:[#allocation7 + $0x80] sm:$0xfc] %v3379_v0  ;;  %v1338_v53 = vpop.permute.xlu0 %1337 }
 0x316   : > { %1666 = vmatpush1.msra.mxu1 %v1620_v51  ;;  %v1340_v55 = vpop.permute.xlu1 %1339 }
 0x317   : > { %v1343_v56 = vsel %vm1341_vm4, %v1338_v53, %v1340_v55 }
 0x318   : > { %v1347_v57 = vsel %vm1310_vm14, %v1343_v56, 0.0  ;;  %v1619_v10 = vld [vmem:[#allocation7 + $0x8] sm:$0xff]  ;;  %v1618_v58 = vld [vmem:[#allocation7 + $0x20] sm:$0xff] }
 0x319   : > { %1349 = vst [vmem:[#allocation7 + $0x38] sm:$0x3] %v1347_v57  ;;  %1667 = vmatprep.subr.mxu1 %v1619_v10  ;;  %1853 = vst [vmem:[#allocation7 + $0x8] sm:$0xfc] %v3379_v0  ;;  %v1371_v5 = vpop.permute.xlu0 %1370 }
 0x31a   : > { %1852 = vst [vmem:[#allocation7 + $0x20] sm:$0xfc] %v3379_v0  ;;  %1668 = vmatpush1.msra.mxu1 %v1618_v58  ;;  %v1377_v59 = vsel %vm1376_vm1, %v1371_v5, %v1373_v48  ;;  %v1336_v60 = vpop.permute.xlu1 %1335  ;;  %vm1742_vm1 = vcmp.lt.s32.totalorder %v3654_v27, 13 }
 0x31b   : > { %1381 = vst [vmem:[#allocation7 + $0x78] sm:$0x3] %v1377_v59  ;;  %v1342_v61 = vsel %vm1341_vm4, %v1336_v60, %v1338_v53  ;;  %v1617_v62 = vld [vmem:[#allocation7 + $0x58] sm:$0xff]  ;;  %vm1999_vm4 = vcmask 654336  }
 0x31c   : > { %v1346_v63 = vsel %vm1309_vm13, %v1342_v61, 0.0  ;;  %1669 = vmatprep.subr.mxu1 %v1617_v62  ;;  %1814 = vst [vmem:[#allocation7 + $0x58] sm:$0xfc] %v3379_v0  ;;  %vm1724_vm13 = vcmask 416774  }
 0x31d   : > { %1348 = vst [vmem:[#allocation7] sm:$0x3] %v1346_v63  ;;  %vm1725_vm14 = vmor %vm1724_vm13, %vm3576_vm8  ;;  %vm1964_vm13 = vcmask 678912  }
 0x31e   : > { %1726 = vst.msk [vmem:[#allocation4] sm:$0xff] %vm1725_vm14, %v3832_v6  ;;  %vm1739_vm14 = vcmp.ge.s32.totalorder %v3652_v26, 3 }
 0x320   : > { %v1615_v1 = vld [vmem:[#allocation7 + $0x38] sm:$0xff] }
 0x321   : > { %1781 = vst [vmem:[#allocation7 + $0x38] sm:$0xfc] %v3379_v0 }
 0x322   : > { %v1616_v2 = vld [vmem:[#allocation7 + $0x78] sm:$0xff] }
 0x323   : > { %1670 = vmatpush1.msra.mxu1 %v1616_v2  ;;  %1813 = vst [vmem:[#allocation7 + $0x78] sm:$0xfc] %v3379_v0 }
 0x324   : > { %1671 = vmatprep.subr.mxu1 %v1615_v1  ;;  %v1614_v4 = vld [vmem:[#allocation7] sm:$0xff] }
 0x325   : > { %1672 = vmatpush1.msra.mxu1 %v1614_v4  ;;  %1780 = vst [vmem:[#allocation7] sm:$0xfc] %v3832_v6 }
 0x326   : > { %3258 = vmatmul.mubr.msk.f32.vlgmr.msra.gmra.mxu1 %vm1206_vm9, %v1613_v3  ;;  %v1636_v0 = vpop.permute.xlu0 %1635 }
 0x327   : > { %2560 = vmatprep.mubr.f32.mxu1 %v3832_v6 }
 0x3e6   : > { %v1707_v7 = vpop.f32.mrf.mxu1 }
 0x3e7   : > { %v3840_v8 = vadd.f32 %v1707_v7, %v1636_v0 }
 0x3e8   : > { %v1709_v11 = vpop.f32.mrf.mxu1 }
 0x3e9   : > { %v1712_v12 = vmax.f32 %v3840_v8, 0.0  ;;  %v3843_v13 = vadd.f32 %v1709_v11, %v1636_v0  ;;  %v2569_v8 = vld [vmem:[%s4229_s13] sm:$0xff] }
 0x3eb   : > { %v1716_v14 = vrot.slane %v1712_v12, 4  ;;  %v1713_v15 = vmax.f32 %v3843_v13, 0.0 }
 0x3ed   : > { %v1720_v16 = vadd.f32 %v1716_v14, %v3583_v18  ;;  %v1717_v17 = vrot.slane %v1713_v15, 4 }
 0x3ef   : > { %v1721_v19 = vadd.f32 %v1717_v17, %v3588_v21  ;;  %v1722_v23 = vadd.f32 %v1720_v16, %v3586_v20  ;;  %v2062_v17 = vld [vmem:[%s4226_s10] sm:$0x3] }
 0x3f1   : > { %v1723_v24 = vadd.f32 %v1721_v19, %v3591_v22 }
 0x3f3   : > { %v1729_v28 = vcombine.high %v1722_v23, %v1723_v24 }
 0x3f5   : > { %3259 = vst.sshfl [vmem:[#allocation4 + $0x2] sm:$0x33 pattern:$0x76325410] %v1729_v28 }
 0x3fc   : > { %v3260_v54 = vld.sshfl [vmem:[#allocation4 + $0x2] sm:$0x33 pattern:$0x76325410] }
 0x3fd   : > { %v2008_v47 = vld [vmem:[#allocation4 + $0x2] sm:$0x3f]  ;;  %1901 = vst [vmem:[#allocation7 + $0x88] sm:$0x3] %v3260_v54  ;;  %v1898_v32 = vcombine.high %v3260_v54, %v3260_v54 }
 0x3fe   : > { %v2017_v29 = vrot.slane %v2008_v47, %v3598_v31  ;;  %v1975_v30 = vld [vmem:[#allocation4 + $0x2] sm:$0x3f]  ;;  %v2010_v41 = vcombine.high %v2008_v47, %v2008_v47 }
 0x3ff   : > { %v1984_v25 = vrot.slane %v1975_v30, %v3598_v31  ;;  %v1940_v33 = vld [vmem:[#allocation4 + $0x2] sm:$0x3f]  ;;  %1902 = vst [vmem:[#allocation7 + $0x40] sm:$0x3] %v1898_v32  ;;  %v1977_v48 = vcombine.high %v1975_v30, %v1975_v30 }
 0x400   : > { %2026 = vrot.lane.b32.xlu1 %v2017_v29, %s3398_s28  ;;  %v1905_v34 = vld [vmem:[#allocation4 + $0x2] sm:$0x3f]  ;;  %v1949_v20 = vrot.slane %v1940_v33, %v3598_v31  ;;  %v2025_v46 = vcombine.high %v2017_v29, %v2017_v29  ;;  %v2024_v49 = vrot.slane %v2010_v41, %v3598_v31  ;;  %v1942_v51 = vcombine.high %v1940_v33, %v1940_v33 }
 0x401   : > { %1993 = vrot.lane.b32.xlu0 %v1984_v25, %s3399_s24  ;;  %v1914_v22 = vrot.slane %v1905_v34, %v3598_v31  ;;  %v1854_v35 = vld [vmem:[#allocation4] sm:$0x3f]  ;;  %v1991_v50 = vrot.slane %v1977_v48, %v3598_v31  ;;  %v1992_v52 = vcombine.high %v1984_v25, %v1984_v25  ;;  %v1907_v55 = vcombine.high %v1905_v34, %v1905_v34 }
 0x402   : > { %v1815_v36 = vld [vmem:[#allocation4] sm:$0x3f]  ;;  %v1863_v38 = vrot.slane %v1854_v35, %v3598_v31  ;;  %v1956_v53 = vrot.slane %v1942_v51, %v3598_v31  ;;  %v1957_v56 = vcombine.high %v1949_v20, %v1949_v20  ;;  %v1856_v58 = vcombine.high %v1854_v35, %v1854_v35 }
 0x403   : > { %v1828_v39 = vrot.slane %v1815_v36, %v3598_v31  ;;  %v1921_v57 = vrot.slane %v1907_v55, %v3598_v31  ;;  %v1922_v10 = vcombine.high %v1914_v22, %v1914_v22  ;;  %v1821_v59 = vcombine.high %v1815_v36, %v1815_v36  ;;  %v1782_v61 = vld [vmem:[#allocation4] sm:$0x3f] }
 0x404   : > { %1958 = vrot.lane.b32.xlu1 %v1949_v20, %s3400_s2  ;;  %v3859_v37 = vld [vmem:[#allocation7 + $0x88] sm:$0xff]  ;;  %v1871_v5 = vcombine.high %v1863_v38, %v1863_v38  ;;  %v1870_v60 = vrot.slane %v1856_v58, %v3598_v31  ;;  %v1791_v63 = vrot.slane %v1782_v61, %v3598_v31  ;;  %v1784_v2 = vcombine.high %v1782_v61, %v1782_v61  ;;  %v1743_v3 = vld [vmem:[#allocation4] sm:$0x3f] }
 0x405   : > { %1923 = vrot.lane.b32.xlu0 %v1914_v22, %s3401_s25  ;;  %2331 = vst [vmem:[#allocation7 + $0x88] sm:$0xfc] %v3832_v6  ;;  %v1835_v62 = vrot.slane %v1821_v59, %v3598_v31  ;;  %v1836_v1 = vcombine.high %v1828_v39, %v1828_v39  ;;  %v1756_v0 = vrot.slane %v1743_v3, %v3598_v31 }
 0x406   : > { %v3864_v44 = vld [vmem:[#allocation7 + $0x40] sm:$0xff]  ;;  %v1799_v4 = vcombine.high %v1791_v63, %v1791_v63  ;;  %v1798_v7 = vrot.slane %v1784_v2, %v3598_v31  ;;  %v1749_v11 = vcombine.high %v1743_v3, %v1743_v3 }
 0x407   : > { %2332 = vst [vmem:[#allocation7 + $0x40] sm:$0xfc] %v3832_v6  ;;  %v1764_v14 = vcombine.high %v1756_v0, %v1756_v0 }
 0x408   : > { %1872 = vrot.lane.b32.xlu1 %v1863_v38, %s3402_s3  ;;  %v1763_v16 = vrot.slane %v1749_v11, %v3598_v31 }
 0x409   : > { %1837 = vrot.lane.b32.xlu0 %v1828_v39, %s3403_s27 }
 0x40c   : > { %2028 = vrot.lane.b32.xlu1 %v2025_v46, %s3398_s28 }
 0x40d   : > { %2030 = vrot.lane.b32.xlu0 %v2024_v49, %s3398_s28  ;;  %s3404_s28 = smov 48  }
 0x410   : > { %1997 = vrot.lane.b32.xlu1 %v1991_v50, %s3399_s24 }
 0x411   : > { %1995 = vrot.lane.b32.xlu0 %v1992_v52, %s3399_s24  ;;  %s3405_s24 = smov 51  }
 0x414   : > { %1962 = vrot.lane.b32.xlu1 %v1956_v53, %s3400_s2 }
 0x415   : > { %1960 = vrot.lane.b32.xlu0 %v1957_v56, %s3400_s2  ;;  %s3408_s2 = smov 68  }
 0x418   : > { %1927 = vrot.lane.b32.xlu1 %v1921_v57, %s3401_s25 }
 0x419   : > { %1925 = vrot.lane.b32.xlu0 %v1922_v10, %s3401_s25  ;;  %s3409_s25 = smov 124  }
 0x41c   : > { %1874 = vrot.lane.b32.xlu1 %v1871_v5, %s3402_s3 }
 0x41d   : > { %1876 = vrot.lane.b32.xlu0 %v1870_v60, %s3402_s3  ;;  %s3410_s3 = smov 4  }
 0x420   : > { %1841 = vrot.lane.b32.xlu1 %v1835_v62, %s3403_s27 }
 0x421   : > { %1839 = vrot.lane.b32.xlu0 %v1836_v1, %s3403_s27 }
 0x424   : > { %1802 = vrot.lane.b32.xlu1 %v1799_v4, %s3404_s28 }
 0x425   : > { %1804 = vrot.lane.b32.xlu0 %v1798_v7, %s3404_s28 }
 0x428   : > { %1767 = vrot.lane.b32.xlu1 %v1764_v14, %s3405_s24 }
 0x429   : > { %1769 = vrot.lane.b32.xlu0 %v1763_v16, %s3405_s24 }
 0x42c   : > { %1800 = vrot.lane.b32.xlu1 %v1791_v63, %s3404_s28  ;;  %s3406_s28 = smov 60  }
 0x42d   : > { %1765 = vrot.lane.b32.xlu0 %v1756_v0, %s3405_s24  ;;  %s3407_s24 = smov 64  }
 0x430   : > { %2065 = vperm.xlu1 %3323, %v2062_v17  }
 0x472   : > { %v2027_v19 = vpop.permute.xlu1 %2026 }
 0x473   : > { %v1994_v23 = vpop.permute.xlu0 %1993 }
 0x476   : > { %v1959_v24 = vpop.permute.xlu1 %1958 }
 0x477   : > { %v1924_v28 = vpop.permute.xlu0 %1923 }
 0x47a   : > { %v1873_v54 = vpop.permute.xlu1 %1872 }
 0x47b   : > { %v3885_v47 = vpop.permute.xlu0 %1837 }
 0x47e   : > { %v2029_v29 = vpop.permute.xlu1 %2028 }
 0x47f   : > { %v2033_v30 = vsel %vm2032_vm7, %v2027_v19, %v2029_v29  ;;  %v2031_v32 = vpop.permute.xlu0 %2030 }
 0x480   : > { %v2037_v25 = vsel %vm1741_vm10, %v2033_v30, 0.0  ;;  %v2034_v33 = vsel %vm2032_vm7, %v2029_v29, %v2031_v32  ;;  %vm1929_vm7 = vcmask 1022976  }
 0x481   : > { %2039 = vst [vmem:[#allocation7 + $0x68] sm:$0x3] %v2037_v25  ;;  %v2038_v34 = vsel %vm1742_vm1, %v2034_v33, 0.0 }
 0x482   : > { %2040 = vst [vmem:[#allocation7 + $0x60] sm:$0x3] %v2038_v34  ;;  %v1998_v20 = vpop.permute.xlu1 %1997 }
 0x483   : > { %v1996_v22 = vpop.permute.xlu0 %1995 }
 0x484   : > { %v2000_v35 = vsel %vm1999_vm4, %v1994_v23, %v1996_v22  ;;  %v2001_v36 = vsel %vm1999_vm4, %v1996_v22, %v1998_v20  ;;  %vm1878_vm4 = vcmask 23552  }
 0x485   : > { %2004 = vst [vmem:[#allocation7 + $0x30] sm:$0x3] %v2000_v35  ;;  %2005 = vst [vmem:[#allocation7 + $0x18] sm:$0x3] %v2001_v36 }
 0x486   : > { %v1963_v38 = vpop.permute.xlu1 %1962 }
 0x487   : > { %v1961_v39 = vpop.permute.xlu0 %1960 }
 0x488   : > { %v1965_v41 = vsel %vm1964_vm13, %v1959_v24, %v1961_v39  ;;  %v1966_v46 = vsel %vm1964_vm13, %v1961_v39, %v1963_v38  ;;  %v2060_v48 = vld [vmem:[#allocation7 + $0x68] sm:$0xff]  ;;  %vm1843_vm13 = vcmask 367616  }
 0x489   : > { %v1969_v49 = vsel %vm1739_vm14, %v1965_v41, 0.0  ;;  %v1970_v50 = vsel %vm1740_vm11, %v1966_v46, 0.0  ;;  %v2061_v51 = vld [vmem:[#allocation7 + $0x60] sm:$0xff]  ;;  %2466 = vst [vmem:[#allocation7 + $0x68] sm:$0xfc] %v3832_v6 }
 0x48a   : > { %1971 = vst [vmem:[#allocation7 + $0x10] sm:$0x3] %v1969_v49  ;;  %1972 = vst [vmem:[#allocation7 + $0x48] sm:$0x3] %v1970_v50  ;;  %2085 = vmatprep.subr.mxu0 %v2061_v51  ;;  %v1928_v52 = vpop.permute.xlu1 %1927  ;;  %v2043_v41 = vld [vmem:[%s4225_s9] sm:$0x3] }
 0x48b   : > { %2467 = vst [vmem:[#allocation7 + $0x60] sm:$0xfc] %v3832_v6  ;;  %2086 = vmatpush1.msra.mxu0 %v2060_v48  ;;  %v1926_v53 = vpop.permute.xlu0 %1925 }
 0x48c   : > { %v1930_v55 = vsel %vm1929_vm7, %v1924_v28, %v1926_v53  ;;  %v1931_v56 = vsel %vm1929_vm7, %v1926_v53, %v1928_v52  ;;  %v2059_v57 = vld [vmem:[#allocation7 + $0x18] sm:$0xff]  ;;  %v2058_v10 = vld [vmem:[#allocation7 + $0x30] sm:$0xff]  ;;  %vm1806_vm7 = vcmask 392192  }
 0x48d   : > { %v1934_v58 = vsel %vm1741_vm10, %v1930_v55, 0.0  ;;  %v1935_v5 = vsel %vm1742_vm1, %v1931_v56, 0.0  ;;  %2087 = vmatprep.subr.mxu0 %v2059_v57  ;;  %2433 = vst [vmem:[#allocation7 + $0x18] sm:$0xfc] %v3832_v6  ;;  %2432 = vst [vmem:[#allocation7 + $0x30] sm:$0xfc] %v3832_v6 }
 0x48e   : > { %1936 = vst [vmem:[#allocation7 + $0x50] sm:$0x3] %v1934_v58  ;;  %1937 = vst [vmem:[#allocation7 + $0x28] sm:$0x3] %v1935_v5  ;;  %2088 = vmatpush1.msra.mxu0 %v2058_v10  ;;  %v1875_v59 = vpop.permute.xlu1 %1874 }
 0x48f   : > { %v1879_v60 = vsel %vm1878_vm4, %v1873_v54, %v1875_v59  ;;  %v1877_v61 = vpop.permute.xlu0 %1876 }
 0x490   : > { %v1883_v62 = vsel %vm1739_vm14, %v1879_v60, 0.0  ;;  %v1880_v63 = vsel %vm1878_vm4, %v1875_v59, %v1877_v61  ;;  %vm2171_vm4 = vcmp.lt.s32.totalorder %v3654_v27, 12 }
 0x491   : > { %1885 = vst [vmem:[#allocation7 + $0x70] sm:$0x3] %v1883_v62  ;;  %v1884_v1 = vsel %vm1740_vm11, %v1880_v63, 0.0  ;;  %v2057_v2 = vld [vmem:[#allocation7 + $0x48] sm:$0xff]  ;;  %v2056_v3 = vld [vmem:[#allocation7 + $0x10] sm:$0xff] }
 0x492   : > { %1886 = vst [vmem:[#allocation7 + $0x80] sm:$0x3] %v1884_v1  ;;  %2089 = vmatprep.subr.mxu0 %v2057_v2  ;;  %2401 = vst [vmem:[#allocation7 + $0x48] sm:$0xfc] %v3832_v6  ;;  %v1842_v4 = vpop.permute.xlu1 %1841 }
 0x493   : > { %2400 = vst [vmem:[#allocation7 + $0x10] sm:$0xfc] %v3832_v6  ;;  %2090 = vmatpush1.msra.mxu0 %v2056_v3  ;;  %v1840_v0 = vpop.permute.xlu0 %1839 }
 0x494   : > { %v1844_v7 = vsel %vm1843_vm13, %v3885_v47, %v1840_v0  ;;  %v1845_v11 = vsel %vm1843_vm13, %v1840_v0, %v1842_v4  ;;  %vm2235_vm13 = vcmask 523264  }
 0x495   : > { %v1848_v14 = vsel %vm1741_vm10, %v1844_v7, 0.0  ;;  %v1849_v16 = vsel %vm1742_vm1, %v1845_v11, 0.0  ;;  %v2055_v17 = vld [vmem:[#allocation7 + $0x28] sm:$0xff]  ;;  %v2054_v19 = vld [vmem:[#allocation7 + $0x50] sm:$0xff]  ;;  %vm1771_vm10 = vcmask 416768  }
 0x496   : > { %1850 = vst [vmem:[#allocation7 + $0x20] sm:$0x3] %v1848_v14  ;;  %1851 = vst [vmem:[#allocation7 + $0x8] sm:$0x3] %v1849_v16  ;;  %2091 = vmatprep.subr.mxu0 %v2055_v17  ;;  %v1803_v23 = vpop.permute.xlu1 %1802 }
 0x497   : > { %2367 = vst [vmem:[#allocation7 + $0x28] sm:$0xfc] %v3832_v6  ;;  %2366 = vst [vmem:[#allocation7 + $0x50] sm:$0xfc] %v3832_v6  ;;  %2092 = vmatpush1.msra.mxu0 %v2054_v19  ;;  %v1805_v24 = vpop.permute.xlu0 %1804 }
 0x498   : > { %v1808_v28 = vsel %vm1806_vm7, %v1803_v23, %v1805_v24  ;;  %2093 = vmatprep.subr.mxu0 %v3864_v44  ;;  %v2050_v54 = vld [vmem:[#allocation7 + $0x70] sm:$0xff] }
 0x499   : > { %1812 = vst [vmem:[#allocation7 + $0x58] sm:$0x3] %v1808_v28  ;;  %2094 = vmatpush1.msra.mxu0 %v3859_v37  ;;  %v2051_v47 = vld [vmem:[#allocation7 + $0x80] sm:$0xff]  ;;  %2315 = vst [vmem:[#allocation7 + $0x70] sm:$0xfc] %v3832_v6 }
 0x49a   : > { %2095 = vmatprep.subr.mxu0 %v2051_v47  ;;  %2316 = vst [vmem:[#allocation7 + $0x80] sm:$0xfc] %v3832_v6  ;;  %v1768_v29 = vpop.permute.xlu1 %1767 }
 0x49b   : > { %2096 = vmatpush1.msra.mxu0 %v2050_v54  ;;  %v1770_v30 = vpop.permute.xlu0 %1769 }
 0x49c   : > { %v1773_v32 = vsel %vm1771_vm10, %v1768_v29, %v1770_v30 }
 0x49d   : > { %v1777_v25 = vsel %vm1740_vm11, %v1773_v32, 0.0  ;;  %v2049_v44 = vld [vmem:[#allocation7 + $0x8] sm:$0xff]  ;;  %v2048_v33 = vld [vmem:[#allocation7 + $0x20] sm:$0xff]  ;;  %vm2152_vm11 = vcmask 556038  }
 0x49e   : > { %1779 = vst [vmem:[#allocation7 + $0x38] sm:$0x3] %v1777_v25  ;;  %2097 = vmatprep.subr.mxu0 %v2049_v44  ;;  %2282 = vst [vmem:[#allocation7 + $0x8] sm:$0xfc] %v3832_v6  ;;  %v1801_v37 = vpop.permute.xlu1 %1800 }
 0x49f   : > { %2281 = vst [vmem:[#allocation7 + $0x20] sm:$0xfc] %v3832_v6  ;;  %2098 = vmatpush1.msra.mxu0 %v2048_v33  ;;  %v1807_v34 = vsel %vm1806_vm7, %v1801_v37, %v1803_v23  ;;  %v1766_v20 = vpop.permute.xlu0 %1765  ;;  %vm2153_vm1 = vmor %vm2152_vm11, %vm3576_vm8  ;;  %vm2272_vm8 = vcmask 490496   ;;  %vm2200_vm7 = vcmask 556032   ;;  %vm2169_vm11 = vcmp.ge.s32.totalorder %v3654_v27, 4 }
 0x4a0   : > { %1811 = vst [vmem:[#allocation7 + $0x78] sm:$0x3] %v1807_v34  ;;  %v1772_v22 = vsel %vm1771_vm10, %v1766_v20, %v1768_v29  ;;  %v2047_v35 = vld [vmem:[#allocation7 + $0x58] sm:$0xff]  ;;  %2154 = vst.msk [vmem:[#allocation5] sm:$0xff] %vm2153_vm1, %v3832_v6  ;;  %vm2168_vm10 = vcmp.ge.s32.totalorder %v3652_v26, 4  ;;  %vm2357_vm1 = vcmask 1014784  }
 0x4a1   : > { %v1776_v36 = vsel %vm1739_vm14, %v1772_v22, 0.0  ;;  %2099 = vmatprep.subr.mxu0 %v2047_v35  ;;  %2243 = vst [vmem:[#allocation7 + $0x58] sm:$0xfc] %v3832_v6  ;;  %vm2170_vm14 = vcmp.lt.s32.totalorder %v3652_v26, 12 }
 0x4a2   : > { %1778 = vst [vmem:[#allocation7] sm:$0x3] %v1776_v36 }
 0x4a5   : > { %v2045_v38 = vld [vmem:[#allocation7 + $0x38] sm:$0xff] }
 0x4a6   : > { %2210 = vst [vmem:[#allocation7 + $0x38] sm:$0xfc] %v3832_v6 }
 0x4a7   : > { %v2046_v39 = vld [vmem:[#allocation7 + $0x78] sm:$0xff] }
 0x4a8   : > { %2100 = vmatpush1.msra.mxu0 %v2046_v39  ;;  %2242 = vst [vmem:[#allocation7 + $0x78] sm:$0xfc] %v3832_v6 }
 0x4a9   : > { %2101 = vmatprep.subr.mxu0 %v2045_v38  ;;  %v2044_v46 = vld [vmem:[#allocation7] sm:$0xff] }
 0x4aa   : > { %2102 = vmatpush1.msra.mxu0 %v2044_v46  ;;  %2209 = vst [vmem:[#allocation7] sm:$0xfc] %v3832_v6 }
 0x4ab   : > { %3261 = vmatmul.mubr.msk.f32.vlgmr.msra.gmra.mxu0 %vm1206_vm9, %v2043_v41  ;;  %v2066_v48 = vpop.permute.xlu1 %2065 }
 0x4ac   : > { %3161 = vmatprep.mubr.f32.mxu0 %v3832_v6 }
 0x56b   : > { %v2137_v49 = vpop.f32.mrf.mxu0 }
 0x56c   : > { %v3946_v50 = vadd.f32 %v2137_v49, %v2066_v48 }
 0x56d   : > { %v2139_v51 = vpop.f32.mrf.mxu0 }
 0x56e   : > { %v2142_v52 = vmax.f32 %v3946_v50, 0.0  ;;  %v3949_v53 = vadd.f32 %v2139_v51, %v2066_v48  ;;  %v2808_v50 = vld [vmem:[%s4232_s16] sm:$0xff] }
 0x570   : > { %v2146_v55 = vrot.slane %v2142_v52, 2  ;;  %v2143_v56 = vmax.f32 %v3949_v53, 0.0 }
 0x572   : > { %v2147_v9 = vrot.slane %v2143_v56, 2  ;;  %v2150_v57 = vadd.f32 %v2146_v55, %v3583_v18 }
 0x574   : > { %v2151_v10 = vadd.f32 %v2147_v9, %v3588_v21 }
 0x576   : > { %v2157_v58 = vcombine.high %v2150_v57, %v2151_v10  ;;  %v2487_v10 = vld [vmem:[%s4228_s12] sm:$0x3] }
 0x578   : > { %v2164_v5 = vrot.slane %v2157_v58, %v3598_v31  ;;  %v2891_v58 = vld [vmem:[%s4233_s17] sm:$0xff] }
 0x57a   : > { %v2165_v59 = vcombine.high %v2164_v5, %v2164_v5 }
 0x57c   : > { %2167 = vst [vmem:[#allocation5 + $0x2] sm:$0xf] %v2165_v59 }
 0x583   : > { %v3262_v60 = vld.sshfl [vmem:[#allocation5 + $0x2] sm:$0x33 pattern:$0x76325410] }
 0x584   : > { %v2434_v61 = vld [vmem:[#allocation5 + $0x2] sm:$0x3f]  ;;  %v2326_v62 = vcombine.high %v3262_v60, %v3262_v60  ;;  %2329 = vst [vmem:[#allocation7 + $0x88] sm:$0x3] %v3262_v60 }
 0x585   : > { %v2443_v63 = vrot.slane %v2434_v61, %v3598_v31  ;;  %v2402_v1 = vld [vmem:[#allocation5 + $0x2] sm:$0x3f]  ;;  %v2436_v19 = vcombine.high %v2434_v61, %v2434_v61 }
 0x586   : > { %v2411_v2 = vrot.slane %v2402_v1, %v3598_v31  ;;  %v2368_v3 = vld [vmem:[#allocation5 + $0x2] sm:$0x3f]  ;;  %2330 = vst [vmem:[#allocation7 + $0x40] sm:$0x3] %v2326_v62  ;;  %v2404_v24 = vcombine.high %v2402_v1, %v2402_v1 }
 0x587   : > { %2452 = vrot.lane.b32.xlu0 %v2443_v63, %s3406_s28  ;;  %v2333_v4 = vld [vmem:[#allocation5 + $0x2] sm:$0x3f]  ;;  %v2377_v0 = vrot.slane %v2368_v3, %v3598_v31  ;;  %v2451_v23 = vcombine.high %v2443_v63, %v2443_v63  ;;  %v2450_v28 = vrot.slane %v2436_v19, %v3598_v31  ;;  %v2370_v47 = vcombine.high %v2368_v3, %v2368_v3 }
 0x588   : > { %2420 = vrot.lane.b32.xlu1 %v2411_v2, %s3407_s24  ;;  %v2342_v7 = vrot.slane %v2333_v4, %v3598_v31  ;;  %v2283_v11 = vld [vmem:[#allocation5] sm:$0x3f]  ;;  %v2418_v54 = vrot.slane %v2404_v24, %v3598_v31  ;;  %v2419_v29 = vcombine.high %v2411_v2, %v2411_v2  ;;  %v2335_v32 = vcombine.high %v2333_v4, %v2333_v4 }
 0x589   : > { %v2244_v14 = vld [vmem:[#allocation5] sm:$0x3f]  ;;  %v2292_v16 = vrot.slane %v2283_v11, %v3598_v31  ;;  %v2384_v30 = vrot.slane %v2370_v47, %v3598_v31  ;;  %v2385_v25 = vcombine.high %v2377_v0, %v2377_v0  ;;  %v2285_v37 = vcombine.high %v2283_v11, %v2283_v11 }
 0x58a   : > { %v2257_v17 = vrot.slane %v2244_v14, %v3598_v31  ;;  %v2349_v44 = vrot.slane %v2335_v32, %v3598_v31  ;;  %v2350_v33 = vcombine.high %v2342_v7, %v2342_v7  ;;  %v2250_v20 = vcombine.high %v2244_v14, %v2244_v14  ;;  %v2211_v35 = vld [vmem:[#allocation5] sm:$0x3f] }
 0x58b   : > { %2386 = vrot.lane.b32.xlu0 %v2377_v0, %s3408_s2  ;;  %v2300_v34 = vcombine.high %v2292_v16, %v2292_v16  ;;  %v2299_v22 = vrot.slane %v2285_v37, %v3598_v31  ;;  %v2220_v38 = vrot.slane %v2211_v35, %v3598_v31  ;;  %v2213_v41 = vcombine.high %v2211_v35, %v2211_v35  ;;  %v2172_v46 = vld [vmem:[#allocation5] sm:$0x3f] }
 0x58c   : > { %2351 = vrot.lane.b32.xlu1 %v2342_v7, %s3409_s25  ;;  %v2264_v36 = vrot.slane %v2250_v20, %v3598_v31  ;;  %v2265_v39 = vcombine.high %v2257_v17, %v2257_v17  ;;  %v2185_v49 = vrot.slane %v2172_v46, %v3598_v31  ;;  %v2178_v55 = vcombine.high %v2172_v46, %v2172_v46 }
 0x58d   : > { %v2228_v48 = vcombine.high %v2220_v38, %v2220_v38  ;;  %v2227_v51 = vrot.slane %v2213_v41, %v3598_v31 }
 0x58e   : > { %v2193_v9 = vcombine.high %v2185_v49, %v2185_v49  ;;  %v2192_v57 = vrot.slane %v2178_v55, %v3598_v31 }
 0x58f   : > { %2301 = vrot.lane.b32.xlu0 %v2292_v16, %s3410_s3 }
 0x590   : > { %2266 = vrot.lane.b32.xlu1 %v2257_v17, %s3406_s28 }
 0x593   : > { %2454 = vrot.lane.b32.xlu0 %v2451_v23, %s3406_s28 }
 0x594   : > { %2456 = vrot.lane.b32.xlu1 %v2450_v28, %s3406_s28 }
 0x597   : > { %2424 = vrot.lane.b32.xlu0 %v2418_v54, %s3407_s24 }
 0x598   : > { %2422 = vrot.lane.b32.xlu1 %v2419_v29, %s3407_s24 }
 0x59b   : > { %2390 = vrot.lane.b32.xlu0 %v2384_v30, %s3408_s2 }
 0x59c   : > { %2388 = vrot.lane.b32.xlu1 %v2385_v25, %s3408_s2 }
 0x59f   : > { %2355 = vrot.lane.b32.xlu0 %v2349_v44, %s3409_s25 }
 0x5a0   : > { %2353 = vrot.lane.b32.xlu1 %v2350_v33, %s3409_s25 }
 0x5a3   : > { %2303 = vrot.lane.b32.xlu0 %v2300_v34, %s3410_s3 }
 0x5a4   : > { %2305 = vrot.lane.b32.xlu1 %v2299_v22, %s3410_s3 }
 0x5a7   : > { %2270 = vrot.lane.b32.xlu0 %v2264_v36, %s3406_s28 }
 0x5a8   : > { %2268 = vrot.lane.b32.xlu1 %v2265_v39, %s3406_s28 }
 0x5ab   : > { %2231 = vrot.lane.b32.xlu0 %v2228_v48, %s3407_s24 }
 0x5ac   : > { %2233 = vrot.lane.b32.xlu1 %v2227_v51, %s3407_s24 }
 0x5af   : > { %2196 = vrot.lane.b32.xlu0 %v2193_v9, %s3408_s2 }
 0x5b0   : > { %2198 = vrot.lane.b32.xlu1 %v2192_v57, %s3408_s2 }
 0x5b3   : > { %2229 = vrot.lane.b32.xlu0 %v2220_v38, %s3407_s24 }
 0x5b4   : > { %2194 = vrot.lane.b32.xlu1 %v2185_v49, %s3408_s2 }
 0x5b7   : > { %2490 = vperm.xlu0 %3322, %v2487_v10  }
 0x5b8   : > { %2894 = vperm.xlu1 %3323, %v2891_v58  }
 0x5f9   : > { %v2453_v5 = vpop.permute.xlu0 %2452 }
 0x5fa   : > { %v2421_v31 = vpop.permute.xlu1 %2420 }
 0x5fd   : > { %v2387_v59 = vpop.permute.xlu0 %2386 }
 0x5fe   : > { %v2352_v60 = vpop.permute.xlu1 %2351 }
 0x601   : > { %v2302_v61 = vpop.permute.xlu0 %2301 }
 0x602   : > { %v2267_v62 = vpop.permute.xlu1 %2266 }
 0x605   : > { %v2455_v63 = vpop.permute.xlu0 %2454 }
 0x606   : > { %v2458_v1 = vsel %vm2272_vm8, %v2453_v5, %v2455_v63  ;;  %v2457_v2 = vpop.permute.xlu1 %2456 }
 0x607   : > { %v2462_v3 = vsel %vm2170_vm14, %v2458_v1, 0.0  ;;  %v2459_v4 = vsel %vm2272_vm8, %v2455_v63, %v2457_v2 }
 0x608   : > { %2464 = vst [vmem:[#allocation7 + $0x68] sm:$0x3] %v2462_v3  ;;  %v2463_v0 = vsel %vm2171_vm4, %v2459_v4, 0.0 }
 0x609   : > { %2465 = vst [vmem:[#allocation7 + $0x60] sm:$0x3] %v2463_v0  ;;  %v2425_v7 = vpop.permute.xlu0 %2424 }
 0x60a   : > { %v2423_v11 = vpop.permute.xlu1 %2422 }
 0x60b   : > { %v2426_v14 = vsel %vm2235_vm13, %v2421_v31, %v2423_v11  ;;  %v2427_v16 = vsel %vm2235_vm13, %v2423_v11, %v2425_v7 }
 0x60c   : > { %2430 = vst [vmem:[#allocation7 + $0x30] sm:$0x3] %v2426_v14  ;;  %2431 = vst [vmem:[#allocation7 + $0x18] sm:$0x3] %v2427_v16 }
 0x60d   : > { %v2391_v17 = vpop.permute.xlu0 %2390 }
 0x60e   : > { %v2389_v19 = vpop.permute.xlu1 %2388 }
 0x60f   : > { %v2392_v23 = vsel %vm2200_vm7, %v2387_v59, %v2389_v19  ;;  %v2393_v24 = vsel %vm2200_vm7, %v2389_v19, %v2391_v17  ;;  %v2485_v28 = vld [vmem:[#allocation7 + $0x68] sm:$0xff] }
 0x610   : > { %v2396_v54 = vsel %vm2168_vm10, %v2392_v23, 0.0  ;;  %v2397_v47 = vsel %vm2169_vm11, %v2393_v24, 0.0  ;;  %v2486_v29 = vld [vmem:[#allocation7 + $0x60] sm:$0xff] }
 0x611   : > { %2398 = vst [vmem:[#allocation7 + $0x10] sm:$0x3] %v2396_v54  ;;  %2399 = vst [vmem:[#allocation7 + $0x48] sm:$0x3] %v2397_v47  ;;  %2510 = vmatprep.subr.mxu1 %v2486_v29  ;;  %v2356_v30 = vpop.permute.xlu0 %2355  ;;  %v2468_v47 = vld [vmem:[%s4227_s11] sm:$0x3] }
 0x612   : > { %2511 = vmatpush1.msra.mxu1 %v2485_v28  ;;  %v2354_v32 = vpop.permute.xlu1 %2353 }
 0x613   : > { %v2358_v25 = vsel %vm2357_vm1, %v2352_v60, %v2354_v32  ;;  %v2359_v44 = vsel %vm2357_vm1, %v2354_v32, %v2356_v30  ;;  %v2484_v33 = vld [vmem:[#allocation7 + $0x18] sm:$0xff]  ;;  %v2483_v37 = vld [vmem:[#allocation7 + $0x30] sm:$0xff]  ;;  %v2478_v60 = vld [vmem:[#allocation7 + $0x40] sm:$0xff]  ;;  %vm4271_vm1 = vcmask 1039360  }
 0x614   : > { %v2362_v34 = vsel %vm2170_vm14, %v2358_v25, 0.0  ;;  %v2363_v20 = vsel %vm2171_vm4, %v2359_v44, 0.0  ;;  %2512 = vmatprep.subr.mxu1 %v2484_v33  ;;  %v2570_v30 = vld [vmem:[%s4230_s14] sm:$0xff] }
 0x615   : > { %2364 = vst [vmem:[#allocation7 + $0x50] sm:$0x3] %v2362_v34  ;;  %2365 = vst [vmem:[#allocation7 + $0x28] sm:$0x3] %v2363_v20  ;;  %2513 = vmatpush1.msra.mxu1 %v2483_v37  ;;  %v2304_v22 = vpop.permute.xlu0 %2303 }
 0x616   : > { %v2307_v35 = vsel %vm684_vm2, %v2302_v61, %v2304_v22  ;;  %v2306_v36 = vpop.permute.xlu1 %2305 }
 0x617   : > { %v2311_v38 = vsel %vm2168_vm10, %v2307_v35, 0.0  ;;  %v2308_v39 = vsel %vm684_vm2, %v2304_v22, %v2306_v36  ;;  %vm4261_vm2 = vcmask 908288  }
 0x618   : > { %2313 = vst [vmem:[#allocation7 + $0x70] sm:$0x3] %v2311_v38  ;;  %v2312_v41 = vsel %vm2169_vm11, %v2308_v39, 0.0  ;;  %v2482_v46 = vld [vmem:[#allocation7 + $0x48] sm:$0xff]  ;;  %v2481_v48 = vld [vmem:[#allocation7 + $0x10] sm:$0xff] }
 0x619   : > { %2314 = vst [vmem:[#allocation7 + $0x80] sm:$0x3] %v2312_v41  ;;  %2514 = vmatprep.subr.mxu1 %v2482_v46  ;;  %v2271_v49 = vpop.permute.xlu0 %2270 }
 0x61a   : > { %2515 = vmatpush1.msra.mxu1 %v2481_v48  ;;  %v2269_v51 = vpop.permute.xlu1 %2268 }
 0x61b   : > { %v2273_v55 = vsel %vm2272_vm8, %v2267_v62, %v2269_v51  ;;  %v2274_v9 = vsel %vm2272_vm8, %v2269_v51, %v2271_v49  ;;  %v2477_v62 = vld [vmem:[#allocation7 + $0x88] sm:$0xff] }
 0x61c   : > { %v2277_v57 = vsel %vm2170_vm14, %v2273_v55, 0.0  ;;  %v2278_v10 = vsel %vm2171_vm4, %v2274_v9, 0.0  ;;  %v2480_v58 = vld [vmem:[#allocation7 + $0x28] sm:$0xff]  ;;  %v2479_v5 = vld [vmem:[#allocation7 + $0x50] sm:$0xff]  ;;  %vm4265_vm14 = vcmp.lt.s32.totalorder %v3654_v27, 15 }
 0x61d   : > { %2279 = vst [vmem:[#allocation7 + $0x20] sm:$0x3] %v2277_v57  ;;  %2280 = vst [vmem:[#allocation7 + $0x8] sm:$0x3] %v2278_v10  ;;  %2516 = vmatprep.subr.mxu1 %v2480_v58  ;;  %v2232_v31 = vpop.permute.xlu0 %2231 }
 0x61e   : > { %2517 = vmatpush1.msra.mxu1 %v2479_v5  ;;  %v2234_v59 = vpop.permute.xlu1 %2233  ;;  %vm4266_vm4 = vmmov %vm4265_vm14 }
 0x61f   : > { %v2237_v61 = vsel %vm2235_vm13, %v2232_v31, %v2234_v59  ;;  %2518 = vmatprep.subr.mxu1 %v2478_v60  ;;  %v2475_v63 = vld [vmem:[#allocation7 + $0x70] sm:$0xff] }
 0x620   : > { %2241 = vst [vmem:[#allocation7 + $0x58] sm:$0x3] %v2237_v61  ;;  %2519 = vmatpush1.msra.mxu1 %v2477_v62  ;;  %v2476_v1 = vld [vmem:[#allocation7 + $0x80] sm:$0xff] }
 0x621   : > { %2520 = vmatprep.subr.mxu1 %v2476_v1  ;;  %v2197_v2 = vpop.permute.xlu0 %2196 }
 0x622   : > { %2521 = vmatpush1.msra.mxu1 %v2475_v63  ;;  %v2199_v3 = vpop.permute.xlu1 %2198 }
 0x623   : > { %v2202_v4 = vsel %vm2200_vm7, %v2197_v2, %v2199_v3 }
 0x624   : > { %v2206_v0 = vsel %vm2169_vm11, %v2202_v4, 0.0  ;;  %v2474_v7 = vld [vmem:[#allocation7 + $0x8] sm:$0xff]  ;;  %v2473_v11 = vld [vmem:[#allocation7 + $0x20] sm:$0xff] }
 0x625   : > { %2208 = vst [vmem:[#allocation7 + $0x38] sm:$0x3] %v2206_v0  ;;  %2522 = vmatprep.subr.mxu1 %v2474_v7  ;;  %v2230_v14 = vpop.permute.xlu0 %2229 }
 0x626   : > { %2523 = vmatpush1.msra.mxu1 %v2473_v11  ;;  %v2236_v16 = vsel %vm2235_vm13, %v2230_v14, %v2232_v31  ;;  %v2195_v17 = vpop.permute.xlu1 %2194  ;;  %vm4267_vm13 = vcmask 924672  }
 0x627   : > { %2240 = vst [vmem:[#allocation7 + $0x78] sm:$0x3] %v2236_v16  ;;  %v2201_v19 = vsel %vm2200_vm7, %v2195_v17, %v2197_v2  ;;  %v2472_v23 = vld [vmem:[#allocation7 + $0x58] sm:$0xff]  ;;  %vm4268_vm7 = vmmov %vm4267_vm13 }
 0x628   : > { %v2205_v24 = vsel %vm2168_vm10, %v2201_v19, 0.0  ;;  %2524 = vmatprep.subr.mxu1 %v2472_v23  ;;  %vm4269_vm10 = vcmp.ge.s32.totalorder %v3654_v27, 1 }
 0x629   : > { %2207 = vst [vmem:[#allocation7] sm:$0x3] %v2205_v24  ;;  %vm4270_vm11 = vmmov %vm4269_vm10 }
 0x62c   : > { %v2470_v54 = vld [vmem:[#allocation7 + $0x38] sm:$0xff] }
 0x62e   : > { %v2471_v28 = vld [vmem:[#allocation7 + $0x78] sm:$0xff] }
 0x62f   : > { %2525 = vmatpush1.msra.mxu1 %v2471_v28 }
 0x630   : > { %2526 = vmatprep.subr.mxu1 %v2470_v54  ;;  %v2469_v29 = vld [vmem:[#allocation7] sm:$0xff] }
 0x631   : > { %2527 = vmatpush1.msra.mxu1 %v2469_v29 }
 0x632   : > { %3263 = vmatmul.mubr.msk.f32.vlgmr.msra.gmra.mxu1 %vm1206_vm9, %v2468_v47  ;;  %3264 = vmatprep.subr.msk.mxu1 %vm857_vm3, %v1713_v15  ;;  %v2491_v43 = vpop.permute.xlu0 %2490 }
 0x633   : > { %3265 = vmatpush1.msk.msra.mxu1 %vm857_vm3, %v1712_v12  ;;  %2642 = vmatprep.mubr.f32.mxu1 %v3832_v6  ;;  %v2895_v39 = vpop.permute.xlu1 %2894 }
 0x634   : > { %3267 = vmatprep.subr.msk.mxu1 %vm857_vm3, %v1282_v45 }
 0x636   : > { %3266 = vmatmul.mubr.msk.f32.vlgmr.msra.gmra.mxu1 %vm1448_vm15, %v2570_v30 }
 0x637   : > { %3268 = vmatpush1.msk.msra.mxu1 %vm857_vm3, %v1281_v42  ;;  %2720 = vmatprep.mubr.f32.mxu1 %v3832_v6 }
 0x638   : > { %3270 = vmatprep.subr.msk.mxu1 %vm857_vm3, %v2143_v56 }
 0x63a   : > { %3269 = vmatmul.mubr.msk.f32.vlgmr.msra.gmra.mxu1 %vm1448_vm15, %v2569_v8 }
 0x63b   : > { %3271 = vmatpush1.msk.msra.mxu1 %vm857_vm3, %v2142_v52  ;;  %2799 = vmatprep.mubr.f32.mxu1 %v3832_v6  ;;  %v3033_v52 = vld [vmem:[#allocation6 + $0x18] sm:$0xff] }
 0x63c   : > { %3041 = vrot.lane.b32.xlu0 %v3033_v52, %s3383_s26  ;;  %3059 = vrot.lane.b32.xlu1 %v3033_v52, %s3382_s1 }
 0x63e   : > { %3272 = vmatmul.mubr.msk.f32.vlgmr.msra.gmra.mxu1 %vm1448_vm15, %v2727_v40 }
 0x63f   : > { %2882 = vmatprep.mubr.f32.mxu1 %v3832_v6 }
 0x640   : > { %3021 = vrot.lane.b32.xlu0 %v3033_v52, %s3384_s4  ;;  %2953 = vrot.lane.b32.xlu1 %v3832_v6, %s3387_s0 }
 0x644   : > { %3001 = vrot.lane.b32.xlu0 %v3033_v52, %s3385_s29 }
 0x648   : > { %2973 = vrot.lane.b32.xlu0 %v3832_v6, %s3386_s30 }
 0x6ae   : > { %v3042_v57 = vpop.permute.xlu0 %3041  ;;  %v3060_v5 = vpop.permute.xlu1 %3059 }
 0x6b2   : > { %v3022_v10 = vpop.permute.xlu0 %3021  ;;  %v2954_v59 = vpop.permute.xlu1 %2953 }
 0x6b6   : > { %v3002_v58 = vpop.permute.xlu0 %3001 }
 0x6ba   : > { %v2974_v31 = vpop.permute.xlu0 %2973 }
 0x6f2   : > { %v2562_v42 = vpop.f32.mrf.mxu1 }
 0x6f3   : > { %v2563_v45 = vadd.f32 %v2562_v42, %v2491_v43 }
 0x6f4   : > { %v2564_v12 = vpop.f32.mrf.mxu1 }
 0x6f5   : > { %v2565_v13 = vadd.f32 %v2564_v12, %v2491_v43  ;;  %v2567_v53 = vmax.f32 %v2563_v45, 0.0 }
 0x6f6   : > { %v2644_v56 = vpop.f32.mrf.mxu1 }
 0x6f7   : > { %v2568_v15 = vmax.f32 %v2565_v13, 0.0 }
 0x6f8   : > { %v2646_v32 = vpop.f32.mrf.mxu1 }
 0x6f9   : > { %3273 = vmatprep.subr.msk.mxu1 %vm857_vm3, %v2568_v15 }
 0x6fa   : > { %3274 = vmatpush1.msk.msra.mxu1 %vm857_vm3, %v2567_v53  ;;  %v2722_v25 = vpop.f32.mrf.mxu1  ;;  %vm4262_vm3 = vmmov %vm4261_vm2 }
 0x6fb   : > { %3275 = vmatmul.mubr.msk.f32.vlgmr.msra.gmra.mxu1 %vm1448_vm15, %v2808_v50  ;;  %v2723_v37 = vadd.f32 %v2722_v25, %v2644_v56  ;;  %vm4263_vm15 = vcmask 916480  }
 0x6fc   : > { %v2724_v44 = vpop.f32.mrf.mxu1  ;;  %vm4264_vm8 = vmmov %vm4263_vm15 }
 0x6fd   : > { %v2725_v34 = vadd.f32 %v2724_v44, %v2646_v32 }
 0x6fe   : > { %v2801_v33 = vpop.f32.mrf.mxu1 }
 0x6ff   : > { %v2806_v22 = vadd.f32 %v2801_v33, %v2723_v37 }
 0x700   : > { %v2803_v20 = vpop.f32.mrf.mxu1 }
 0x701   : > { %v2807_v36 = vadd.f32 %v2803_v20, %v2725_v34 }
 0x7bb   : > { %v2884_v35 = vpop.f32.mrf.mxu1 }
 0x7bc   : > { %v2889_v38 = vadd.f32 %v2884_v35, %v2806_v22 }
 0x7bd   : > { %v2886_v41 = vpop.f32.mrf.mxu1 }
 0x7be   : > { %v2897_v46 = vadd.f32 %v2895_v39, %v2889_v38  ;;  %v2890_v48 = vadd.f32 %v2886_v41, %v2807_v36 }
 0x7c0   : > { %v2899_v49 = vmax.f32 %v2897_v46, 0.0  ;;  %v2898_v51 = vadd.f32 %v2895_v39, %v2890_v48  ;;  %v3069_v39 = vld [vmem:[%s4234_s18] sm:$0xff] }
 0x7c2   : > { %v4094_v6 = vadd.f32 %v2899_v49, %v3583_v18  ;;  %v2900_v55 = vmax.f32 %v2898_v51, 0.0  ;;  %v3358_v18 = vld [vmem:[#allocation6] sm:$0xff] }
 0x7c4   : > { %2989 = vst [vmem:[#allocation7 + $0x88] sm:$0xff] %v4094_v6  ;;  %v4098_v9 = vadd.f32 %v2900_v55, %v3588_v21  ;;  %3055 = vrot.lane.b32.xlu0 %v4094_v6, %s3382_s1  ;;  %3037 = vrot.lane.b32.xlu1 %v4094_v6, %s3383_s26  ;;  %v3088_v21 = vld [vmem:[%s4235_s19] sm:$0xff] }
 0x7c6   : > { %2990 = vst [vmem:[#allocation7 + $0x40] sm:$0xff] %v4098_v9 }
 0x7c8   : > { %3017 = vrot.lane.b32.xlu0 %v4094_v6, %s3384_s4  ;;  %2997 = vrot.lane.b32.xlu1 %v4094_v6, %s3385_s29 }
 0x7cc   : > { %2975 = vrot.lane.b32.xlu0 %v4094_v6, %s3386_s30  ;;  %2955 = vrot.lane.b32.xlu1 %v4094_v6, %s3387_s0 }
 0x7d0   : > { %3057 = vrot.lane.b32.xlu0 %v4098_v9, %s3382_s1  ;;  %3039 = vrot.lane.b32.xlu1 %v4098_v9, %s3383_s26 }
 0x7d4   : > { %3019 = vrot.lane.b32.xlu1 %v4098_v9, %s3384_s4  ;;  %2937 = vrot.lane.b32.xlu0 %v4094_v6, %s3388_s21 }
 0x7d8   : > { %2999 = vrot.lane.b32.xlu1 %v4098_v9, %s3385_s29  ;;  %2917 = vrot.lane.b32.xlu0 %v4094_v6, %s3389_s23 }
 0x7dc   : > { %2977 = vrot.lane.b32.xlu1 %v4098_v9, %s3386_s30  ;;  %2957 = vrot.lane.b32.xlu0 %v4098_v9, %s3387_s0  ;;  %s4285_s30 = sshll.u32 %s4288_s22, 4 }
 0x7e0   : > { %2939 = vrot.lane.b32.xlu1 %v4098_v9, %s3388_s21  ;;  %2935 = vrot.lane.b32.xlu0 %v3358_v18, %s3388_s21 }
 0x7e4   : > { %2919 = vrot.lane.b32.xlu1 %v4098_v9, %s3389_s23  ;;  %3091 = vperm.xlu0 %3322, %v3088_v21  }
 0x7e8   : > { %2915 = vrot.lane.b32.xlu1 %v3358_v18, %s3389_s23  ;;  %s649_s23 = scalar_lea.vmem %s4236_s20, %s4285_s30 }
 0x836   : > { %v3056_v60 = vpop.permute.xlu0 %3055  ;;  %v3038_v61 = vpop.permute.xlu1 %3037 }
 0x83a   : > { %v3018_v62 = vpop.permute.xlu0 %3017  ;;  %v2998_v63 = vpop.permute.xlu1 %2997 }
 0x83e   : > { %v2976_v1 = vpop.permute.xlu0 %2975  ;;  %v2956_v2 = vpop.permute.xlu1 %2955 }
 0x83f   : > { %v2979_v3 = vsel %vm1016_vm5, %v2974_v31, %v2976_v1  ;;  %v2959_v4 = vsel %vm981_vm6, %v2954_v59, %v2956_v2 }
 0x840   : > { %v2983_v0 = vsel %vm877_vm0, %v2979_v3, 0.0  ;;  %v2963_v7 = vsel %vm879_vm12, %v2959_v4, 0.0 }
 0x841   : > { %2985 = vst [vmem:[#allocation7 + $0x70] sm:$0xff] %v2983_v0  ;;  %2965 = vst [vmem:[#allocation7 + $0x20] sm:$0xff] %v2963_v7 }
 0x842   : > { %v3058_v11 = vpop.permute.xlu0 %3057  ;;  %v3040_v14 = vpop.permute.xlu1 %3039 }
 0x843   : > { %v3061_v16 = vsel %vm4261_vm2, %v3056_v60, %v3058_v11  ;;  %v3062_v17 = vsel %vm4262_vm3, %v3058_v11, %v3060_v5  ;;  %v3043_v19 = vsel %vm4263_vm15, %v3038_v61, %v3040_v14  ;;  %v3044_v23 = vsel %vm4264_vm8, %v3040_v14, %v3042_v57  ;;  %vm4272_vm2 = vmmov %vm4271_vm1 }
 0x844   : > { %v3065_v24 = vsel %vm879_vm12, %v3061_v16, 0.0  ;;  %v3066_v28 = vsel %vm4265_vm14, %v3062_v17, 0.0  ;;  %3047 = vst [vmem:[#allocation7 + $0x30] sm:$0xff] %v3043_v19  ;;  %3048 = vst [vmem:[#allocation7 + $0x18] sm:$0xff] %v3044_v23  ;;  %3359 = vmatprep.subr.msk.mxu0 %vm4266_vm4, %v3062_v17 }
 0x845   : > { %3067 = vst [vmem:[#allocation7 + $0x68] sm:$0xff] %v3065_v24  ;;  %3068 = vst [vmem:[#allocation7 + $0x60] sm:$0xff] %v3066_v28  ;;  %3360 = vmatpush1.msk.msra.mxu0 %vm879_vm12, %v3061_v16 }
 0x846   : > { %v2938_v54 = vpop.permute.xlu0 %2937  ;;  %v3020_v47 = vpop.permute.xlu1 %3019  ;;  %3113 = vmatprep.subr.mxu0 %v3044_v23  ;;  %vm4273_vm3 = vmmov %vm4266_vm4 }
 0x847   : > { %v3023_v29 = vsel %vm4267_vm13, %v3018_v62, %v3020_v47  ;;  %v3024_v30 = vsel %vm4268_vm7, %v3020_v47, %v3022_v10  ;;  %3114 = vmatpush1.msra.mxu0 %v3043_v19  ;;  %vm4274_vm15 = vmmov %vm4273_vm3  ;;  %vm4281_vm7 = vcmask 138240  }
 0x848   : > { %v3027_v8 = vsel %vm877_vm0, %v3023_v29, 0.0  ;;  %v3028_v40 = vsel %vm4269_vm10, %v3024_v30, 0.0  ;;  %3361 = vmatprep.subr.msk.mxu0 %vm4270_vm11, %v3024_v30  ;;  %vm4275_vm8 = vmmov %vm4273_vm3 }
 0x849   : > { %3029 = vst [vmem:[#allocation7 + $0x10] sm:$0xff] %v3027_v8  ;;  %3030 = vst [vmem:[#allocation7 + $0x48] sm:$0xff] %v3028_v40  ;;  %3362 = vmatpush1.msk.msra.mxu0 %vm877_vm0, %v3023_v29 }
 0x84a   : > { %v2918_v42 = vpop.permute.xlu0 %2917  ;;  %v3000_v43 = vpop.permute.xlu1 %2999  ;;  %vm4276_vm14 = vmmov %vm4269_vm10 }
 0x84b   : > { %v3003_v45 = vsel %vm4271_vm1, %v2998_v63, %v3000_v43  ;;  %v3004_v12 = vsel %vm4272_vm2, %v3000_v43, %v3002_v58  ;;  %vm4277_vm4 = vmmov %vm4269_vm10 }
 0x84c   : > { %v3007_v13 = vsel %vm879_vm12, %v3003_v45, 0.0  ;;  %v3008_v15 = vsel %vm4273_vm3, %v3004_v12, 0.0  ;;  %3363 = vmatprep.subr.msk.mxu0 %vm4274_vm15, %v3004_v12  ;;  %vm4280_vm13 = vmmov %vm4273_vm3 }
 0x84d   : > { %3009 = vst [vmem:[#allocation7 + $0x50] sm:$0xff] %v3007_v13  ;;  %3010 = vst [vmem:[#allocation7 + $0x28] sm:$0xff] %v3008_v15  ;;  %3364 = vmatpush1.msk.msra.mxu0 %vm879_vm12, %v3003_v45 }
 0x84e   : > { %v2958_v53 = vpop.permute.xlu0 %2957  ;;  %v2978_v50 = vpop.permute.xlu1 %2977  ;;  %3119 = vmatprep.subr.mxu0 %v4098_v9  ;;  %vm4282_vm10 = vmmov %vm4277_vm4 }
 0x84f   : > { %v2960_v52 = vsel %vm981_vm6, %v2956_v2, %v2958_v53  ;;  %v2980_v56 = vsel %vm1016_vm5, %v2976_v1, %v2978_v50  ;;  %3120 = vmatpush1.msra.mxu0 %v4094_v6  ;;  %vm4278_vm5 = vcmask 130048   ;;  %vm4283_vm11 = vmmov %vm4277_vm4 }
 0x850   : > { %v2964_v32 = vsel %vm4275_vm8, %v2960_v52, 0.0  ;;  %v2984_v25 = vsel %vm4276_vm14, %v2980_v56, 0.0  ;;  %3365 = vmatprep.subr.msk.mxu0 %vm4277_vm4, %v2980_v56  ;;  %vm4279_vm6 = vmmov %vm4278_vm5 }
 0x851   : > { %2966 = vst [vmem:[#allocation7 + $0x8] sm:$0xff] %v2964_v32  ;;  %2986 = vst [vmem:[#allocation7 + $0x80] sm:$0xff] %v2984_v25  ;;  %3366 = vmatpush1.msk.msra.mxu0 %vm877_vm0, %v2979_v3 }
 0x852   : > { %v2936_v44 = vpop.permute.xlu0 %2935  ;;  %v2940_v33 = vpop.permute.xlu1 %2939  ;;  %3367 = vmatprep.subr.msk.mxu0 %vm4280_vm13, %v2960_v52  ;;  %vm4284_vm1 = vmmov %vm4281_vm7 }
 0x853   : > { %v2941_v37 = vsel %vm4278_vm5, %v2936_v44, %v2938_v54  ;;  %v2942_v34 = vsel %vm4279_vm6, %v2938_v54, %v2940_v33  ;;  %3368 = vmatpush1.msk.msra.mxu0 %vm879_vm12, %v2959_v4 }
 0x854   : > { %2945 = vst [vmem:[#allocation7 + $0x78] sm:$0xff] %v2941_v37  ;;  %2946 = vst [vmem:[#allocation7 + $0x58] sm:$0xff] %v2942_v34  ;;  %3125 = vmatprep.subr.mxu0 %v2942_v34 }
 0x855   : > { %3126 = vmatpush1.msra.mxu0 %v2941_v37 }
 0x856   : > { %v2920_v20 = vpop.permute.xlu1 %2919 }
 0x857   : > { %v2922_v22 = vsel %vm4281_vm7, %v2918_v42, %v2920_v20 }
 0x858   : > { %v2926_v35 = vsel %vm4282_vm10, %v2922_v22, 0.0  ;;  %3369 = vmatprep.subr.msk.mxu0 %vm4283_vm11, %v2922_v22 }
 0x859   : > { %2928 = vst [vmem:[#allocation7 + $0x38] sm:$0xff] %v2926_v35 }
 0x85a   : > { %v2916_v36 = vpop.permute.xlu1 %2915 }
 0x85b   : > { %v2921_v38 = vsel %vm4284_vm1, %v2916_v36, %v2918_v42 }
 0x85c   : > { %v2925_v41 = vsel %vm877_vm0, %v2921_v38, 0.0  ;;  %3370 = vmatpush1.msk.msra.mxu0 %vm877_vm0, %v2921_v38 }
 0x85d   : > { %2927 = vst [vmem:[#allocation7] sm:$0xff] %v2925_v41  ;;  %3276 = vmatmul.mubr.msk.f32.vlgmr.msra.gmra.mxu0 %vm1206_vm9, %v3069_v39 }
 0x85f   : > { %v3092_v46 = vpop.permute.xlu0 %3091 }
 0x91d   : > { %v3163_v48 = vpop.f32.mrf.mxu0 }
 0x91e   : > { %v3164_v27 = vadd.f32 %v3163_v48, %v3092_v46 }
 0x91f   : > { %v3165_v49 = vpop.f32.mrf.mxu0 }
 0x920   : > { %v3168_v51 = vmax.f32 %v3164_v27, 0.0  ;;  %v3166_v6 = vadd.f32 %v3165_v49, %v3092_v46 }
 0x922   : > { %3170 = vst [vmem:[%s649_s23] sm:$0xff] %v3168_v51  ;;  %v3169_v55 = vmax.f32 %v3166_v6, 0.0 }
 0x924   : > { %3171 = vst [vmem:[%s649_s23 + $0x8] sm:$0xff] %v3169_v55 }
 0x925 PF: > { %s4286_s25 = sld [smem:[#allocation8_spill]] }
 0x92b   : > { %s30_s1 = sadd.s32 1, %s4286_s25  }
 0x92c   : > { %p27_p4 = scmp.ge.s32.totalorder %s30_s1, 4  }
 0x92e   :  { %29 = sbr.rel (!%p27_p4) target bundleno = 6 (0x6), region = 133 }

</bundles_post_ra>
